<compile_context>
chip_gen: v6e
topology: v6e:2x2x1
jax: 0.10.0
libtpu: 0.0.40
codegen_flags: <defaults>
</compile_context>

<pallas_src>
import jax
import jax.numpy as jnp
from jax.experimental import pallas as pl
from jax.experimental.pallas import tpu as pltpu

LANE = 128
_MAX_BATCH_TILE = 256   # multiple of 256 fills the MXU M-dim on v6e/v7x; VMEM-safe on v7x.


def _round_up(n, m=LANE):
    return ((n + m - 1) // m) * m


def _default_act_dtype():
    """bf16 elementwise on v6e/v7x (bf16 VPU/EUP); f32 on v5e and earlier."""
    try:
        kind = jax.devices()[0].device_kind.lower()
    except Exception:
        return jnp.float32
    if "v6" in kind or "v7" in kind:
        return jnp.bfloat16
    return jnp.float32


def _elu(x):
    """ELU (alpha=1) written so kernel and reference share the exact same math."""
    one = jnp.asarray(1.0, dtype=x.dtype)
    return jnp.where(x > 0, x, jnp.exp(x) - one)


def _compiler_params():
    return pltpu.CompilerParams(
        dimension_semantics=("parallel",),          # batch grid axis -> megacore on v7x
        vmem_limit_bytes=16 * 1024 * 1024,
    )


# ----------------------------------------------------------------------------
# Fused kernel: encoder -> fused heads/reparam -> decoder -> actor [-> critic]
# ----------------------------------------------------------------------------
def _make_fused_kernel(n_enc, n_dec, n_act, n_cri, code_pad, obs_last_start,
                       num_actor_obs, act_dtype, with_critic):
    n_batch_in = 3 if with_critic else 2
    n_weight_in = (2 * n_enc) + 2 + (2 * n_dec) + (3 + 2 * (n_act - 1)) \
        + (2 * n_cri if with_critic else 0)
    n_in = n_batch_in + n_weight_in

    def hidden(h_bf16, w_ref, b_ref):
        y = jnp.dot(h_bf16, w_ref[...], preferred_element_type=jnp.float32) + b_ref[...]
        return _elu(y.astype(act_dtype)).astype(jnp.bfloat16)

    def final(h_bf16, w_ref, b_ref):
        return jnp.dot(h_bf16, w_ref[...], preferred_element_type=jnp.float32) + b_ref[...]

    def kernel(*refs):
        in_refs = refs[:n_in]
        out_refs = refs[n_in:]
        actions_ref, code_ref, decode_ref = out_refs[0], out_refs[1], out_refs[2]

        obs_flat_ref = in_refs[0]
        eps_ref = in_refs[1]
        idx = 3 if with_critic else 2

        def nxt():
            nonlocal idx
            r = in_refs[idx]
            idx += 1
            return r

        obs_flat = obs_flat_ref[...]                                   # (TB, H*D) f32
        # Last-step observation, sliced in-kernel (no separate HBM read).
        obs_last = obs_flat[:, obs_last_start:obs_last_start + num_actor_obs]

        # --- encoder MLP (ELU after every layer, including the last) ---------
        h = obs_flat.astype(jnp.bfloat16)
        for _ in range(n_enc):
            h = hidden(h, nxt(), nxt())
        feat = h                                                       # (TB, 64) bf16

        # --- fused VAE heads: one (64, 2*code_pad) matmul, lane-aligned split
        w_heads = nxt()
        b_heads = nxt()
        ml = jnp.dot(feat, w_heads[...], preferred_element_type=jnp.float32) + b_heads[...]
        mean = ml[:, :code_pad]
        logvar = jnp.clip(ml[:, code_pad:], -20.0, 4.0)
        # reparameterize: code = mu + eps * exp(0.5*logvar); padded lanes stay 0
        # because eps pad lanes and padded head weight/bias columns are zero.
        code = mean + eps_ref[...] * jnp.exp(0.5 * logvar)             # f32
        code_ref[...] = code                                           # lane-dense (TB,128)
        code_bf16 = code.astype(jnp.bfloat16)                          # hoisted single cast

        # --- decoder MLP ------------------------------------------------------
        h = code_bf16
        for layer in range(n_dec):
            w = nxt()
            b = nxt()
            if layer < n_dec - 1:
                h = hidden(h, w, b)
            else:
                decode_ref[...] = final(h, w, b)                       # lane-dense

        # --- actor MLP; first layer split so no in-kernel narrow concat -------
        w_code = nxt()
        w_obs = nxt()
        b0 = nxt()
        y = (jnp.dot(code_bf16, w_code[...], preferred_element_type=jnp.float32)
             + jnp.dot(obs_last.astype(jnp.bfloat16), w_obs[...],
                       preferred_element_type=jnp.float32)
             + b0[...])
        h = _elu(y.astype(act_dtype)).astype(jnp.bfloat16)
        for layer in range(1, n_act):
            w = nxt()
            b = nxt()
            if layer < n_act - 1:
                h = hidden(h, w, b)
            else:
                actions_ref[...] = final(h, w, b)                      # lane-dense

        # --- critic (optional: fused into the same launch) --------------------
        if with_critic:
            value_ref = out_refs[3]
            critic_obs = in_refs[2][...]
            h = critic_obs.astype(jnp.bfloat16)
            for layer in range(n_cri):
                w = nxt()
                b = nxt()
                if layer < n_cri - 1:
                    h = hidden(h, w, b)
                else:
                    value_ref[...] = final(h, w, b)                    # lane-dense

    return kernel


# ----------------------------------------------------------------------------
# Standalone critic MLP kernel (lane-dense padded output).
# ----------------------------------------------------------------------------
def _make_mlp_kernel(num_layers, act_dtype):
    def kernel(*refs):
        x_ref = refs[0]
        out_ref = refs[-1]
        p = refs[1:-1]
        h = x_ref[...].astype(jnp.bfloat16)
        for layer in range(num_layers):
            w = p[2 * layer]
            b = p[2 * layer + 1]
            y = jnp.dot(h, w[...], preferred_element_type=jnp.float32) + b[...]
            if layer < num_layers - 1:
                h = _elu(y.astype(act_dtype)).astype(jnp.bfloat16)
            else:
                out_ref[...] = y
    return kernel


# ----------------------------------------------------------------------------
# Parameter construction (synthetic init, nn.Linear default uniform).
# Raw f32 params feed the reference; bf16/padded/split params feed the kernels.
# ----------------------------------------------------------------------------
def _init_linear(key, fan_in, fan_out):
    kw, kb = jax.random.split(key)
    lim = 1.0 / jnp.sqrt(jnp.float32(fan_in))
    w = jax.random.uniform(kw, (fan_in, fan_out), jnp.float32, -lim, lim)
    b = jax.random.uniform(kb, (1, fan_out), jnp.float32, -lim, lim)
    return w, b


def _init_mlp(key, dims):
    keys = jax.random.split(key, len(dims) - 1)
    return [_init_linear(k, dims[i], dims[i + 1]) for i, k in enumerate(keys)]


def _pad_cols(w, b, width):
    pad = width - w.shape[1]
    if pad > 0:
        w = jnp.pad(w, ((0, 0), (0, pad)))
        b = jnp.pad(b, ((0, 0), (0, pad)))
    return w, b


def _pad_rows(w, rows):
    pad = rows - w.shape[0]
    if pad > 0:
        w = jnp.pad(w, ((0, pad), (0, 0)))
    return w


def _bf16(w):
    return w.astype(jnp.bfloat16)


class ActorCriticVaeParams:
    def __init__(self, key, num_actor_obs, num_privileged_obs, num_actions,
                 num_latent, actor_hidden_dims, critic_hidden_dims,
                 decoder_hidden_dims, num_history, act_dtype=None):
        assert len(actor_hidden_dims) >= 1 and len(critic_hidden_dims) >= 1
        self.num_actor_obs = num_actor_obs
        self.num_actions = num_actions
        self.num_latent = num_latent
        self.num_history = num_history
        self.code_dim = num_latent + 3
        self.code_pad = _round_up(self.code_dim)
        self.act_pad = _round_up(num_actions)
        self.dec_pad = _round_up(num_actor_obs)
        self.val_pad = _round_up(1)
        self.obs_last_start = (num_history - 1) * num_actor_obs
        self.act_dtype = act_dtype if act_dtype is not None else _default_act_dtype()

        k = jax.random.split(key, 8)
        actor_in = num_actor_obs + num_latent + 3

        # Raw f32 parameters (W is [in, out]).
        self.raw_actor = _init_mlp(k[0], [actor_in] + list(actor_hidden_dims) + [num_actions])
        self.raw_critic = _init_mlp(k[1], [num_privileged_obs] + list(critic_hidden_dims) + [1])
        self.raw_encoder = _init_mlp(k[2], [num_history * num_actor_obs, 512, 256, 64])
        self.raw_heads = [
            _init_linear(k[3], 64, num_latent),   # encode_mean_latent
            _init_linear(k[4], 64, num_latent),   # encode_logvar_latent
            _init_linear(k[5], 64, 3),            # encode_mean_vel
            _init_linear(k[6], 64, 3),            # encode_logvar_vel
        ]
        self.raw_decoder = _init_mlp(
            k[7], [self.code_dim] + list(decoder_hidden_dims) + [num_actor_obs])
        self.std = jnp.ones((num_actions,), jnp.float32)   # init_noise_std * ones

        # --- prepared kernel parameters (bf16 weights, f32 biases) -----------
        # Encoder.
        self.enc_flat = []
        for w, b in self.raw_encoder:
            self.enc_flat += [_bf16(w), b]
        self.n_enc = len(self.raw_encoder)

        # Heads fused into ONE matmul: [mean_vel|mean_latent|pad | logvar_vel|logvar_latent|pad].
        (w_ml, b_ml), (w_ll, b_ll), (w_mv, b_mv), (w_lv, b_lv) = self.raw_heads
        w_mean, b_mean = _pad_cols(jnp.concatenate([w_mv, w_ml], axis=1),
                                   jnp.concatenate([b_mv, b_ml], axis=1), self.code_pad)
        w_logv, b_logv = _pad_cols(jnp.concatenate([w_lv, w_ll], axis=1),
                                   jnp.concatenate([b_lv, b_ll], axis=1), self.code_pad)
        w_heads = jnp.concatenate([w_mean, w_logv], axis=1)     # (64, 2*code_pad)
        b_heads = jnp.concatenate([b_mean, b_logv], axis=1)     # (1, 2*code_pad)
        self.head_flat = [_bf16(w_heads), b_heads]

        # Decoder: first layer rows padded to code_pad, last layer cols padded.
        self.dec_flat = []
        n_dec = len(self.raw_decoder)
        for i, (w, b) in enumerate(self.raw_decoder):
            if i == 0:
                w = _pad_rows(w, self.code_pad)
            if i == n_dec - 1:
                w, b = _pad_cols(w, b, self.dec_pad)
            self.dec_flat += [_bf16(w), b]
        self.n_dec = n_dec

        # Actor: split first layer into (code, obs) parts; pad last layer cols.
        self.act_flat = []
        n_act = len(self.raw_actor)
        w0, b0 = self.raw_actor[0]
        w0_code = _pad_rows(w0[: self.code_dim, :], self.code_pad)
        w0_obs = w0[self.code_dim:, :]
        self.act_flat += [_bf16(w0_code), _bf16(w0_obs), b0]
        for i in range(1, n_act):
            w, b = self.raw_actor[i]
            if i == n_act - 1:
                w, b = _pad_cols(w, b, self.act_pad)
            self.act_flat += [_bf16(w), b]
        self.n_act = n_act

        # Critic: pad last layer cols to 128 for lane-dense output.
        self.critic_flat = []
        n_cri = len(self.raw_critic)
        for i, (w, b) in enumerate(self.raw_critic):
            if i == n_cri - 1:
                w, b = _pad_cols(w, b, self.val_pad)
            self.critic_flat += [_bf16(w), b]
        self.n_critic = n_cri


# ----------------------------------------------------------------------------
# Forward passes.
# ----------------------------------------------------------------------------
def _batch_tiling(B, batch_tile):
    TB = batch_tile if batch_tile is not None else min(_MAX_BATCH_TILE, _round_up(B, 8))
    TB = _round_up(TB, 8)
    B_pad = _round_up(B, TB)
    return TB, B_pad


def _pad_batch(x, B_pad):
    B = x.shape[0]
    if B_pad > B:
        return jnp.pad(x, ((0, B_pad - B), (0, 0)))
    return x


def _fused_forward(params, obs_history, eps_key, critic_obs=None, batch_tile=None):
    """Single pallas_call: encoder -> heads/reparam -> decoder -> actor [-> critic]."""
    with_critic = critic_obs is not None
    B = obs_history.shape[0]
    obs_flat = obs_history.reshape(B, -1)                               # glue
    eps = jax.random.normal(eps_key, (B, params.code_dim), jnp.float32)
    eps_pad = jnp.pad(eps, ((0, 0), (0, params.code_pad - params.code_dim)))

    TB, B_pad = _batch_tiling(B, batch_tile)
    obs_flat = _pad_batch(obs_flat, B_pad)
    eps_pad = _pad_batch(eps_pad, B_pad)
    batch_inputs = [obs_flat, eps_pad]
    if with_critic:
        batch_inputs.append(_pad_batch(critic_obs, B_pad))

    weight_inputs = (params.enc_flat + params.head_flat + params.dec_flat
                     + params.act_flat + (params.critic_flat if with_critic else []))

    def batch_spec(arr):
        return pl.BlockSpec((TB, arr.shape[1]), lambda i: (i, 0))

    def weight_spec(arr):
        return pl.BlockSpec(arr.shape, lambda i: (0, 0))   # resident across grid steps

    in_specs = [batch_spec(a) for a in batch_inputs] + [weight_spec(a) for a in weight_inputs]

    out_widths = [params.act_pad, params.code_pad, params.dec_pad]
    if with_critic:
        out_widths.append(params.val_pad)
    out_shapes = tuple(jax.ShapeDtypeStruct((B_pad, w), jnp.float32) for w in out_widths)
    out_specs = tuple(pl.BlockSpec((TB, w), lambda i: (i, 0)) for w in out_widths)

    kernel = _make_fused_kernel(
        params.n_enc, params.n_dec, params.n_act, params.n_critic,
        params.code_pad, params.obs_last_start, params.num_actor_obs,
        params.act_dtype, with_critic)

    outs = pl.pallas_call(
        kernel,
        out_shape=out_shapes,
        grid=(B_pad // TB,),
        in_specs=in_specs,
        out_specs=out_specs,
        compiler_params=_compiler_params(),
    )(*batch_inputs, *weight_inputs)

    actions_mean = outs[0][:B, :params.num_actions]                     # glue slices
    code = outs[1][:B, :params.code_dim]
    decode = outs[2][:B, :params.num_actor_obs]
    if with_critic:
        value = outs[3][:B, :1]
        return actions_mean, code, decode, value
    return actions_mean, code, decode


def policy_forward(params, obs_history, eps_key, batch_tile=None):
    return _fused_forward(params, obs_history, eps_key, None, batch_tile)


def act_inference(params, obs_history, eps_key, batch_tile=None):
    actions_mean, _code, _decode = policy_forward(params, obs_history, eps_key, batch_tile)
    return actions_mean


def forward_with_value(params, obs_history, critic_obs, eps_key, batch_tile=None):
    """Training-step path: actor + VAE + critic in one kernel launch."""
    return _fused_forward(params, obs_history, eps_key, critic_obs, batch_tile)


def evaluate(params, critic_obs, batch_tile=None):
    B = critic_obs.shape[0]
    TB, B_pad = _batch_tiling(B, batch_tile)
    x = _pad_batch(critic_obs, B_pad)
    kernel = _make_mlp_kernel(params.n_critic, params.act_dtype)
    inputs = [x] + params.critic_flat
    in_specs = ([pl.BlockSpec((TB, x.shape[1]), lambda i: (i, 0))]
                + [pl.BlockSpec(a.shape, lambda i: (0, 0)) for a in params.critic_flat])
    value_pad = pl.pallas_call(
        kernel,
        out_shape=jax.ShapeDtypeStruct((B_pad, params.val_pad), jnp.float32),
        grid=(B_pad // TB,),
        in_specs=in_specs,
        out_specs=pl.BlockSpec((TB, params.val_pad), lambda i: (i, 0)),
        compiler_params=_compiler_params(),
    )(*inputs)
    return value_pad[:B, :1]


# ----------------------------------------------------------------------------
# Pure-JAX reference mirroring the kernel's dtype handling exactly.
# ----------------------------------------------------------------------------
def _reference_forward(params, obs_history, eps, critic_obs):
    act_dtype = params.act_dtype

    def dot_bf16(x, w):
        return (x.astype(jnp.bfloat16).astype(jnp.float32)
                @ w.astype(jnp.bfloat16).astype(jnp.float32))

    def hidden(x, w, b):
        y = dot_bf16(x, w) + b
        return _elu(y.astype(act_dtype)).astype(jnp.float32)

    def final(x, w, b):
        return dot_bf16(x, w) + b

    def mlp(x, layers, act_last=False):
        h = x
        n = len(layers)
        for i, (w, b) in enumerate(layers):
            if i < n - 1 or act_last:
                h = hidden(h, w, b)
            else:
                h = final(h, w, b)
        return h

    B = obs_history.shape[0]
    flat = obs_history.reshape(B, -1)
    feat = mlp(flat, params.raw_encoder, act_last=True)
    (w_ml, b_ml), (w_ll, b_ll), (w_mv, b_mv), (w_lv, b_lv) = params.raw_heads
    mean_latent = final(feat, w_ml, b_ml)
    logvar_latent = final(feat, w_ll, b_ll)
    mean_vel = final(feat, w_mv, b_mv)
    logvar_vel = final(feat, w_lv, b_lv)

    def reparam(mu, logvar, e):
        logvar = jnp.clip(logvar, -20.0, 4.0)
        return mu + e * jnp.exp(0.5 * logvar)

    code_vel = reparam(mean_vel, logvar_vel, eps[:, :3])
    code_latent = reparam(mean_latent, logvar_latent, eps[:, 3:])
    code = jnp.concatenate([code_vel, code_latent], axis=-1)
    decode = mlp(code, params.raw_decoder)
    obs_last = obs_history[:, -1, :]
    actions_mean = mlp(jnp.concatenate([code, obs_last], axis=-1), params.raw_actor)
    value = mlp(critic_obs, params.raw_critic)
    return actions_mean, code, decode, value


# ----------------------------------------------------------------------------
if __name__ == "__main__":
    # Small, module-consistent shapes.  batch_tile=8 forces a 2-step batch grid
    # so the tiled/pipelined path is exercised even at this toy batch size.
    B = 16
    num_actor_obs = 32
    num_privileged_obs = 48
    num_actions = 12
    num_latent = 16
    num_history = 5
    hidden = [128, 64, 32]

    root = jax.random.PRNGKey(0)
    k_params, k_obs_hist, k_priv, k_eps = jax.random.split(root, 4)

    params = ActorCriticVaeParams(
        k_params, num_actor_obs, num_privileged_obs, num_actions, num_latent,
        actor_hidden_dims=hidden, critic_hidden_dims=hidden,
        decoder_hidden_dims=hidden, num_history=num_history)

    obs_history = jax.random.normal(
        k_obs_hist, (B, num_history, num_actor_obs), jnp.float32)
    critic_obs = jax.random.normal(k_priv, (B, num_privileged_obs), jnp.float32)

    # Fused policy + critic (single launch), plus the standalone entry points.
    actions_mean, code, decode, value = forward_with_value(
        params, obs_history, critic_obs, k_eps, batch_tile=8)
    actions_only = act_inference(params, obs_history, k_eps, batch_tile=8)
    value_only = evaluate(params, critic_obs, batch_tile=8)
    jax.block_until_ready((actions_mean, code, decode, value, actions_only, value_only))

    # Correctness check against a pure-JAX reference with identical dtype handling.
    eps = jax.random.normal(k_eps, (B, params.code_dim), jnp.float32)
    ref_actions, ref_code, ref_decode, ref_value = _reference_forward(
        params, obs_history, eps, critic_obs)

    tol = 1e-2 if params.act_dtype == jnp.bfloat16 else 2e-3
    assert actions_mean.shape == (B, num_actions)
    assert code.shape == (B, num_latent + 3)
    assert decode.shape == (B, num_actor_obs)
    assert value.shape == (B, 1)
    assert bool(jnp.all(jnp.isfinite(actions_mean)))
    assert bool(jnp.all(jnp.isfinite(value)))
    assert bool(jnp.allclose(code, ref_code, atol=tol, rtol=tol))
    assert bool(jnp.allclose(decode, ref_decode, atol=tol, rtol=tol))
    assert bool(jnp.allclose(actions_mean, ref_actions, atol=tol, rtol=tol))
    assert bool(jnp.allclose(actions_only, ref_actions, atol=tol, rtol=tol))
    assert bool(jnp.allclose(value, ref_value, atol=tol, rtol=tol))
    assert bool(jnp.allclose(value_only, ref_value, atol=tol, rtol=tol))

    print("KERNEL_OK")
</pallas_src>

<mosaic_0001>
module attributes {stable_mosaic.version = 11 : i64} {
  func.func @kernel(%arg0: i32, %arg1: memref<8x160xf32, #tpu.memory_space<vmem>>, %arg2: memref<8x128xf32, #tpu.memory_space<vmem>>, %arg3: memref<8x48xf32, #tpu.memory_space<vmem>>, %arg4: memref<160x512xbf16, #tpu.memory_space<vmem>>, %arg5: memref<1x512xf32, #tpu.memory_space<vmem>>, %arg6: memref<512x256xbf16, #tpu.memory_space<vmem>>, %arg7: memref<1x256xf32, #tpu.memory_space<vmem>>, %arg8: memref<256x64xbf16, #tpu.memory_space<vmem>>, %arg9: memref<1x64xf32, #tpu.memory_space<vmem>>, %arg10: memref<64x256xbf16, #tpu.memory_space<vmem>>, %arg11: memref<1x256xf32, #tpu.memory_space<vmem>>, %arg12: memref<128x128xbf16, #tpu.memory_space<vmem>>, %arg13: memref<1x128xf32, #tpu.memory_space<vmem>>, %arg14: memref<128x64xbf16, #tpu.memory_space<vmem>>, %arg15: memref<1x64xf32, #tpu.memory_space<vmem>>, %arg16: memref<64x32xbf16, #tpu.memory_space<vmem>>, %arg17: memref<1x32xf32, #tpu.memory_space<vmem>>, %arg18: memref<32x128xbf16, #tpu.memory_space<vmem>>, %arg19: memref<1x128xf32, #tpu.memory_space<vmem>>, %arg20: memref<128x128xbf16, #tpu.memory_space<vmem>>, %arg21: memref<32x128xbf16, #tpu.memory_space<vmem>>, %arg22: memref<1x128xf32, #tpu.memory_space<vmem>>, %arg23: memref<128x64xbf16, #tpu.memory_space<vmem>>, %arg24: memref<1x64xf32, #tpu.memory_space<vmem>>, %arg25: memref<64x32xbf16, #tpu.memory_space<vmem>>, %arg26: memref<1x32xf32, #tpu.memory_space<vmem>>, %arg27: memref<32x128xbf16, #tpu.memory_space<vmem>>, %arg28: memref<1x128xf32, #tpu.memory_space<vmem>>, %arg29: memref<48x128xbf16, #tpu.memory_space<vmem>>, %arg30: memref<1x128xf32, #tpu.memory_space<vmem>>, %arg31: memref<128x64xbf16, #tpu.memory_space<vmem>>, %arg32: memref<1x64xf32, #tpu.memory_space<vmem>>, %arg33: memref<64x32xbf16, #tpu.memory_space<vmem>>, %arg34: memref<1x32xf32, #tpu.memory_space<vmem>>, %arg35: memref<32x128xbf16, #tpu.memory_space<vmem>>, %arg36: memref<1x128xf32, #tpu.memory_space<vmem>>, %arg37: memref<8x128xf32, #tpu.memory_space<vmem>>, %arg38: memref<8x128xf32, #tpu.memory_space<vmem>>, %arg39: memref<8x128xf32, #tpu.memory_space<vmem>>, %arg40: memref<8x128xf32, #tpu.memory_space<vmem>>) attributes {dimension_semantics = [#tpu.dimension_semantics<parallel>], iteration_bounds = array<i64: 2>, scalar_prefetch = 0 : i64, scratch_operands = 0 : i64, tpu.core_type = #tpu.core_type<tc>, window_params = [{transform_indices = @transform_0, window_bounds = array<i64: 8, 160>}, {transform_indices = @transform_1, window_bounds = array<i64: 8, 128>}, {transform_indices = @transform_2, window_bounds = array<i64: 8, 48>}, {pipeline_mode = #tpu.pipeline_mode<synchronous>, transform_indices = @transform_3, window_bounds = array<i64: 160, 512>}, {pipeline_mode = #tpu.pipeline_mode<synchronous>, transform_indices = @transform_4, window_bounds = array<i64: 1, 512>}, {pipeline_mode = #tpu.pipeline_mode<synchronous>, transform_indices = @transform_5, window_bounds = array<i64: 512, 256>}, {pipeline_mode = #tpu.pipeline_mode<synchronous>, transform_indices = @transform_6, window_bounds = array<i64: 1, 256>}, {pipeline_mode = #tpu.pipeline_mode<synchronous>, transform_indices = @transform_7, window_bounds = array<i64: 256, 64>}, {pipeline_mode = #tpu.pipeline_mode<synchronous>, transform_indices = @transform_8, window_bounds = array<i64: 1, 64>}, {pipeline_mode = #tpu.pipeline_mode<synchronous>, transform_indices = @transform_9, window_bounds = array<i64: 64, 256>}, {pipeline_mode = #tpu.pipeline_mode<synchronous>, transform_indices = @transform_10, window_bounds = array<i64: 1, 256>}, {pipeline_mode = #tpu.pipeline_mode<synchronous>, transform_indices = @transform_11, window_bounds = array<i64: 128, 128>}, {pipeline_mode = #tpu.pipeline_mode<synchronous>, transform_indices = @transform_12, window_bounds = array<i64: 1, 128>}, {pipeline_mode = #tpu.pipeline_mode<synchronous>, transform_indices = @transform_13, window_bounds = array<i64: 128, 64>}, {pipeline_mode = #tpu.pipeline_mode<synchronous>, transform_indices = @transform_14, window_bounds = array<i64: 1, 64>}, {pipeline_mode = #tpu.pipeline_mode<synchronous>, transform_indices = @transform_15, window_bounds = array<i64: 64, 32>}, {pipeline_mode = #tpu.pipeline_mode<synchronous>, transform_indices = @transform_16, window_bounds = array<i64: 1, 32>}, {pipeline_mode = #tpu.pipeline_mode<synchronous>, transform_indices = @transform_17, window_bounds = array<i64: 32, 128>}, {pipeline_mode = #tpu.pipeline_mode<synchronous>, transform_indices = @transform_18, window_bounds = array<i64: 1, 128>}, {pipeline_mode = #tpu.pipeline_mode<synchronous>, transform_indices = @transform_19, window_bounds = array<i64: 128, 128>}, {pipeline_mode = #tpu.pipeline_mode<synchronous>, transform_indices = @transform_20, window_bounds = array<i64: 32, 128>}, {pipeline_mode = #tpu.pipeline_mode<synchronous>, transform_indices = @transform_21, window_bounds = array<i64: 1, 128>}, {pipeline_mode = #tpu.pipeline_mode<synchronous>, transform_indices = @transform_22, window_bounds = array<i64: 128, 64>}, {pipeline_mode = #tpu.pipeline_mode<synchronous>, transform_indices = @transform_23, window_bounds = array<i64: 1, 64>}, {pipeline_mode = #tpu.pipeline_mode<synchronous>, transform_indices = @transform_24, window_bounds = array<i64: 64, 32>}, {pipeline_mode = #tpu.pipeline_mode<synchronous>, transform_indices = @transform_25, window_bounds = array<i64: 1, 32>}, {pipeline_mode = #tpu.pipeline_mode<synchronous>, transform_indices = @transform_26, window_bounds = array<i64: 32, 128>}, {pipeline_mode = #tpu.pipeline_mode<synchronous>, transform_indices = @transform_27, window_bounds = array<i64: 1, 128>}, {pipeline_mode = #tpu.pipeline_mode<synchronous>, transform_indices = @transform_28, window_bounds = array<i64: 48, 128>}, {pipeline_mode = #tpu.pipeline_mode<synchronous>, transform_indices = @transform_29, window_bounds = array<i64: 1, 128>}, {pipeline_mode = #tpu.pipeline_mode<synchronous>, transform_indices = @transform_30, window_bounds = array<i64: 128, 64>}, {pipeline_mode = #tpu.pipeline_mode<synchronous>, transform_indices = @transform_31, window_bounds = array<i64: 1, 64>}, {pipeline_mode = #tpu.pipeline_mode<synchronous>, transform_indices = @transform_32, window_bounds = array<i64: 64, 32>}, {pipeline_mode = #tpu.pipeline_mode<synchronous>, transform_indices = @transform_33, window_bounds = array<i64: 1, 32>}, {pipeline_mode = #tpu.pipeline_mode<synchronous>, transform_indices = @transform_34, window_bounds = array<i64: 32, 128>}, {pipeline_mode = #tpu.pipeline_mode<synchronous>, transform_indices = @transform_35, window_bounds = array<i64: 1, 128>}, {transform_indices = @transform_36, window_bounds = array<i64: 8, 128>}, {transform_indices = @transform_37, window_bounds = array<i64: 8, 128>}, {transform_indices = @transform_38, window_bounds = array<i64: 8, 128>}, {transform_indices = @transform_39, window_bounds = array<i64: 8, 128>}]} {
    %c0 = arith.constant 0 : index
    %c0_0 = arith.constant 0 : index
    %0 = vector.load %arg1[%c0, %c0_0] : memref<8x160xf32, #tpu.memory_space<vmem>>, vector<8x160xf32>
    %1 = vector.extract_strided_slice %0 {offsets = [0, 128], sizes = [8, 32], strides = [1, 1]} : vector<8x160xf32> to vector<8x32xf32>
    %2 = arith.truncf %0 : vector<8x160xf32> to vector<8x160xbf16>
    %c0_1 = arith.constant 0 : index
    %c0_2 = arith.constant 0 : index
    %3 = vector.load %arg4[%c0_1, %c0_2] : memref<160x512xbf16, #tpu.memory_space<vmem>>, vector<160x512xbf16>
    %cst = arith.constant dense<0.000000e+00> : vector<8x512xf32>
    %4 = tpu.matmul %2, %3, %cst {dimension_numbers = #tpu.dot_dimension_numbers<[1], [0], [0], [1], [0, 0, 1, 1], [], []>} : vector<8x160xbf16>, vector<160x512xbf16>, vector<8x512xf32> -> vector<8x512xf32>
    %c0_3 = arith.constant 0 : index
    %c0_4 = arith.constant 0 : index
    %5 = vector.load %arg5[%c0_3, %c0_4] : memref<1x512xf32, #tpu.memory_space<vmem>>, vector<1x512xf32>
    %6 = vector.broadcast %5 : vector<1x512xf32> to vector<8x512xf32>
    %7 = arith.addf %4, %6 : vector<8x512xf32>
    %cst_5 = arith.constant 0.000000e+00 : f32
    %8 = vector.broadcast %cst_5 : f32 to vector<8x512xf32>
    %9 = arith.cmpf ogt, %7, %8 : vector<8x512xf32>
    %10 = math.exp %7 : vector<8x512xf32>
    %cst_6 = arith.constant 1.000000e+00 : f32
    %11 = vector.broadcast %cst_6 : f32 to vector<8x512xf32>
    %12 = arith.subf %10, %11 : vector<8x512xf32>
    %13 = arith.select %9, %7, %12 : vector<8x512xi1>, vector<8x512xf32>
    %14 = arith.truncf %13 : vector<8x512xf32> to vector<8x512xbf16>
    %c0_7 = arith.constant 0 : index
    %c0_8 = arith.constant 0 : index
    %15 = vector.load %arg6[%c0_7, %c0_8] : memref<512x256xbf16, #tpu.memory_space<vmem>>, vector<512x256xbf16>
    %cst_9 = arith.constant dense<0.000000e+00> : vector<8x256xf32>
    %16 = tpu.matmul %14, %15, %cst_9 {dimension_numbers = #tpu.dot_dimension_numbers<[1], [0], [0], [1], [0, 0, 1, 1], [], []>} : vector<8x512xbf16>, vector<512x256xbf16>, vector<8x256xf32> -> vector<8x256xf32>
    %c0_10 = arith.constant 0 : index
    %c0_11 = arith.constant 0 : index
    %17 = vector.load %arg7[%c0_10, %c0_11] : memref<1x256xf32, #tpu.memory_space<vmem>>, vector<1x256xf32>
    %18 = vector.broadcast %17 : vector<1x256xf32> to vector<8x256xf32>
    %19 = arith.addf %16, %18 : vector<8x256xf32>
    %cst_12 = arith.constant 0.000000e+00 : f32
    %20 = vector.broadcast %cst_12 : f32 to vector<8x256xf32>
    %21 = arith.cmpf ogt, %19, %20 : vector<8x256xf32>
    %22 = math.exp %19 : vector<8x256xf32>
    %cst_13 = arith.constant 1.000000e+00 : f32
    %23 = vector.broadcast %cst_13 : f32 to vector<8x256xf32>
    %24 = arith.subf %22, %23 : vector<8x256xf32>
    %25 = arith.select %21, %19, %24 : vector<8x256xi1>, vector<8x256xf32>
    %26 = arith.truncf %25 : vector<8x256xf32> to vector<8x256xbf16>
    %c0_14 = arith.constant 0 : index
    %c0_15 = arith.constant 0 : index
    %27 = vector.load %arg8[%c0_14, %c0_15] : memref<256x64xbf16, #tpu.memory_space<vmem>>, vector<256x64xbf16>
    %cst_16 = arith.constant dense<0.000000e+00> : vector<8x64xf32>
    %28 = tpu.matmul %26, %27, %cst_16 {dimension_numbers = #tpu.dot_dimension_numbers<[1], [0], [0], [1], [0, 0, 1, 1], [], []>} : vector<8x256xbf16>, vector<256x64xbf16>, vector<8x64xf32> -> vector<8x64xf32>
    %c0_17 = arith.constant 0 : index
    %c0_18 = arith.constant 0 : index
    %29 = vector.load %arg9[%c0_17, %c0_18] : memref<1x64xf32, #tpu.memory_space<vmem>>, vector<1x64xf32>
    %30 = vector.broadcast %29 : vector<1x64xf32> to vector<8x64xf32>
    %31 = arith.addf %28, %30 : vector<8x64xf32>
    %cst_19 = arith.constant 0.000000e+00 : f32
    %32 = vector.broadcast %cst_19 : f32 to vector<8x64xf32>
    %33 = arith.cmpf ogt, %31, %32 : vector<8x64xf32>
    %34 = math.exp %31 : vector<8x64xf32>
    %cst_20 = arith.constant 1.000000e+00 : f32
    %35 = vector.broadcast %cst_20 : f32 to vector<8x64xf32>
    %36 = arith.subf %34, %35 : vector<8x64xf32>
    %37 = arith.select %33, %31, %36 : vector<8x64xi1>, vector<8x64xf32>
    %38 = arith.truncf %37 : vector<8x64xf32> to vector<8x64xbf16>
    %c0_21 = arith.constant 0 : index
    %c0_22 = arith.constant 0 : index
    %39 = vector.load %arg10[%c0_21, %c0_22] : memref<64x256xbf16, #tpu.memory_space<vmem>>, vector<64x256xbf16>
    %cst_23 = arith.constant dense<0.000000e+00> : vector<8x256xf32>
    %40 = tpu.matmul %38, %39, %cst_23 {dimension_numbers = #tpu.dot_dimension_numbers<[1], [0], [0], [1], [0, 0, 1, 1], [], []>} : vector<8x64xbf16>, vector<64x256xbf16>, vector<8x256xf32> -> vector<8x256xf32>
    %c0_24 = arith.constant 0 : index
    %c0_25 = arith.constant 0 : index
    %41 = vector.load %arg11[%c0_24, %c0_25] : memref<1x256xf32, #tpu.memory_space<vmem>>, vector<1x256xf32>
    %42 = vector.broadcast %41 : vector<1x256xf32> to vector<8x256xf32>
    %43 = arith.addf %40, %42 : vector<8x256xf32>
    %44 = vector.extract_strided_slice %43 {offsets = [0, 0], sizes = [8, 128], strides = [1, 1]} : vector<8x256xf32> to vector<8x128xf32>
    %45 = vector.extract_strided_slice %43 {offsets = [0, 128], sizes = [8, 128], strides = [1, 1]} : vector<8x256xf32> to vector<8x128xf32>
    %cst_26 = arith.constant -2.000000e+01 : f32
    %cst_27 = arith.constant 4.000000e+00 : f32
    %46 = vector.broadcast %cst_26 : f32 to vector<8x128xf32>
    %47 = arith.maximumf %46, %45 : vector<8x128xf32>
    %48 = vector.broadcast %cst_27 : f32 to vector<8x128xf32>
    %49 = arith.minimumf %48, %47 : vector<8x128xf32>
    %c0_28 = arith.constant 0 : index
    %c0_29 = arith.constant 0 : index
    %50 = vector.load %arg2[%c0_28, %c0_29] : memref<8x128xf32, #tpu.memory_space<vmem>>, vector<8x128xf32>
    %cst_30 = arith.constant 5.000000e-01 : f32
    %51 = vector.broadcast %cst_30 : f32 to vector<8x128xf32>
    %52 = arith.mulf %51, %49 : vector<8x128xf32>
    %53 = math.exp %52 : vector<8x128xf32>
    %54 = arith.mulf %50, %53 : vector<8x128xf32>
    %55 = arith.addf %44, %54 : vector<8x128xf32>
    %c0_31 = arith.constant 0 : index
    %c0_32 = arith.constant 0 : index
    %56 = vector.load %arg38[%c0_31, %c0_32] : memref<8x128xf32, #tpu.memory_space<vmem>>, vector<8x128xf32>
    tpu.vector_store %arg38[%c0_31, %c0_32], %55 {strides = array<i32>} : memref<8x128xf32, #tpu.memory_space<vmem>>, vector<8x128xf32>,
    %57 = arith.truncf %55 : vector<8x128xf32> to vector<8x128xbf16>
    %c0_33 = arith.constant 0 : index
    %c0_34 = arith.constant 0 : index
    %58 = vector.load %arg12[%c0_33, %c0_34] : memref<128x128xbf16, #tpu.memory_space<vmem>>, vector<128x128xbf16>
    %cst_35 = arith.constant dense<0.000000e+00> : vector<8x128xf32>
    %59 = tpu.matmul %57, %58, %cst_35 {dimension_numbers = #tpu.dot_dimension_numbers<[1], [0], [0], [1], [0, 0, 1, 1], [], []>} : vector<8x128xbf16>, vector<128x128xbf16>, vector<8x128xf32> -> vector<8x128xf32>
    %c0_36 = arith.constant 0 : index
    %c0_37 = arith.constant 0 : index
    %60 = vector.load %arg13[%c0_36, %c0_37] : memref<1x128xf32, #tpu.memory_space<vmem>>, vector<1x128xf32>
    %61 = vector.broadcast %60 : vector<1x128xf32> to vector<8x128xf32>
    %62 = arith.addf %59, %61 : vector<8x128xf32>
    %cst_38 = arith.constant 0.000000e+00 : f32
    %63 = vector.broadcast %cst_38 : f32 to vector<8x128xf32>
    %64 = arith.cmpf ogt, %62, %63 : vector<8x128xf32>
    %65 = math.exp %62 : vector<8x128xf32>
    %cst_39 = arith.constant 1.000000e+00 : f32
    %66 = vector.broadcast %cst_39 : f32 to vector<8x128xf32>
    %67 = arith.subf %65, %66 : vector<8x128xf32>
    %68 = arith.select %64, %62, %67 : vector<8x128xi1>, vector<8x128xf32>
    %69 = arith.truncf %68 : vector<8x128xf32> to vector<8x128xbf16>
    %c0_40 = arith.constant 0 : index
    %c0_41 = arith.constant 0 : index
    %70 = vector.load %arg14[%c0_40, %c0_41] : memref<128x64xbf16, #tpu.memory_space<vmem>>, vector<128x64xbf16>
    %cst_42 = arith.constant dense<0.000000e+00> : vector<8x64xf32>
    %71 = tpu.matmul %69, %70, %cst_42 {dimension_numbers = #tpu.dot_dimension_numbers<[1], [0], [0], [1], [0, 0, 1, 1], [], []>} : vector<8x128xbf16>, vector<128x64xbf16>, vector<8x64xf32> -> vector<8x64xf32>
    %c0_43 = arith.constant 0 : index
    %c0_44 = arith.constant 0 : index
    %72 = vector.load %arg15[%c0_43, %c0_44] : memref<1x64xf32, #tpu.memory_space<vmem>>, vector<1x64xf32>
    %73 = vector.broadcast %72 : vector<1x64xf32> to vector<8x64xf32>
    %74 = arith.addf %71, %73 : vector<8x64xf32>
    %cst_45 = arith.constant 0.000000e+00 : f32
    %75 = vector.broadcast %cst_45 : f32 to vector<8x64xf32>
    %76 = arith.cmpf ogt, %74, %75 : vector<8x64xf32>
    %77 = math.exp %74 : vector<8x64xf32>
    %cst_46 = arith.constant 1.000000e+00 : f32
    %78 = vector.broadcast %cst_46 : f32 to vector<8x64xf32>
    %79 = arith.subf %77, %78 : vector<8x64xf32>
    %80 = arith.select %76, %74, %79 : vector<8x64xi1>, vector<8x64xf32>
    %81 = arith.truncf %80 : vector<8x64xf32> to vector<8x64xbf16>
    %c0_47 = arith.constant 0 : index
    %c0_48 = arith.constant 0 : index
    %82 = vector.load %arg16[%c0_47, %c0_48] : memref<64x32xbf16, #tpu.memory_space<vmem>>, vector<64x32xbf16>
    %cst_49 = arith.constant dense<0.000000e+00> : vector<8x32xf32>
    %83 = tpu.matmul %81, %82, %cst_49 {dimension_numbers = #tpu.dot_dimension_numbers<[1], [0], [0], [1], [0, 0, 1, 1], [], []>} : vector<8x64xbf16>, vector<64x32xbf16>, vector<8x32xf32> -> vector<8x32xf32>
    %c0_50 = arith.constant 0 : index
    %c0_51 = arith.constant 0 : index
    %84 = vector.load %arg17[%c0_50, %c0_51] : memref<1x32xf32, #tpu.memory_space<vmem>>, vector<1x32xf32>
    %85 = vector.broadcast %84 : vector<1x32xf32> to vector<8x32xf32>
    %86 = arith.addf %83, %85 : vector<8x32xf32>
    %cst_52 = arith.constant 0.000000e+00 : f32
    %87 = vector.broadcast %cst_52 : f32 to vector<8x32xf32>
    %88 = arith.cmpf ogt, %86, %87 : vector<8x32xf32>
    %89 = math.exp %86 : vector<8x32xf32>
    %cst_53 = arith.constant 1.000000e+00 : f32
    %90 = vector.broadcast %cst_53 : f32 to vector<8x32xf32>
    %91 = arith.subf %89, %90 : vector<8x32xf32>
    %92 = arith.select %88, %86, %91 : vector<8x32xi1>, vector<8x32xf32>
    %93 = arith.truncf %92 : vector<8x32xf32> to vector<8x32xbf16>
    %c0_54 = arith.constant 0 : index
    %c0_55 = arith.constant 0 : index
    %94 = vector.load %arg18[%c0_54, %c0_55] : memref<32x128xbf16, #tpu.memory_space<vmem>>, vector<32x128xbf16>
    %cst_56 = arith.constant dense<0.000000e+00> : vector<8x128xf32>
    %95 = tpu.matmul %93, %94, %cst_56 {dimension_numbers = #tpu.dot_dimension_numbers<[1], [0], [0], [1], [0, 0, 1, 1], [], []>} : vector<8x32xbf16>, vector<32x128xbf16>, vector<8x128xf32> -> vector<8x128xf32>
    %c0_57 = arith.constant 0 : index
    %c0_58 = arith.constant 0 : index
    %96 = vector.load %arg19[%c0_57, %c0_58] : memref<1x128xf32, #tpu.memory_space<vmem>>, vector<1x128xf32>
    %97 = vector.broadcast %96 : vector<1x128xf32> to vector<8x128xf32>
    %98 = arith.addf %95, %97 : vector<8x128xf32>
    %c0_59 = arith.constant 0 : index
    %c0_60 = arith.constant 0 : index
    %99 = vector.load %arg39[%c0_59, %c0_60] : memref<8x128xf32, #tpu.memory_space<vmem>>, vector<8x128xf32>
    tpu.vector_store %arg39[%c0_59, %c0_60], %98 {strides = array<i32>} : memref<8x128xf32, #tpu.memory_space<vmem>>, vector<8x128xf32>,
    %c0_61 = arith.constant 0 : index
    %c0_62 = arith.constant 0 : index
    %100 = vector.load %arg20[%c0_61, %c0_62] : memref<128x128xbf16, #tpu.memory_space<vmem>>, vector<128x128xbf16>
    %cst_63 = arith.constant dense<0.000000e+00> : vector<8x128xf32>
    %101 = tpu.matmul %57, %100, %cst_63 {dimension_numbers = #tpu.dot_dimension_numbers<[1], [0], [0], [1], [0, 0, 1, 1], [], []>} : vector<8x128xbf16>, vector<128x128xbf16>, vector<8x128xf32> -> vector<8x128xf32>
    %102 = arith.truncf %1 : vector<8x32xf32> to vector<8x32xbf16>
    %c0_64 = arith.constant 0 : index
    %c0_65 = arith.constant 0 : index
    %103 = vector.load %arg21[%c0_64, %c0_65] : memref<32x128xbf16, #tpu.memory_space<vmem>>, vector<32x128xbf16>
    %cst_66 = arith.constant dense<0.000000e+00> : vector<8x128xf32>
    %104 = tpu.matmul %102, %103, %cst_66 {dimension_numbers = #tpu.dot_dimension_numbers<[1], [0], [0], [1], [0, 0, 1, 1], [], []>} : vector<8x32xbf16>, vector<32x128xbf16>, vector<8x128xf32> -> vector<8x128xf32>
    %105 = arith.addf %101, %104 : vector<8x128xf32>
    %c0_67 = arith.constant 0 : index
    %c0_68 = arith.constant 0 : index
    %106 = vector.load %arg22[%c0_67, %c0_68] : memref<1x128xf32, #tpu.memory_space<vmem>>, vector<1x128xf32>
    %107 = vector.broadcast %106 : vector<1x128xf32> to vector<8x128xf32>
    %108 = arith.addf %105, %107 : vector<8x128xf32>
    %cst_69 = arith.constant 0.000000e+00 : f32
    %109 = vector.broadcast %cst_69 : f32 to vector<8x128xf32>
    %110 = arith.cmpf ogt, %108, %109 : vector<8x128xf32>
    %111 = math.exp %108 : vector<8x128xf32>
    %cst_70 = arith.constant 1.000000e+00 : f32
    %112 = vector.broadcast %cst_70 : f32 to vector<8x128xf32>
    %113 = arith.subf %111, %112 : vector<8x128xf32>
    %114 = arith.select %110, %108, %113 : vector<8x128xi1>, vector<8x128xf32>
    %115 = arith.truncf %114 : vector<8x128xf32> to vector<8x128xbf16>
    %c0_71 = arith.constant 0 : index
    %c0_72 = arith.constant 0 : index
    %116 = vector.load %arg23[%c0_71, %c0_72] : memref<128x64xbf16, #tpu.memory_space<vmem>>, vector<128x64xbf16>
    %cst_73 = arith.constant dense<0.000000e+00> : vector<8x64xf32>
    %117 = tpu.matmul %115, %116, %cst_73 {dimension_numbers = #tpu.dot_dimension_numbers<[1], [0], [0], [1], [0, 0, 1, 1], [], []>} : vector<8x128xbf16>, vector<128x64xbf16>, vector<8x64xf32> -> vector<8x64xf32>
    %c0_74 = arith.constant 0 : index
    %c0_75 = arith.constant 0 : index
    %118 = vector.load %arg24[%c0_74, %c0_75] : memref<1x64xf32, #tpu.memory_space<vmem>>, vector<1x64xf32>
    %119 = vector.broadcast %118 : vector<1x64xf32> to vector<8x64xf32>
    %120 = arith.addf %117, %119 : vector<8x64xf32>
    %cst_76 = arith.constant 0.000000e+00 : f32
    %121 = vector.broadcast %cst_76 : f32 to vector<8x64xf32>
    %122 = arith.cmpf ogt, %120, %121 : vector<8x64xf32>
    %123 = math.exp %120 : vector<8x64xf32>
    %cst_77 = arith.constant 1.000000e+00 : f32
    %124 = vector.broadcast %cst_77 : f32 to vector<8x64xf32>
    %125 = arith.subf %123, %124 : vector<8x64xf32>
    %126 = arith.select %122, %120, %125 : vector<8x64xi1>, vector<8x64xf32>
    %127 = arith.truncf %126 : vector<8x64xf32> to vector<8x64xbf16>
    %c0_78 = arith.constant 0 : index
    %c0_79 = arith.constant 0 : index
    %128 = vector.load %arg25[%c0_78, %c0_79] : memref<64x32xbf16, #tpu.memory_space<vmem>>, vector<64x32xbf16>
    %cst_80 = arith.constant dense<0.000000e+00> : vector<8x32xf32>
    %129 = tpu.matmul %127, %128, %cst_80 {dimension_numbers = #tpu.dot_dimension_numbers<[1], [0], [0], [1], [0, 0, 1, 1], [], []>} : vector<8x64xbf16>, vector<64x32xbf16>, vector<8x32xf32> -> vector<8x32xf32>
    %c0_81 = arith.constant 0 : index
    %c0_82 = arith.constant 0 : index
    %130 = vector.load %arg26[%c0_81, %c0_82] : memref<1x32xf32, #tpu.memory_space<vmem>>, vector<1x32xf32>
    %131 = vector.broadcast %130 : vector<1x32xf32> to vector<8x32xf32>
    %132 = arith.addf %129, %131 : vector<8x32xf32>
    %cst_83 = arith.constant 0.000000e+00 : f32
    %133 = vector.broadcast %cst_83 : f32 to vector<8x32xf32>
    %134 = arith.cmpf ogt, %132, %133 : vector<8x32xf32>
    %135 = math.exp %132 : vector<8x32xf32>
    %cst_84 = arith.constant 1.000000e+00 : f32
    %136 = vector.broadcast %cst_84 : f32 to vector<8x32xf32>
    %137 = arith.subf %135, %136 : vector<8x32xf32>
    %138 = arith.select %134, %132, %137 : vector<8x32xi1>, vector<8x32xf32>
    %139 = arith.truncf %138 : vector<8x32xf32> to vector<8x32xbf16>
    %c0_85 = arith.constant 0 : index
    %c0_86 = arith.constant 0 : index
    %140 = vector.load %arg27[%c0_85, %c0_86] : memref<32x128xbf16, #tpu.memory_space<vmem>>, vector<32x128xbf16>
    %cst_87 = arith.constant dense<0.000000e+00> : vector<8x128xf32>
    %141 = tpu.matmul %139, %140, %cst_87 {dimension_numbers = #tpu.dot_dimension_numbers<[1], [0], [0], [1], [0, 0, 1, 1], [], []>} : vector<8x32xbf16>, vector<32x128xbf16>, vector<8x128xf32> -> vector<8x128xf32>
    %c0_88 = arith.constant 0 : index
    %c0_89 = arith.constant 0 : index
    %142 = vector.load %arg28[%c0_88, %c0_89] : memref<1x128xf32, #tpu.memory_space<vmem>>, vector<1x128xf32>
    %143 = vector.broadcast %142 : vector<1x128xf32> to vector<8x128xf32>
    %144 = arith.addf %141, %143 : vector<8x128xf32>
    %c0_90 = arith.constant 0 : index
    %c0_91 = arith.constant 0 : index
    %145 = vector.load %arg37[%c0_90, %c0_91] : memref<8x128xf32, #tpu.memory_space<vmem>>, vector<8x128xf32>
    tpu.vector_store %arg37[%c0_90, %c0_91], %144 {strides = array<i32>} : memref<8x128xf32, #tpu.memory_space<vmem>>, vector<8x128xf32>,
    %c0_92 = arith.constant 0 : index
    %c0_93 = arith.constant 0 : index
    %146 = vector.load %arg3[%c0_92, %c0_93] : memref<8x48xf32, #tpu.memory_space<vmem>>, vector<8x48xf32>
    %147 = arith.truncf %146 : vector<8x48xf32> to vector<8x48xbf16>
    %c0_94 = arith.constant 0 : index
    %c0_95 = arith.constant 0 : index
    %148 = vector.load %arg29[%c0_94, %c0_95] : memref<48x128xbf16, #tpu.memory_space<vmem>>, vector<48x128xbf16>
    %cst_96 = arith.constant dense<0.000000e+00> : vector<8x128xf32>
    %149 = tpu.matmul %147, %148, %cst_96 {dimension_numbers = #tpu.dot_dimension_numbers<[1], [0], [0], [1], [0, 0, 1, 1], [], []>} : vector<8x48xbf16>, vector<48x128xbf16>, vector<8x128xf32> -> vector<8x128xf32>
    %c0_97 = arith.constant 0 : index
    %c0_98 = arith.constant 0 : index
    %150 = vector.load %arg30[%c0_97, %c0_98] : memref<1x128xf32, #tpu.memory_space<vmem>>, vector<1x128xf32>
    %151 = vector.broadcast %150 : vector<1x128xf32> to vector<8x128xf32>
    %152 = arith.addf %149, %151 : vector<8x128xf32>
    %cst_99 = arith.constant 0.000000e+00 : f32
    %153 = vector.broadcast %cst_99 : f32 to vector<8x128xf32>
    %154 = arith.cmpf ogt, %152, %153 : vector<8x128xf32>
    %155 = math.exp %152 : vector<8x128xf32>
    %cst_100 = arith.constant 1.000000e+00 : f32
    %156 = vector.broadcast %cst_100 : f32 to vector<8x128xf32>
    %157 = arith.subf %155, %156 : vector<8x128xf32>
    %158 = arith.select %154, %152, %157 : vector<8x128xi1>, vector<8x128xf32>
    %159 = arith.truncf %158 : vector<8x128xf32> to vector<8x128xbf16>
    %c0_101 = arith.constant 0 : index
    %c0_102 = arith.constant 0 : index
    %160 = vector.load %arg31[%c0_101, %c0_102] : memref<128x64xbf16, #tpu.memory_space<vmem>>, vector<128x64xbf16>
    %cst_103 = arith.constant dense<0.000000e+00> : vector<8x64xf32>
    %161 = tpu.matmul %159, %160, %cst_103 {dimension_numbers = #tpu.dot_dimension_numbers<[1], [0], [0], [1], [0, 0, 1, 1], [], []>} : vector<8x128xbf16>, vector<128x64xbf16>, vector<8x64xf32> -> vector<8x64xf32>
    %c0_104 = arith.constant 0 : index
    %c0_105 = arith.constant 0 : index
    %162 = vector.load %arg32[%c0_104, %c0_105] : memref<1x64xf32, #tpu.memory_space<vmem>>, vector<1x64xf32>
    %163 = vector.broadcast %162 : vector<1x64xf32> to vector<8x64xf32>
    %164 = arith.addf %161, %163 : vector<8x64xf32>
    %cst_106 = arith.constant 0.000000e+00 : f32
    %165 = vector.broadcast %cst_106 : f32 to vector<8x64xf32>
    %166 = arith.cmpf ogt, %164, %165 : vector<8x64xf32>
    %167 = math.exp %164 : vector<8x64xf32>
    %cst_107 = arith.constant 1.000000e+00 : f32
    %168 = vector.broadcast %cst_107 : f32 to vector<8x64xf32>
    %169 = arith.subf %167, %168 : vector<8x64xf32>
    %170 = arith.select %166, %164, %169 : vector<8x64xi1>, vector<8x64xf32>
    %171 = arith.truncf %170 : vector<8x64xf32> to vector<8x64xbf16>
    %c0_108 = arith.constant 0 : index
    %c0_109 = arith.constant 0 : index
    %172 = vector.load %arg33[%c0_108, %c0_109] : memref<64x32xbf16, #tpu.memory_space<vmem>>, vector<64x32xbf16>
    %cst_110 = arith.constant dense<0.000000e+00> : vector<8x32xf32>
    %173 = tpu.matmul %171, %172, %cst_110 {dimension_numbers = #tpu.dot_dimension_numbers<[1], [0], [0], [1], [0, 0, 1, 1], [], []>} : vector<8x64xbf16>, vector<64x32xbf16>, vector<8x32xf32> -> vector<8x32xf32>
    %c0_111 = arith.constant 0 : index
    %c0_112 = arith.constant 0 : index
    %174 = vector.load %arg34[%c0_111, %c0_112] : memref<1x32xf32, #tpu.memory_space<vmem>>, vector<1x32xf32>
    %175 = vector.broadcast %174 : vector<1x32xf32> to vector<8x32xf32>
    %176 = arith.addf %173, %175 : vector<8x32xf32>
    %cst_113 = arith.constant 0.000000e+00 : f32
    %177 = vector.broadcast %cst_113 : f32 to vector<8x32xf32>
    %178 = arith.cmpf ogt, %176, %177 : vector<8x32xf32>
    %179 = math.exp %176 : vector<8x32xf32>
    %cst_114 = arith.constant 1.000000e+00 : f32
    %180 = vector.broadcast %cst_114 : f32 to vector<8x32xf32>
    %181 = arith.subf %179, %180 : vector<8x32xf32>
    %182 = arith.select %178, %176, %181 : vector<8x32xi1>, vector<8x32xf32>
    %183 = arith.truncf %182 : vector<8x32xf32> to vector<8x32xbf16>
    %c0_115 = arith.constant 0 : index
    %c0_116 = arith.constant 0 : index
    %184 = vector.load %arg35[%c0_115, %c0_116] : memref<32x128xbf16, #tpu.memory_space<vmem>>, vector<32x128xbf16>
    %cst_117 = arith.constant dense<0.000000e+00> : vector<8x128xf32>
    %185 = tpu.matmul %183, %184, %cst_117 {dimension_numbers = #tpu.dot_dimension_numbers<[1], [0], [0], [1], [0, 0, 1, 1], [], []>} : vector<8x32xbf16>, vector<32x128xbf16>, vector<8x128xf32> -> vector<8x128xf32>
    %c0_118 = arith.constant 0 : index
    %c0_119 = arith.constant 0 : index
    %186 = vector.load %arg36[%c0_118, %c0_119] : memref<1x128xf32, #tpu.memory_space<vmem>>, vector<1x128xf32>
    %187 = vector.broadcast %186 : vector<1x128xf32> to vector<8x128xf32>
    %188 = arith.addf %185, %187 : vector<8x128xf32>
    %c0_120 = arith.constant 0 : index
    %c0_121 = arith.constant 0 : index
    %189 = vector.load %arg40[%c0_120, %c0_121] : memref<8x128xf32, #tpu.memory_space<vmem>>, vector<8x128xf32>
    tpu.vector_store %arg40[%c0_120, %c0_121], %188 {strides = array<i32>} : memref<8x128xf32, #tpu.memory_space<vmem>>, vector<8x128xf32>,
    return
  }
  func.func @transform_0(%arg0: i32) -> (i32, i32) {
    %c0_i32 = arith.constant 0 : i32
    %c0_i32_0 = arith.constant 0 : i32
    return %arg0, %c0_i32 : i32, i32
  }
  func.func @transform_1(%arg0: i32) -> (i32, i32) {
    %c0_i32 = arith.constant 0 : i32
    %c0_i32_0 = arith.constant 0 : i32
    return %arg0, %c0_i32 : i32, i32
  }
  func.func @transform_2(%arg0: i32) -> (i32, i32) {
    %c0_i32 = arith.constant 0 : i32
    %c0_i32_0 = arith.constant 0 : i32
    return %arg0, %c0_i32 : i32, i32
  }
  func.func @transform_3(%arg0: i32) -> (i32, i32) {
    %c0_i32 = arith.constant 0 : i32
    %c0_i32_0 = arith.constant 0 : i32
    %c0_i32_1 = arith.constant 0 : i32
    return %c0_i32, %c0_i32_0 : i32, i32
  }
  func.func @transform_4(%arg0: i32) -> (i32, i32) {
    %c0_i32 = arith.constant 0 : i32
    %c0_i32_0 = arith.constant 0 : i32
    %c0_i32_1 = arith.constant 0 : i32
    return %c0_i32, %c0_i32_0 : i32, i32
  }
  func.func @transform_5(%arg0: i32) -> (i32, i32) {
    %c0_i32 = arith.constant 0 : i32
    %c0_i32_0 = arith.constant 0 : i32
    %c0_i32_1 = arith.constant 0 : i32
    return %c0_i32, %c0_i32_0 : i32, i32
  }
  func.func @transform_6(%arg0: i32) -> (i32, i32) {
    %c0_i32 = arith.constant 0 : i32
    %c0_i32_0 = arith.constant 0 : i32
    %c0_i32_1 = arith.constant 0 : i32
    return %c0_i32, %c0_i32_0 : i32, i32
  }
  func.func @transform_7(%arg0: i32) -> (i32, i32) {
    %c0_i32 = arith.constant 0 : i32
    %c0_i32_0 = arith.constant 0 : i32
    %c0_i32_1 = arith.constant 0 : i32
    return %c0_i32, %c0_i32_0 : i32, i32
  }
  func.func @transform_8(%arg0: i32) -> (i32, i32) {
    %c0_i32 = arith.constant 0 : i32
    %c0_i32_0 = arith.constant 0 : i32
    %c0_i32_1 = arith.constant 0 : i32
    return %c0_i32, %c0_i32_0 : i32, i32
  }
  func.func @transform_9(%arg0: i32) -> (i32, i32) {
    %c0_i32 = arith.constant 0 : i32
    %c0_i32_0 = arith.constant 0 : i32
    %c0_i32_1 = arith.constant 0 : i32
    return %c0_i32, %c0_i32_0 : i32, i32
  }
  func.func @transform_10(%arg0: i32) -> (i32, i32) {
    %c0_i32 = arith.constant 0 : i32
    %c0_i32_0 = arith.constant 0 : i32
    %c0_i32_1 = arith.constant 0 : i32
    return %c0_i32, %c0_i32_0 : i32, i32
  }
  func.func @transform_11(%arg0: i32) -> (i32, i32) {
    %c0_i32 = arith.constant 0 : i32
    %c0_i32_0 = arith.constant 0 : i32
    %c0_i32_1 = arith.constant 0 : i32
    return %c0_i32, %c0_i32_0 : i32, i32
  }
  func.func @transform_12(%arg0: i32) -> (i32, i32) {
    %c0_i32 = arith.constant 0 : i32
    %c0_i32_0 = arith.constant 0 : i32
    %c0_i32_1 = arith.constant 0 : i32
    return %c0_i32, %c0_i32_0 : i32, i32
  }
  func.func @transform_13(%arg0: i32) -> (i32, i32) {
    %c0_i32 = arith.constant 0 : i32
    %c0_i32_0 = arith.constant 0 : i32
    %c0_i32_1 = arith.constant 0 : i32
    return %c0_i32, %c0_i32_0 : i32, i32
  }
  func.func @transform_14(%arg0: i32) -> (i32, i32) {
    %c0_i32 = arith.constant 0 : i32
    %c0_i32_0 = arith.constant 0 : i32
    %c0_i32_1 = arith.constant 0 : i32
    return %c0_i32, %c0_i32_0 : i32, i32
  }
  func.func @transform_15(%arg0: i32) -> (i32, i32) {
    %c0_i32 = arith.constant 0 : i32
    %c0_i32_0 = arith.constant 0 : i32
    %c0_i32_1 = arith.constant 0 : i32
    return %c0_i32, %c0_i32_0 : i32, i32
  }
  func.func @transform_16(%arg0: i32) -> (i32, i32) {
    %c0_i32 = arith.constant 0 : i32
    %c0_i32_0 = arith.constant 0 : i32
    %c0_i32_1 = arith.constant 0 : i32
    return %c0_i32, %c0_i32_0 : i32, i32
  }
  func.func @transform_17(%arg0: i32) -> (i32, i32) {
    %c0_i32 = arith.constant 0 : i32
    %c0_i32_0 = arith.constant 0 : i32
    %c0_i32_1 = arith.constant 0 : i32
    return %c0_i32, %c0_i32_0 : i32, i32
  }
  func.func @transform_18(%arg0: i32) -> (i32, i32) {
    %c0_i32 = arith.constant 0 : i32
    %c0_i32_0 = arith.constant 0 : i32
    %c0_i32_1 = arith.constant 0 : i32
    return %c0_i32, %c0_i32_0 : i32, i32
  }
  func.func @transform_19(%arg0: i32) -> (i32, i32) {
    %c0_i32 = arith.constant 0 : i32
    %c0_i32_0 = arith.constant 0 : i32
    %c0_i32_1 = arith.constant 0 : i32
    return %c0_i32, %c0_i32_0 : i32, i32
  }
  func.func @transform_20(%arg0: i32) -> (i32, i32) {
    %c0_i32 = arith.constant 0 : i32
    %c0_i32_0 = arith.constant 0 : i32
    %c0_i32_1 = arith.constant 0 : i32
    return %c0_i32, %c0_i32_0 : i32, i32
  }
  func.func @transform_21(%arg0: i32) -> (i32, i32) {
    %c0_i32 = arith.constant 0 : i32
    %c0_i32_0 = arith.constant 0 : i32
    %c0_i32_1 = arith.constant 0 : i32
    return %c0_i32, %c0_i32_0 : i32, i32
  }
  func.func @transform_22(%arg0: i32) -> (i32, i32) {
    %c0_i32 = arith.constant 0 : i32
    %c0_i32_0 = arith.constant 0 : i32
    %c0_i32_1 = arith.constant 0 : i32
    return %c0_i32, %c0_i32_0 : i32, i32
  }
  func.func @transform_23(%arg0: i32) -> (i32, i32) {
    %c0_i32 = arith.constant 0 : i32
    %c0_i32_0 = arith.constant 0 : i32
    %c0_i32_1 = arith.constant 0 : i32
    return %c0_i32, %c0_i32_0 : i32, i32
  }
  func.func @transform_24(%arg0: i32) -> (i32, i32) {
    %c0_i32 = arith.constant 0 : i32
    %c0_i32_0 = arith.constant 0 : i32
    %c0_i32_1 = arith.constant 0 : i32
    return %c0_i32, %c0_i32_0 : i32, i32
  }
  func.func @transform_25(%arg0: i32) -> (i32, i32) {
    %c0_i32 = arith.constant 0 : i32
    %c0_i32_0 = arith.constant 0 : i32
    %c0_i32_1 = arith.constant 0 : i32
    return %c0_i32, %c0_i32_0 : i32, i32
  }
  func.func @transform_26(%arg0: i32) -> (i32, i32) {
    %c0_i32 = arith.constant 0 : i32
    %c0_i32_0 = arith.constant 0 : i32
    %c0_i32_1 = arith.constant 0 : i32
    return %c0_i32, %c0_i32_0 : i32, i32
  }
  func.func @transform_27(%arg0: i32) -> (i32, i32) {
    %c0_i32 = arith.constant 0 : i32
    %c0_i32_0 = arith.constant 0 : i32
    %c0_i32_1 = arith.constant 0 : i32
    return %c0_i32, %c0_i32_0 : i32, i32
  }
  func.func @transform_28(%arg0: i32) -> (i32, i32) {
    %c0_i32 = arith.constant 0 : i32
    %c0_i32_0 = arith.constant 0 : i32
    %c0_i32_1 = arith.constant 0 : i32
    return %c0_i32, %c0_i32_0 : i32, i32
  }
  func.func @transform_29(%arg0: i32) -> (i32, i32) {
    %c0_i32 = arith.constant 0 : i32
    %c0_i32_0 = arith.constant 0 : i32
    %c0_i32_1 = arith.constant 0 : i32
    return %c0_i32, %c0_i32_0 : i32, i32
  }
  func.func @transform_30(%arg0: i32) -> (i32, i32) {
    %c0_i32 = arith.constant 0 : i32
    %c0_i32_0 = arith.constant 0 : i32
    %c0_i32_1 = arith.constant 0 : i32
    return %c0_i32, %c0_i32_0 : i32, i32
  }
  func.func @transform_31(%arg0: i32) -> (i32, i32) {
    %c0_i32 = arith.constant 0 : i32
    %c0_i32_0 = arith.constant 0 : i32
    %c0_i32_1 = arith.constant 0 : i32
    return %c0_i32, %c0_i32_0 : i32, i32
  }
  func.func @transform_32(%arg0: i32) -> (i32, i32) {
    %c0_i32 = arith.constant 0 : i32
    %c0_i32_0 = arith.constant 0 : i32
    %c0_i32_1 = arith.constant 0 : i32
    return %c0_i32, %c0_i32_0 : i32, i32
  }
  func.func @transform_33(%arg0: i32) -> (i32, i32) {
    %c0_i32 = arith.constant 0 : i32
    %c0_i32_0 = arith.constant 0 : i32
    %c0_i32_1 = arith.constant 0 : i32
    return %c0_i32, %c0_i32_0 : i32, i32
  }
  func.func @transform_34(%arg0: i32) -> (i32, i32) {
    %c0_i32 = arith.constant 0 : i32
    %c0_i32_0 = arith.constant 0 : i32
    %c0_i32_1 = arith.constant 0 : i32
    return %c0_i32, %c0_i32_0 : i32, i32
  }
  func.func @transform_35(%arg0: i32) -> (i32, i32) {
    %c0_i32 = arith.constant 0 : i32
    %c0_i32_0 = arith.constant 0 : i32
    %c0_i32_1 = arith.constant 0 : i32
    return %c0_i32, %c0_i32_0 : i32, i32
  }
  func.func @transform_36(%arg0: i32) -> (i32, i32) {
    %c0_i32 = arith.constant 0 : i32
    %c0_i32_0 = arith.constant 0 : i32
    return %arg0, %c0_i32 : i32, i32
  }
  func.func @transform_37(%arg0: i32) -> (i32, i32) {
    %c0_i32 = arith.constant 0 : i32
    %c0_i32_0 = arith.constant 0 : i32
    return %arg0, %c0_i32 : i32, i32
  }
  func.func @transform_38(%arg0: i32) -> (i32, i32) {
    %c0_i32 = arith.constant 0 : i32
    %c0_i32_0 = arith.constant 0 : i32
    return %arg0, %c0_i32 : i32, i32
  }
  func.func @transform_39(%arg0: i32) -> (i32, i32) {
    %c0_i32 = arith.constant 0 : i32
    %c0_i32_0 = arith.constant 0 : i32
    return %arg0, %c0_i32 : i32, i32
  }
}

</mosaic_0001>

<bundles_post_ra>
// kernel: tpu_custom_call.1
= control target key start
LH: loop header
LB: loop body
LE: loop exit
PB: predicated region body
PF: predicated region fallthrough
CT: control target
= control target key end

     0   :  { %s6338_s6 = smov 1   ;;  %s6339_s10 = smov 2   ;;  %s7317_s0 = inlined_call_operand.smem [shape: u32[40], index: -1, kind: input, shape index: {}] }
   0x1   :  { %s6420_s5 = sld [smem:[%s7317_s0]]   ;;  %s6340_s14 = smov 3  }
   0x2   :  { %s6425_s9 = sld [smem:[%s7317_s0 + %s6338_s6]]   ;;  %s6341_s18 = smov 4  }
   0x3   :  { %s6430_s13 = sld [smem:[%s7317_s0 + %s6339_s10]]   ;;  %s6342_s22 = smov 5  }
   0x4   :  { %s6435_s17 = sld [smem:[%s7317_s0 + %s6340_s14]]   ;;  %s6343_s26 = smov 6  }
   0x5   :  { %s6440_s21 = sld [smem:[%s7317_s0 + %s6341_s18]]   ;;  %s6344_s30 = smov 7  }
   0x6   :  { %s6445_s25 = sld [smem:[%s7317_s0 + %s6342_s22]]   ;;  %s6345_s4 = smov 8  }
   0x7   :  { %7354 = sst [smem:[#allocation58_spill]] %s6420_s5  ;;  %s6346_s10 = smov 9  }
   0x8   :  { %7355 = sst [smem:[#allocation59_spill]] %s6425_s9  ;;  %s6347_s15 = smov 10  }
   0x9   :  { %s6450_s29 = sld [smem:[%s7317_s0 + %s6343_s26]]   ;;  %s6348_s20 = smov 11  }
   0xa   :  { %7356 = sst [smem:[#allocation60_spill]] %s6435_s17  ;;  %s6349_s26 = smov 12  }
   0xb   :  { %7357 = sst [smem:[#allocation61_spill]] %s6440_s21  ;;  %s6350_s1 = smov 13  }
   0xc   :  { %7358 = sst [smem:[#allocation62_spill]] %s6445_s25  ;;  %s6351_s7 = smov 14  }
   0xd   :  { %s6455_s3 = sld [smem:[%s7317_s0 + %s6344_s30]]   ;;  %s6353_s22 = smov 16  }
   0xe   :  { %s6460_s8 = sld [smem:[%s7317_s0 + %s6345_s4]]   ;;  %s6354_s28 = smov 17  }
   0xf   :  { %7359 = sst [smem:[#allocation63_spill]] %s6450_s29 }
  0x10   :  { %s6465_s14 = sld [smem:[%s7317_s0 + %s6346_s10]]  }
  0x11   :  { %s6470_s19 = sld [smem:[%s7317_s0 + %s6347_s15]]   ;;  %s6352_s15 = smov 15  }
  0x12   :  { %s6475_s24 = sld [smem:[%s7317_s0 + %s6348_s20]]  }
  0x13   :  { %7360 = sst [smem:[#allocation64_spill]] %s6455_s3 }
  0x14   :  { %7361 = sst [smem:[#allocation65_spill]] %s6460_s8 }
  0x15   :  { %s6480_s30 = sld [smem:[%s7317_s0 + %s6349_s26]]  }
  0x16   :  { %7362 = sst [smem:[#allocation66_spill]] %s6465_s14 }
  0x17   :  { %7363 = sst [smem:[#allocation67_spill]] %s6470_s19 }
  0x18   :  { %7364 = sst [smem:[#allocation68_spill]] %s6475_s24 }
  0x19   :  { %s6485_s6 = sld [smem:[%s7317_s0 + %s6350_s1]]  }
  0x1a   :  { %s6490_s12 = sld [smem:[%s7317_s0 + %s6351_s7]]   ;;  %s6355_s7 = smov 18  }
  0x1b   :  { %7365 = sst [smem:[#allocation69_spill]] %s6480_s30 }
  0x1c   :  { %s6495_s20 = sld [smem:[%s7317_s0 + %s6352_s15]]   ;;  %s6356_s15 = smov 19  }
  0x1d   :  { %s6500_s27 = sld [smem:[%s7317_s0 + %s6353_s22]]   ;;  %s6357_s22 = smov 20  }
  0x1e   :  { %s6505_s4 = sld [smem:[%s7317_s0 + %s6354_s28]]   ;;  %s6358_s28 = smov 21  }
  0x1f   :  { %7366 = sst [smem:[#allocation70_spill]] %s6485_s6 }
  0x20   :  { %7367 = sst [smem:[#allocation71_spill]] %s6490_s12 }
  0x21   :  { %s6510_s6 = sld [smem:[%s7317_s0 + %s6355_s7]]   ;;  %s6359_s7 = smov 22  }
  0x22   :  { %7368 = sst [smem:[#allocation72_spill]] %s6495_s20 }
  0x23   :  { %7369 = sst [smem:[#allocation73_spill]] %s6500_s27 }
  0x24   :  { %7370 = sst [smem:[#allocation74_spill]] %s6505_s4 }
  0x25   :  { %s6515_s20 = sld [smem:[%s7317_s0 + %s6356_s15]]   ;;  %s6360_s15 = smov 23  }
  0x26   :  { %s6520_s8 = sld [smem:[%s7317_s0 + %s6357_s22]]   ;;  %s6361_s22 = smov 24  }
  0x27   :  { %7371 = sst [smem:[#allocation75_spill]] %s6510_s6 }
  0x28   :  { %s6525_s3 = sld [smem:[%s7317_s0 + %s6358_s28]]   ;;  %s6362_s28 = smov 25  }
  0x29   :  { %s6530_s25 = sld [smem:[%s7317_s0 + %s6359_s7]]   ;;  %s6363_s7 = smov 26  }
  0x2a   :  { %s6540_s5 = sld [smem:[%s7317_s0 + %s6361_s22]]   ;;  %s6365_s22 = smov 28  }
  0x2b   :  { %7372 = sst [smem:[#allocation76_spill]] %s6515_s20 }
  0x2c   :  { %7373 = sst [smem:[#allocation77_spill]] %s6520_s8 }
  0x2d   :  { %s6535_s20 = sld [smem:[%s7317_s0 + %s6360_s15]]   ;;  %s6364_s15 = smov 27  }
  0x2e   :  { %7374 = sst [smem:[#allocation78_spill]] %s6525_s3 }
  0x2f   :  { %7375 = sst [smem:[#allocation79_spill]] %s6530_s25 }
  0x30   :  { %7377 = sst [smem:[#allocation81_spill]] %s6540_s5 }
  0x31   :  { %s6545_s8 = sld [smem:[%s7317_s0 + %s6362_s28]]   ;;  %s6366_s28 = smov 29  }
  0x32   :  { %s6550_s25 = sld [smem:[%s7317_s0 + %s6363_s7]]   ;;  %s6367_s7 = smov 30  }
  0x33   :  { %7376 = sst [smem:[#allocation80_spill]] %s6535_s20 }
  0x34   :  { %s6555_s20 = sld [smem:[%s7317_s0 + %s6364_s15]]   ;;  %s6368_s15 = smov 31  }
  0x35   :  { %s6560_s5 = sld [smem:[%s7317_s0 + %s6365_s22]]   ;;  %s6369_s22 = smov 32  }
  0x36   :  { %s6565_s4 = sld [smem:[%s7317_s0 + %s6366_s28]]   ;;  %s6370_s28 = smov 33  }
  0x37   :  { %7378 = sst [smem:[#allocation82_spill]] %s6545_s8 }
  0x38   :  { %7379 = sst [smem:[#allocation83_spill]] %s6550_s25 }
  0x39   :  { %s6570_s25 = sld [smem:[%s7317_s0 + %s6367_s7]]   ;;  %s6371_s7 = smov 34  }
  0x3a   :  { %7380 = sst [smem:[#allocation84_spill]] %s6555_s20 }
  0x3b   :  { %7381 = sst [smem:[#allocation85_spill]] %s6560_s5 }
  0x3c   :  { %7382 = sst [smem:[#allocation86_spill]] %s6565_s4 }
  0x3d   :  { %s6575_s12 = sld [smem:[%s7317_s0 + %s6368_s15]]   ;;  %s6372_s15 = smov 35  }
  0x3e   :  { %s6580_s5 = sld [smem:[%s7317_s0 + %s6369_s22]]   ;;  %s6373_s22 = smov 36  }
  0x3f   :  { %7383 = sst [smem:[#allocation87_spill]] %s6570_s25 }
  0x40   :  { %s6585_s4 = sld [smem:[%s7317_s0 + %s6370_s28]]   ;;  %s6374_s28 = smov 37  }
  0x41   :  { %s6590_s25 = sld [smem:[%s7317_s0 + %s6371_s7]]   ;;  %s6375_s7 = smov 38  }
  0x43   :  { %7384 = sst [smem:[#allocation88_spill]] %s6575_s12 }
  0x44   :  { %7385 = sst [smem:[#allocation89_spill]] %s6580_s5 }
  0x45   :  { %s6595_s12 = sld [smem:[%s7317_s0 + %s6372_s15]]   ;;  %s6376_s15 = smov 39  }
  0x46   :  { %7386 = sst [smem:[#allocation90_spill]] %s6585_s4 }
  0x47   :  { %7387 = sst [smem:[#allocation91_spill]] %s6590_s25 }
  0x48   :  { %s6600_s5 = sld [smem:[%s7317_s0 + %s6373_s22]]  }
  0x49   :  { %s6605_s4 = sld [smem:[%s7317_s0 + %s6374_s28]]  }
  0x4a   :  { %s6610_s25 = sld [smem:[%s7317_s0 + %s6375_s7]]  }
  0x4b   :  { %7388 = sst [smem:[#allocation92_spill]] %s6595_s12 }
  0x4c   :  { %s6615_s12 = sld [smem:[%s7317_s0 + %s6376_s15]]  }
  0x4f   :  { %7389 = sst [smem:[#allocation93_spill]] %s6605_s4 }
  0x50   :  { %7390 = sst [smem:[#allocation94_spill]] %s6610_s25 }
  0x52   :  { %7391 = sst [smem:[#allocation95_spill]] %s6615_s12 }
  0x53   :  { %85 = vsyncpa [#allocation3], 0 }
  0x54   :  { %87 = vsyncpa [#allocation3 + $0x1], 0 }
  0x55   :  { %88 = vsyncpa [#allocation6], 0 }
  0x56   :  { %90 = vsyncpa [#allocation6 + $0x1], 0 }
  0x57   :  { %91 = vsyncpa [#allocation9], 0 }
  0x58   :  { %92 = vsyncpa [#allocation12], 0 }
  0x59   :  { %93 = vsyncpa [#allocation15], 0 }
  0x5a   :  { %94 = vsyncpa [#allocation18], 0 }
  0x5b   :  { %95 = vsyncpa [#allocation21], 0 }
  0x5c   :  { %96 = vsyncpa [#allocation24], 0 }
  0x5d   :  { %97 = vsyncpa [#allocation27], 0 }
  0x5e   :  { %98 = vsyncpa [#allocation30], 0 }
  0x5f   :  { %99 = vsyncpa [#allocation33], 0 }
  0x60   :  { %100 = vsyncpa [#allocation36], 0 }
  0x61   :  { %101 = vsyncpa [#allocation4], 0 }
  0x62   :  { %103 = vsyncpa [#allocation4 + $0x1], 0 }
  0x63   :  { %104 = vsyncpa [#allocation39], 0 }
  0x64   :  { %106 = vsyncpa [#allocation39 + $0x1], 0 }
  0x65   :  { %107 = vsyncpa [#allocation42], 0 }
  0x66   :  { %109 = vsyncpa [#allocation42 + $0x1], 0  ;;  %s6617_s0 = smov 0   ;;  %s6619_s22 = smov 0  }
  0x67   :  { %s6621_s23 = smov 0   ;;  %s6623_s26 = smov 0  }
  0x68 LB: > { %s7392_s4 = sld [smem:[#allocation93_spill]]  ;;  %s6377_s28 = smov [#allocation8]   ;;  %s6328_s22 = sphi %s6619_s22, %s7480_s22   ;;  %s6324_s0 = sphi %s6617_s0, %s7479_s0   ;;  %s6336_s26 = sphi %s6623_s26, %s7476_s26   ;;  %s6332_s23 = sphi %s6621_s23, %s7481_s23  }
  0x69   : > { %s7393_s9 = sld [smem:[#allocation59_spill]]  ;;  %s1007_s1 = sshll.u32 %s6377_s28, 4  ;;  %s1008_s1 = int_to_ptr.vmem [resolvable:$true] %s1007_s1 }
  0x6a   : > { %7394 = sst [smem:[#allocation96_spill]] %s6332_s23  ;;  %s6638_s2 = sadd.s32 4294967295, %s6336_s26  }
  0x6b   : > { %p4400_p0 = scmp.ge.s32.totalorder %s6336_s26, 1  ;;  %p7330_p1 = scmp.eq.s32.totalorder %s6638_s2, 0 }
  0x6c   : > { %p995_p2 = scmp.lt.s32.totalorder %s6336_s26, 3  ;;  %s6378_s10 = smov [#allocation11]  }
  0x6d   : > { %s1035_s11 = sshll.u32 %s6378_s10, 4  ;;  %s6379_s16 = smov [#allocation14]   ;;  %s1036_s11 = int_to_ptr.vmem [resolvable:$true] %s1035_s11 }
  0x6e   : > { %p6643_p3 = pnand %p4400_p0, %p995_p2  ;;  %s1065_s18 = sshll.u32 %s6379_s16, 4  ;;  %s6656_s18 = int_to_ptr.vmem [resolvable:$true] %s1065_s18 }
  0x6f   : > { %s5575_s12 = scalar_lea.vmem %s1008_s1, 5120  ;;  %p5583_p11 = scmp.lt.s32.totalorder %s1008_s1, %s1008_s1 }
  0x70   : > { %s7395_s7 = scalar_select %p6643_p3, 1, 0 }
  0x71   : > { %p5063_p5 = pneg %p6643_p3  ;;  %p5576_p8 = scmp.ne.s32.totalorder %s1008_s1, %s5575_s12 }
  0x72   : > { %p5584_p12 = scmp.lt.s32.totalorder %s5575_s12, %s5575_s12 }
  0x73   : > { %p6652_p6 = pnand %p5063_p5, %p7330_p1 }
  0x74   : > { %p5585_p13 = por %p5584_p12, %p5583_p11 }
  0x75   : > { %s7396_s15 = scalar_select %p6652_p6, 1, 0 }
  0x76   : > { %p6660_p7 = pneg %p6652_p6 }
  0x78   : > { %s7397_s28 = scalar_select %p6660_p7, 1, 0 }
  0x79   : > { %p5578_p9 = pnand %p5576_p8, %p6660_p7 }
  0x7b   : > { %p5579_p10 = pneg %p5578_p9 }
  0x7d   : > { %p5586_p0 = pnand %p5585_p13, %p5579_p10 }
  0x7f   : > { %5589 = shalt.err (!%p5586_p0)
}
  0x80   : > { %s6380_s10 = smov 256   ;;  %s7398_s17 = sld [smem:[#allocation60_spill]] }
  0x81   : > { %s6381_s16 = smov 16   ;;  %s5601_s25 = scalar_lea.vmem %s1036_s11, 32 }
  0x82   : > { %p5602_p2 = scmp.ne.s32.totalorder %s1036_s11, %s5601_s25  ;;  %p5609_p1 = scmp.lt.s32.totalorder %s1036_s11, %s1036_s11 }
  0x83   : > { %p5610_p8 = scmp.lt.s32.totalorder %s5601_s25, %s5601_s25 }
  0x84   : > { %p5604_p5 = pnand %p5602_p2, %p6660_p7 }
  0x85   : > { %p5611_p9 = por %p5610_p8, %p5609_p1 }
  0x86   : > { %5066 = dma.hbm_to_vmem [thread:$0]  (!%p6652_p6), %s7398_s17, 5120, %s1008_s1, [#allocation9], %s6380_s10, %s6380_s10, %s6381_s16  }
  0x87   : > { %p5605_p4 = pneg %p5604_p5 }
  0x89   : > { %p5612_p3 = pnand %p5611_p9, %p5605_p4 }
  0x8b   : > { %5615 = shalt.err (!%p5612_p3)
}
  0x8c   : > { %s7399_s29 = sld [smem:[#allocation63_spill]]  ;;  %s5627_s12 = scalar_lea.vmem %s6656_s18, 32 }
  0x8d   : > { %p5628_p10 = scmp.ne.s32.totalorder %s6656_s18, %s5627_s12  ;;  %p5635_p13 = scmp.lt.s32.totalorder %s6656_s18, %s6656_s18 }
  0x8e   : > { %p5636_p0 = scmp.lt.s32.totalorder %s5627_s12, %s5627_s12 }
  0x8f   : > { %p5630_p11 = pnand %p5628_p10, %p6660_p7 }
  0x90   : > { %p5637_p2 = por %p5636_p0, %p5635_p13 }
  0x91   : > { %p5631_p12 = pneg %p5630_p11 }
  0x92   : > { %5072 = dma.hbm_to_vmem [thread:$0]  (!%p6652_p6), %s7399_s29, 32, %s1036_s11, [#allocation12]  }
  0x93   : > { %p5638_p1 = pnand %p5637_p2, %p5631_p12 }
  0x95   : > { %5641 = shalt.err (!%p5638_p1)
}
  0x96   : > { %s7400_s19 = sld [smem:[#allocation67_spill]]  ;;  %s6382_s25 = smov [#allocation17]  }
  0x97   : > { %s1089_s1 = sshll.u32 %s6382_s25, 4  ;;  %s6383_s11 = smov [#allocation20]   ;;  %s1090_s1 = int_to_ptr.vmem [resolvable:$true] %s1089_s1 }
  0x98   : > { %s1117_s10 = sshll.u32 %s6383_s11, 4  ;;  %s5653_s16 = scalar_lea.vmem %s1090_s1, 16  ;;  %s1118_s10 = int_to_ptr.vmem [resolvable:$true] %s1117_s10 }
  0x99   : > { %p5654_p3 = scmp.ne.s32.totalorder %s1090_s1, %s5653_s16  ;;  %s5660_s12 = scalar_lea.vmem %s1090_s1, 32 }
  0x9a   : > { %p5661_p8 = scmp.lt.s32.totalorder %s1090_s1, %s1090_s1  ;;  %p5662_p9 = scmp.lt.s32.totalorder %s5660_s12, %s5653_s16 }
  0x9b   : > { %p5656_p4 = pnand %p5654_p3, %p6660_p7 }
  0x9c   : > { %5078 = dma.hbm_to_vmem [thread:$0]  (!%p6652_p6), %s7400_s19, 32, %s6656_s18, [#allocation15]  }
  0x9d   : > { %p5657_p5 = pneg %p5656_p4  ;;  %p5663_p10 = por %p5662_p9, %p5661_p8 }
  0x9f   : > { %p5664_p11 = pnand %p5663_p10, %p5657_p5 }
  0xa1   : > { %5667 = shalt.err (!%p5664_p11)
}
  0xa2   : > { %s7401_s30 = sld [smem:[#allocation69_spill]]  ;;  %s5679_s18 = scalar_lea.vmem %s1118_s10, 16 }
  0xa3   : > { %p5680_p12 = scmp.ne.s32.totalorder %s1118_s10, %s5679_s18  ;;  %s5686_s25 = scalar_lea.vmem %s1118_s10, 32 }
  0xa4   : > { %p5687_p2 = scmp.lt.s32.totalorder %s1118_s10, %s1118_s10  ;;  %p5688_p1 = scmp.lt.s32.totalorder %s5686_s25, %s5679_s18 }
  0xa5   : > { %p5682_p13 = pnand %p5680_p12, %p6660_p7 }
  0xa6   : > { %p5689_p3 = por %p5688_p1, %p5687_p2 }
  0xa7   : > { %p5683_p0 = pneg %p5682_p13 }
  0xa8   : > { %5084 = dma.hbm_to_vmem [thread:$0]  (!%p6652_p6), %s7401_s30, 16, %s1090_s1, [#allocation18]  }
  0xa9   : > { %p5690_p4 = pnand %p5689_p3, %p5683_p0 }
  0xab   : > { %5693 = shalt.err (!%p5690_p4)
}
  0xac   : > { %s7402_s27 = sld [smem:[#allocation73_spill]]  ;;  %s6384_s11 = smov [#allocation23]  }
  0xad   : > { %s1141_s16 = sshll.u32 %s6384_s11, 4  ;;  %s6385_s1 = smov [#allocation26]   ;;  %s1142_s16 = int_to_ptr.vmem [resolvable:$true] %s1141_s16 }
  0xae   : > { %s1168_s12 = sshll.u32 %s6385_s1, 4  ;;  %s5705_s17 = scalar_lea.vmem %s1142_s16, 16  ;;  %s1169_s12 = int_to_ptr.vmem [resolvable:$true] %s1168_s12 }
  0xaf   : > { %p5706_p5 = scmp.ne.s32.totalorder %s1142_s16, %s5705_s17  ;;  %s5712_s19 = scalar_lea.vmem %s1142_s16, 32 }
  0xb0   : > { %p5713_p10 = scmp.lt.s32.totalorder %s1142_s16, %s1142_s16  ;;  %p5714_p11 = scmp.lt.s32.totalorder %s5712_s19, %s5705_s17 }
  0xb1   : > { %p5708_p8 = pnand %p5706_p5, %p6660_p7 }
  0xb2   : > { %5090 = dma.hbm_to_vmem [thread:$0]  (!%p6652_p6), %s7402_s27, 16, %s1118_s10, [#allocation21]  }
  0xb3   : > { %p5709_p9 = pneg %p5708_p8  ;;  %p5715_p12 = por %p5714_p11, %p5713_p10 }
  0xb5   : > { %p5716_p13 = pnand %p5715_p12, %p5709_p9 }
  0xb7   : > { %5719 = shalt.err (!%p5716_p13)
}
  0xb8   : > { %s7403_s6 = sld [smem:[#allocation75_spill]]  ;;  %s5731_s10 = scalar_lea.vmem %s1169_s12, 16 }
  0xb9   : > { %p5732_p0 = scmp.ne.s32.totalorder %s1169_s12, %s5731_s10  ;;  %s5738_s18 = scalar_lea.vmem %s1169_s12, 32 }
  0xba   : > { %p5739_p3 = scmp.lt.s32.totalorder %s1169_s12, %s1169_s12  ;;  %p5740_p4 = scmp.lt.s32.totalorder %s5738_s18, %s5731_s10 }
  0xbb   : > { %p5734_p2 = pnand %p5732_p0, %p6660_p7 }
  0xbc   : > { %p5741_p5 = por %p5740_p4, %p5739_p3 }
  0xbd   : > { %p5735_p1 = pneg %p5734_p2 }
  0xbe   : > { %5096 = dma.hbm_to_vmem [thread:$0]  (!%p6652_p6), %s7403_s6, 16, %s1142_s16, [#allocation24]  }
  0xbf   : > { %p5742_p8 = pnand %p5741_p5, %p5735_p1 }
  0xc1   : > { %5745 = shalt.err (!%p5742_p8)
}
  0xc2   : > { %s7404_s3 = sld [smem:[#allocation78_spill]]  ;;  %s6386_s17 = smov [#allocation29]  }
  0xc3   : > { %s1196_s19 = sshll.u32 %s6386_s17, 4  ;;  %s6387_s25 = smov [#allocation32]   ;;  %s1197_s19 = int_to_ptr.vmem [resolvable:$true] %s1196_s19 }
  0xc4   : > { %s1220_s11 = sshll.u32 %s6387_s25, 4  ;;  %s5757_s16 = scalar_lea.vmem %s1197_s19, 16  ;;  %s1221_s11 = int_to_ptr.vmem [resolvable:$true] %s1220_s11 }
  0xc5   : > { %p5758_p9 = scmp.ne.s32.totalorder %s1197_s19, %s5757_s16  ;;  %s5764_s1 = scalar_lea.vmem %s1197_s19, 32 }
  0xc6   : > { %p5765_p12 = scmp.lt.s32.totalorder %s1197_s19, %s1197_s19  ;;  %p5766_p13 = scmp.lt.s32.totalorder %s5764_s1, %s5757_s16 }
  0xc7   : > { %p5760_p10 = pnand %p5758_p9, %p6660_p7 }
  0xc8   : > { %5102 = dma.hbm_to_vmem [thread:$0]  (!%p6652_p6), %s7404_s3, 16, %s1169_s12, [#allocation27]  }
  0xc9   : > { %p5761_p11 = pneg %p5760_p10  ;;  %p5767_p0 = por %p5766_p13, %p5765_p12 }
  0xcb   : > { %p5768_p2 = pnand %p5767_p0, %p5761_p11 }
  0xcd   : > { %5771 = shalt.err (!%p5768_p2)
}
  0xce   : > { %s7405_s8 = sld [smem:[#allocation82_spill]]  ;;  %s5783_s12 = scalar_lea.vmem %s1221_s11, 16 }
  0xcf   : > { %p5784_p1 = scmp.ne.s32.totalorder %s1221_s11, %s5783_s12  ;;  %s5790_s10 = scalar_lea.vmem %s1221_s11, 32 }
  0xd0   : > { %p5791_p5 = scmp.lt.s32.totalorder %s1221_s11, %s1221_s11  ;;  %p5792_p8 = scmp.lt.s32.totalorder %s5790_s10, %s5783_s12 }
  0xd1   : > { %p5786_p3 = pnand %p5784_p1, %p6660_p7 }
  0xd2   : > { %p5793_p9 = por %p5792_p8, %p5791_p5 }
  0xd3   : > { %p5787_p4 = pneg %p5786_p3 }
  0xd4   : > { %5108 = dma.hbm_to_vmem [thread:$0]  (!%p6652_p6), %s7405_s8, 16, %s1197_s19, [#allocation30]  }
  0xd5   : > { %p5794_p10 = pnand %p5793_p9, %p5787_p4 }
  0xd7   : > { %5797 = shalt.err (!%p5794_p10)
}
  0xd8   : > { %s7406_s20 = sld [smem:[#allocation84_spill]]  ;;  %s7332_s18 = sadd.s32 4294967294, %s6336_s26  }
  0xd9   : > { %s6716_s17 = sadd.s32 1, %s6336_s26   ;;  %s122_s19 = sadd.s32 1, %s6332_s23 }
  0xda   : > { %7407 = sst [smem:[#allocation97_spill]] %s6716_s17  ;;  %s119_s25 = ssub.s32 %s6336_s26, %s6716_s17 }
  0xdb   : > { %p129_p11 = scmp.ne.s32.totalorder %s6332_s23, %s6328_s22  ;;  %p120_p12 = scmp.eq.s32.totalorder %s119_s25, 0 }
  0xdc   : > { %p130_p13 = scmp.eq.s32.totalorder %s6336_s26, 0  ;;  %p135_p0 = scmp.ne.s32.totalorder %s6328_s22, %s6324_s0 }
  0xdd   : > { %p904_p2 = scmp.eq.s32.totalorder %s6638_s2, 1  ;;  %p7409_p3 = scmp.eq.s32.totalorder %s6638_s2, 0 }
  0xde   : > { %5114 = dma.hbm_to_vmem [thread:$0]  (!%p6652_p6), %s7406_s20, 16, %s1221_s11, [#allocation33]  }
  0xdf   : > { %s6728_s16 = scalar_select %p120_p12, %s6332_s23, %s122_s19  }
  0xe0   : > { %p131_p1 = por %p130_p13, %p129_p11  ;;  %p6732_p4 = por %p7409_p3, %p135_p0 }
  0xe1   : > { %7408 = sst [smem:[#allocation98_spill]] %s6728_s16  ;;  %p6736_p5 = por %p904_p2, %p129_p11 }
  0xe2   : > { %s7410_s11 = scalar_select %p6732_p4, 1, 0 }
  0xe3   : > { %s7411_s1 = scalar_select %p6736_p5, 1, 0 }
  0xe4   : > { %p910_p8 = scmp.eq.s32.totalorder %s7332_s18, 1  ;;  %p5163_p9 = scmp.lt.s32.totalorder %s6336_s26, 2 }
  0xe5   : > { %s6744_s12 = sand.u32 1, %s6332_s23   ;;  %s1294_s19 = sand.u32 1, %s6336_s26  }
  0xe6   : > { %p6746_p10 = por %p910_p8, %p135_p0  ;;  %p6751_p12 = pnand %p5163_p9, %p131_p1 }
  0xe7   : > { %s7336_s3 = sshll.u32 %s6744_s12, 3  ;;  %s7333_s6 = sshll.u32 %s6336_s26, 7 }
  0xe8   : > { %s7412_s10 = scalar_select %p6746_p10, 1, 0 }
  0xe9   : > { %s7413_s25 = scalar_select %p6751_p12, 1, 0 }
  0xea   : > { %s6760_s18 = scalar_lea.hbm %s7393_s9, %s7333_s6  ;;  %s1298_s8 = scalar_lea.vmem [#allocation5], %s7336_s3 }
  0xeb   : > { %s1305_s20 = sshll.u32 %s1298_s8, 4  ;;  %s6764_s27 = scalar_lea.sflag [#allocation6], %s1294_s19  ;;  %s1306_s20 = int_to_ptr.vmem [resolvable:$true] %s1305_s20 }
  0xec   : > { %s5798_s29 = scalar_lea.hbm %s6760_s18, 128  ;;  %p6770_p13 = pneg %p6751_p12 }
  0xed   : > { %p5799_p11 = scmp.ne.s32.totalorder %s6760_s18, %s5798_s29  ;;  %s5803_s6 = scalar_lea.hbm %s7393_s9, 256 }
  0xee   : > { %s7414_s30 = scalar_select %p6770_p13, 1, 0 }
  0xef   : > { %p5801_p0 = pnand %p6770_p13, %p5799_p11  ;;  %p5804_p1 = scmp.lt.s32.totalorder %s6760_s18, %s7393_s9 }
  0xf0   : > { %p5805_p3 = scmp.lt.s32.totalorder %s5803_s6, %s5798_s29 }
  0xf1   : > { %p5802_p2 = pneg %p5801_p0 }
  0xf2   : > { %p5806_p8 = por %p5805_p3, %p5804_p1 }
  0xf4   : > { %p5807_p9 = pnand %p5806_p8, %p5802_p2 }
  0xf6   : > { %5810 = shalt.err (!%p5807_p9)
}
  0xf7   : > { %s5811_s8 = scalar_lea.vmem %s1306_s20, 128  ;;  %s6388_s19 = smov [#allocation5]  }
  0xf8   : > { %p5812_p10 = scmp.ne.s32.totalorder %s1306_s20, %s5811_s8  ;;  %s5816_s3 = sshll.u32 %s6388_s19, 4  ;;  %s5817_s3 = int_to_ptr.vmem [resolvable:$false] %s5816_s3 }
  0xf9   : > { %s5818_s16 = scalar_lea.vmem %s5817_s3, 256  ;;  %p5819_p6 = scmp.lt.s32.totalorder %s1306_s20, %s5817_s3 }
  0xfa   : > { %p5814_p5 = pnand %p5812_p10, %p6770_p13  ;;  %p5820_p7 = scmp.lt.s32.totalorder %s5818_s16, %s5811_s8 }
  0xfc   : > { %p5815_p4 = pneg %p5814_p5  ;;  %p5821_p11 = por %p5820_p7, %p5819_p6 }
  0xfe   : > { %p5822_p0 = pnand %p5821_p11, %p5815_p4 }
 0x100   : > { %5825 = shalt.err (!%p5822_p0)
}
 0x101   : > { %5127 = dma.hbm_to_vmem [thread:$0]  (!%p6751_p12), %s6760_s18, 128, %s1306_s20, %s6764_s27  }
 0x102   : > { %s7415_s29 = sshll.u32 %s6336_s26, 7  ;;  %s6389_s9 = smov [#allocation10]  }
 0x103   : > { %s6788_s6 = scalar_lea.hbm %s6430_s13, %s7415_s29  ;;  %s1021_s19 = sshll.u32 %s6389_s9, 4  ;;  %s1022_s19 = int_to_ptr.vmem [resolvable:$true] %s1021_s19 }
 0x104   : > { %s6390_s23 = smov [#allocation13]   ;;  %s5837_s16 = scalar_lea.vmem %s1022_s19, 64 }
 0x105   : > { %s1051_s3 = sshll.u32 %s6390_s23, 4  ;;  %p5838_p6 = scmp.ne.s32.totalorder %s1022_s19, %s5837_s16  ;;  %s1052_s3 = int_to_ptr.vmem [resolvable:$true] %s1051_s3 }
 0x106   : > { %p7416_p7 = scmp.ne.s32.totalorder %s7397_s28, 0  ;;  %p5845_p10 = scmp.lt.s32.totalorder %s1022_s19, %s1022_s19 }
 0x107   : > { %p5846_p2 = scmp.lt.s32.totalorder %s5837_s16, %s5837_s16 }
 0x108   : > { %p5840_p4 = pnand %p5838_p6, %p7416_p7 }
 0x109   : > { %p5847_p1 = por %p5846_p2, %p5845_p10 }
 0x10a   : > { %p5841_p5 = pneg %p5840_p4 }
 0x10c   : > { %p5848_p3 = pnand %p5847_p1, %p5841_p5 }
 0x10e   : > { %5851 = shalt.err (!%p5848_p3)
}
 0x10f   : > { %p7417_p8 = scmp.ne.s32.totalorder %s7396_s15, 0  ;;  %s7418_s21 = sld [smem:[#allocation61_spill]] }
 0x110   : > { %s5863_s9 = scalar_lea.vmem %s1052_s3, 1024  ;;  %p5871_p12 = scmp.lt.s32.totalorder %s1052_s3, %s1052_s3 }
 0x111   : > { %p5864_p9 = scmp.ne.s32.totalorder %s1052_s3, %s5863_s9  ;;  %p5872_p13 = scmp.lt.s32.totalorder %s5863_s9, %s5863_s9 }
 0x113   : > { %p5866_p11 = pnand %p5864_p9, %p7416_p7  ;;  %p5873_p6 = por %p5872_p13, %p5871_p12 }
 0x115   : > { %5069 = dma.hbm_to_vmem [thread:$0]  (!%p7417_p8), %s7418_s21, 64, %s1022_s19, [#allocation9]  }
 0x116   : > { %p5867_p0 = pneg %p5866_p11 }
 0x118   : > { %p5874_p4 = pnand %p5873_p6, %p5867_p0 }
 0x11a   : > { %5877 = shalt.err (!%p5874_p4)
}
 0x11b   : > { %s6391_s20 = smov 128   ;;  %s7419_s14 = sld [smem:[#allocation66_spill]] }
 0x11c   : > { %s6392_s23 = smov 8   ;;  %s6393_s18 = smov [#allocation16]  }
 0x11d   : > { %s1075_s8 = sshll.u32 %s6393_s18, 4  ;;  %s1076_s8 = int_to_ptr.vmem [resolvable:$true] %s1075_s8 }
 0x11e   : > { %s5889_s29 = scalar_lea.vmem %s1076_s8, 1024  ;;  %p5897_p1 = scmp.lt.s32.totalorder %s1076_s8, %s1076_s8 }
 0x11f   : > { %p5890_p5 = scmp.ne.s32.totalorder %s1076_s8, %s5889_s29  ;;  %p5898_p3 = scmp.lt.s32.totalorder %s5889_s29, %s5889_s29 }
 0x121   : > { %5075 = dma.hbm_to_vmem [thread:$0]  (!%p7417_p8), %s7419_s14, 1024, %s1052_s3, [#allocation12], %s6391_s20, %s6391_s20, %s6392_s23  }
 0x122   : > { %p5892_p10 = pnand %p5890_p5, %p7416_p7  ;;  %p5899_p12 = por %p5898_p3, %p5897_p1 }
 0x124   : > { %p5893_p2 = pneg %p5892_p10 }
 0x126   : > { %p5900_p13 = pnand %p5899_p12, %p5893_p2 }
 0x128   : > { %5903 = shalt.err (!%p5900_p13)
}
 0x129   : > { %s6394_s19 = smov 64   ;;  %s7420_s24 = sld [smem:[#allocation68_spill]] }
 0x12a   : > { %s6395_s16 = smov 4   ;;  %s6396_s3 = smov [#allocation19]  }
 0x12b   : > { %s1103_s9 = sshll.u32 %s6396_s3, 4  ;;  %s6397_s20 = smov [#allocation22]   ;;  %s1104_s9 = int_to_ptr.vmem [resolvable:$true] %s1103_s9 }
 0x12c   : > { %s1127_s23 = sshll.u32 %s6397_s20, 4  ;;  %s5915_s18 = scalar_lea.vmem %s1104_s9, 16  ;;  %s1128_s23 = int_to_ptr.vmem [resolvable:$true] %s1127_s23 }
 0x12d   : > { %p5916_p9 = scmp.ne.s32.totalorder %s1104_s9, %s5915_s18  ;;  %s5922_s29 = scalar_lea.vmem %s1104_s9, 32 }
 0x12e   : > { %p5923_p6 = scmp.lt.s32.totalorder %s1104_s9, %s1104_s9  ;;  %p5924_p4 = scmp.lt.s32.totalorder %s5922_s29, %s5915_s18 }
 0x12f   : > { %5081 = dma.hbm_to_vmem [thread:$0]  (!%p7417_p8), %s7420_s24, 1024, %s1076_s8, [#allocation15], %s6394_s19, %s6394_s19, %s6395_s16  }
 0x130   : > { %p5918_p11 = pnand %p5916_p9, %p7416_p7  ;;  %p5925_p5 = por %p5924_p4, %p5923_p6 }
 0x132   : > { %p5919_p0 = pneg %p5918_p11 }
 0x134   : > { %p5926_p10 = pnand %p5925_p5, %p5919_p0 }
 0x136   : > { %5929 = shalt.err (!%p5926_p10)
}
 0x137   : > { %s7421_s8 = sld [smem:[#allocation71_spill]]  ;;  %s5941_s3 = scalar_lea.vmem %s1128_s23, 256 }
 0x138   : > { %p5942_p2 = scmp.ne.s32.totalorder %s1128_s23, %s5941_s3  ;;  %p5949_p12 = scmp.lt.s32.totalorder %s1128_s23, %s1128_s23 }
 0x139   : > { %p5950_p13 = scmp.lt.s32.totalorder %s5941_s3, %s5941_s3 }
 0x13a   : > { %p5944_p1 = pnand %p5942_p2, %p7416_p7 }
 0x13b   : > { %p5951_p9 = por %p5950_p13, %p5949_p12 }
 0x13c   : > { %p5945_p3 = pneg %p5944_p1 }
 0x13d   : > { %5087 = dma.hbm_to_vmem [thread:$0]  (!%p7417_p8), %s7421_s8, 16, %s1104_s9, [#allocation18]  }
 0x13e   : > { %p5952_p11 = pnand %p5951_p9, %p5945_p3 }
 0x140   : > { %5955 = shalt.err (!%p5952_p11)
}
 0x141   : > { %s7422_s20 = sld [smem:[#allocation74_spill]]  ;;  %s6398_s18 = smov [#allocation25]  }
 0x142   : > { %s1154_s9 = sshll.u32 %s6398_s18, 4  ;;  %s6399_s29 = smov [#allocation28]   ;;  %s1155_s9 = int_to_ptr.vmem [resolvable:$true] %s1154_s9 }
 0x143   : > { %s1182_s8 = sshll.u32 %s6399_s29, 4  ;;  %s5967_s14 = scalar_lea.vmem %s1155_s9, 256  ;;  %s1183_s8 = int_to_ptr.vmem [resolvable:$true] %s1182_s8 }
 0x144   : > { %p5968_p0 = scmp.ne.s32.totalorder %s1155_s9, %s5967_s14  ;;  %p5975_p5 = scmp.lt.s32.totalorder %s1155_s9, %s1155_s9 }
 0x145   : > { %p5976_p10 = scmp.lt.s32.totalorder %s5967_s14, %s5967_s14 }
 0x146   : > { %p5970_p6 = pnand %p5968_p0, %p7416_p7 }
 0x147   : > { %5093 = dma.hbm_to_vmem [thread:$0]  (!%p7417_p8), %s7422_s20, 256, %s1128_s23, [#allocation21], %s6394_s19, %s6394_s19, %s6395_s16  }
 0x148   : > { %p5971_p4 = pneg %p5970_p6  ;;  %p5977_p2 = por %p5976_p10, %p5975_p5 }
 0x14a   : > { %p5978_p1 = pnand %p5977_p2, %p5971_p4 }
 0x14c   : > { %5981 = shalt.err (!%p5978_p1)
}
 0x14d   : > { %s7423_s23 = sld [smem:[#allocation77_spill]]  ;;  %s5993_s3 = scalar_lea.vmem %s1183_s8, 16 }
 0x14e   : > { %p5994_p3 = scmp.ne.s32.totalorder %s1183_s8, %s5993_s3  ;;  %s6000_s20 = scalar_lea.vmem %s1183_s8, 32 }
 0x14f   : > { %p6001_p9 = scmp.lt.s32.totalorder %s1183_s8, %s1183_s8  ;;  %p6002_p11 = scmp.lt.s32.totalorder %s6000_s20, %s5993_s3 }
 0x150   : > { %p5996_p12 = pnand %p5994_p3, %p7416_p7 }
 0x151   : > { %p6003_p0 = por %p6002_p11, %p6001_p9 }
 0x152   : > { %p5997_p13 = pneg %p5996_p12 }
 0x153   : > { %5099 = dma.hbm_to_vmem [thread:$0]  (!%p7417_p8), %s7423_s23, 256, %s1155_s9, [#allocation24], %s6394_s19, %s6394_s19, %s6395_s16  }
 0x154   : > { %p6004_p6 = pnand %p6003_p0, %p5997_p13 }
 0x156   : > { %6007 = shalt.err (!%p6004_p6)
}
 0x157   : > { %s7424_s14 = sld [smem:[#allocation80_spill]]  ;;  %s6400_s18 = smov [#allocation31]  }
 0x158   : > { %s1206_s29 = sshll.u32 %s6400_s18, 4  ;;  %s6401_s21 = smov [#allocation34]   ;;  %s1207_s29 = int_to_ptr.vmem [resolvable:$true] %s1206_s29 }
 0x159   : > { %s1230_s9 = sshll.u32 %s6401_s21, 4  ;;  %s6019_s23 = scalar_lea.vmem %s1207_s29, 256  ;;  %s1231_s9 = int_to_ptr.vmem [resolvable:$true] %s1230_s9 }
 0x15a   : > { %p6020_p4 = scmp.ne.s32.totalorder %s1207_s29, %s6019_s23  ;;  %p6027_p2 = scmp.lt.s32.totalorder %s1207_s29, %s1207_s29 }
 0x15b   : > { %p6028_p1 = scmp.lt.s32.totalorder %s6019_s23, %s6019_s23 }
 0x15c   : > { %p6022_p5 = pnand %p6020_p4, %p7416_p7 }
 0x15d   : > { %5105 = dma.hbm_to_vmem [thread:$0]  (!%p7417_p8), %s7424_s14, 16, %s1183_s8, [#allocation27]  }
 0x15e   : > { %p6023_p10 = pneg %p6022_p5  ;;  %p6029_p3 = por %p6028_p1, %p6027_p2 }
 0x160   : > { %p6030_p12 = pnand %p6029_p3, %p6023_p10 }
 0x162   : > { %6033 = shalt.err (!%p6030_p12)
}
 0x163   : > { %s7425_s8 = sld [smem:[#allocation83_spill]]  ;;  %s6045_s21 = scalar_lea.vmem %s1231_s9, 384 }
 0x164   : > { %p6046_p13 = scmp.ne.s32.totalorder %s1231_s9, %s6045_s21  ;;  %p6053_p0 = scmp.lt.s32.totalorder %s1231_s9, %s1231_s9 }
 0x165   : > { %p6054_p6 = scmp.lt.s32.totalorder %s6045_s21, %s6045_s21 }
 0x166   : > { %p6048_p9 = pnand %p6046_p13, %p7416_p7 }
 0x167   : > { %p6055_p4 = por %p6054_p6, %p6053_p0 }
 0x168   : > { %p6049_p11 = pneg %p6048_p9 }
 0x169   : > { %5111 = dma.hbm_to_vmem [thread:$0]  (!%p7417_p8), %s7425_s8, 256, %s1207_s29, [#allocation30], %s6394_s19, %s6394_s19, %s6395_s16  }
 0x16a   : > { %p6056_p5 = pnand %p6055_p4, %p6049_p11 }
 0x16c   : > { %6059 = shalt.err (!%p6056_p5)
}
 0x16d   : > { %s7426_s3 = sld [smem:[#allocation85_spill]]  ;;  %s6402_s20 = smov [#allocation35]  }
 0x16e   : > { %s1258_s14 = sshll.u32 %s6402_s20, 4  ;;  %s4421_s18 = sshll.u32 %s6744_s12, 4  ;;  %s1259_s14 = int_to_ptr.vmem [resolvable:$true] %s1258_s14 }
 0x16f   : > { %s6071_s29 = scalar_lea.vmem %s1259_s14, 256  ;;  %p6079_p3 = scmp.lt.s32.totalorder %s1259_s14, %s1259_s14 }
 0x170   : > { %p6072_p10 = scmp.ne.s32.totalorder %s1259_s14, %s6071_s29  ;;  %p6080_p12 = scmp.lt.s32.totalorder %s6071_s29, %s6071_s29 }
 0x172   : > { %p6074_p2 = pnand %p6072_p10, %p7416_p7  ;;  %p6081_p13 = por %p6080_p12, %p6079_p3 }
 0x173   : > { %5117 = dma.hbm_to_vmem [thread:$0]  (!%p7417_p8), %s7426_s3, 384, %s1231_s9, [#allocation33], %s6394_s19, %s6394_s19, %s6395_s16  }
 0x174   : > { %p6075_p1 = pneg %p6074_p2 }
 0x176   : > { %p6082_p9 = pnand %p6081_p13, %p6075_p1 }
 0x178   : > { %6085 = shalt.err (!%p6082_p9)
}
 0x179   : > { %s7427_s9 = sld [smem:[#allocation91_spill]]  ;;  %s4696_s28 = sshll.u32 %s6336_s26, 8 }
 0x17a   : > { %s7428_s23 = sld [smem:[#allocation58_spill]]  ;;  %s1279_s21 = scalar_lea.vmem [#allocation2], %s4421_s18 }
 0x17b   : > { %s1287_s3 = sshll.u32 %s1279_s21, 4  ;;  %s1276_s29 = scalar_lea.sflag [#allocation3], %s6744_s12  ;;  %s1288_s3 = int_to_ptr.vmem [resolvable:$true] %s1287_s3 }
 0x17c   : > { %p7430_p11 = scmp.ne.s32.totalorder %s7414_s30, 0 }
 0x17f   : > { %5120 = dma.hbm_to_vmem [thread:$0]  (!%p7417_p8), %s7427_s9, 256, %s1259_s14, [#allocation36], %s6394_s19, %s6394_s19, %s6395_s16  }
 0x180   : > { %s7429_s8 = smov %s7428_s23  ;;  %s1285_s20 = scalar_lea.hbm %s7428_s23, %s4696_s28 }
 0x181   : > { %s6086_s24 = scalar_lea.hbm %s1285_s20, 256  ;;  %s6091_s15 = scalar_lea.hbm %s7429_s8, 512 }
 0x182   : > { %p6087_p7 = scmp.ne.s32.totalorder %s1285_s20, %s6086_s24  ;;  %p6092_p4 = scmp.lt.s32.totalorder %s1285_s20, %s7429_s8 }
 0x183   : > { %p6093_p5 = scmp.lt.s32.totalorder %s6091_s15, %s6086_s24 }
 0x184   : > { %p6089_p0 = pnand %p6087_p7, %p7430_p11 }
 0x185   : > { %p6094_p10 = por %p6093_p5, %p6092_p4 }
 0x186   : > { %p6090_p6 = pneg %p6089_p0 }
 0x188   : > { %p6095_p2 = pnand %p6094_p10, %p6090_p6 }
 0x18a   : > { %6098 = shalt.err (!%p6095_p2)
}
 0x18b   : > { %s6099_s17 = scalar_lea.vmem %s1288_s3, 256  ;;  %s6403_s19 = smov [#allocation2]  }
 0x18c   : > { %p6100_p8 = scmp.ne.s32.totalorder %s1288_s3, %s6099_s17  ;;  %s6104_s16 = sshll.u32 %s6403_s19, 4  ;;  %s6105_s16 = int_to_ptr.vmem [resolvable:$false] %s6104_s16 }
 0x18d   : > { %s6106_s14 = scalar_lea.vmem %s6105_s16, 512  ;;  %p6107_p12 = scmp.lt.s32.totalorder %s1288_s3, %s6105_s16 }
 0x18e   : > { %p6102_p1 = pnand %p6100_p8, %p7430_p11  ;;  %p6108_p13 = scmp.lt.s32.totalorder %s6106_s14, %s6099_s17 }
 0x190   : > { %p6103_p3 = pneg %p6102_p1  ;;  %p6109_p9 = por %p6108_p13, %p6107_p12 }
 0x192   : > { %p6110_p7 = pnand %p6109_p9, %p6103_p3 }
 0x194   : > { %6113 = shalt.err (!%p6110_p7)
}
 0x195   : > { %p7431_p0 = scmp.ne.s32.totalorder %s7413_s25, 0  ;;  %s7432_s24 = sshll.u32 %s6744_s12, 3 }
 0x196   : > { %s1316_s18 = scalar_lea.vmem [#allocation7], %s7432_s24  ;;  %s6114_s23 = scalar_lea.hbm %s6788_s6, 128 }
 0x197   : > { %5124 = dma.hbm_to_vmem [thread:$0]  (!%p7431_p0), %s1285_s20, 256, %s1288_s3, %s1276_s29  }
 0x198   : > { %s1323_s9 = sshll.u32 %s1316_s18, 4  ;;  %p6115_p6 = scmp.ne.s32.totalorder %s6788_s6, %s6114_s23  ;;  %s1324_s9 = int_to_ptr.vmem [resolvable:$true] %s1323_s9 }
 0x199   : > { %s6119_s17 = scalar_lea.hbm %s6430_s13, 256  ;;  %p6120_p10 = scmp.lt.s32.totalorder %s6788_s6, %s6430_s13 }
 0x19a   : > { %p6117_p4 = pnand %p6115_p6, %p7430_p11  ;;  %p6121_p2 = scmp.lt.s32.totalorder %s6119_s17, %s6114_s23 }
 0x19c   : > { %p6118_p5 = pneg %p6117_p4  ;;  %p6122_p8 = por %p6121_p2, %p6120_p10 }
 0x19e   : > { %p6123_p1 = pnand %p6122_p8, %p6118_p5 }
 0x1a0   : > { %6126 = shalt.err (!%p6123_p1)
}
 0x1a1   : > { %s6127_s28 = scalar_lea.vmem %s1324_s9, 128  ;;  %s6404_s12 = smov [#allocation7]  }
 0x1a2   : > { %p6128_p3 = scmp.ne.s32.totalorder %s1324_s9, %s6127_s28  ;;  %s6132_s21 = sshll.u32 %s6404_s12, 4  ;;  %s6133_s21 = int_to_ptr.vmem [resolvable:$false] %s6132_s21 }
 0x1a3   : > { %s6134_s3 = scalar_lea.vmem %s6133_s21, 256  ;;  %p6135_p9 = scmp.lt.s32.totalorder %s1324_s9, %s6133_s21 }
 0x1a4   : > { %p6130_p12 = pnand %p6128_p3, %p7430_p11  ;;  %p6136_p7 = scmp.lt.s32.totalorder %s6134_s3, %s6127_s28 }
 0x1a6   : > { %p6131_p13 = pneg %p6130_p12  ;;  %p6137_p6 = por %p6136_p7, %p6135_p9 }
 0x1a8   : > { %p6138_p4 = pnand %p6137_p6, %p6131_p13 }
 0x1aa   : > { %6141 = shalt.err (!%p6138_p4)
}
 0x1ab   : > { %5130 = dma.hbm_to_vmem [thread:$0]  (!%p7431_p0), %s6788_s6, 128, %s1324_s9, %s6764_s27  }
 0x1ac   : > { %p7433_p5 = scmp.ne.s32.totalorder %s7395_s7, 0 }
 0x1ad   : > { %s6888_s30 = sand.u32 (!%p7433_p5), 1, %s6328_s22   ;;  %p7434_p11 = scmp.ne.s32.totalorder (!%p7433_p5), %s7410_s11, 0 }
 0x1ae   : > { %1332 = sbr.rel (%p7433_p5) target bundleno = 3594 (0xe0a), region = 164  ;;  %s4429_s20 = sshll.u32 (!%p7433_p5), %s6888_s30, 4 }
 0x1af   : > { %s1335_s29 = scalar_lea.sflag (!%p7433_p5), [#allocation3], %s6888_s30  ;;  %s6892_s15 = scalar_lea.vmem (!%p7433_p5), [#allocation2], %s4429_s20 }
 0x1b3   : > { %6263 = dma.done.wait (%p7434_p11), %s1335_s29, 256  }
 0x1b4   : > { %6265 = vsyncadd (%p7434_p11), %s1335_s29, 4294967040  ;;  %s1343_s27 = sand.u32 1, %s6638_s2   ;;  %s6900_s7 = sshll.u32 %s6888_s30, 3 }
 0x1b5   : > { %s1344_s25 = scalar_lea.sflag [#allocation6], %s1343_s27  ;;  %s1347_s6 = scalar_lea.vmem [#allocation5], %s6900_s7 }
 0x1b6   : > { %6267 = dma.done.wait (%p7434_p11), %s1344_s25, 256  }
 0x1b7   : > { %6269 = vsyncadd (%p7434_p11), %s1344_s25, 4294967040  ;;  %s1356_s19 = scalar_lea.vmem [#allocation7], %s6900_s7  ;;  %p7435_p0 = scmp.eq.s32.totalorder %s6638_s2, 0 }
 0x1b9   : > { %6271 = dma.done.wait (%p7435_p0), [#allocation9], 5184   ;;  %p7436_p10 = pmov %p7435_p0 }
 0x1ba   : > { %p7437_p2 = pmov %p7435_p0 }
 0x1bb   : > { %6273 = vsyncadd (%p7436_p10), [#allocation9], 4294962112 }
 0x1bc   : > { %6275 = dma.done.wait (%p7437_p2), [#allocation12], 1056   ;;  %p7438_p8 = pmov %p7435_p0 }
 0x1bd   : > { %p7439_p1 = pmov %p7435_p0 }
 0x1be   : > { %6277 = vsyncadd (%p7438_p8), [#allocation12], 4294966240 }
 0x1bf   : > { %6279 = dma.done.wait (%p7439_p1), [#allocation15], 1056   ;;  %p7440_p3 = pmov %p7435_p0 }
 0x1c0   : > { %p7441_p12 = pmov %p7435_p0 }
 0x1c1   : > { %6281 = vsyncadd (%p7440_p3), [#allocation15], 4294966240 }
 0x1c2   : > { %6283 = dma.done.wait (%p7441_p12), [#allocation18], 32   ;;  %p7442_p13 = pmov %p7435_p0 }
 0x1c3   : > { %p7443_p9 = pmov %p7435_p0 }
 0x1c4   : > { %6285 = vsyncadd (%p7442_p13), [#allocation18], 4294967264 }
 0x1c5   : > { %6287 = dma.done.wait (%p7443_p9), [#allocation21], 272   ;;  %p7444_p7 = pmov %p7435_p0 }
 0x1c6   : > { %p7445_p6 = pmov %p7435_p0 }
 0x1c7   : > { %6289 = vsyncadd (%p7444_p7), [#allocation21], 4294967024 }
 0x1c8   : > { %6291 = dma.done.wait (%p7445_p6), [#allocation24], 272   ;;  %p7446_p4 = pmov %p7435_p0 }
 0x1c9   : > { %p7447_p5 = pmov %p7435_p0 }
 0x1ca   : > { %6293 = vsyncadd (%p7446_p4), [#allocation24], 4294967024 }
 0x1cb   : > { %6295 = dma.done.wait (%p7447_p5), [#allocation27], 32   ;;  %p7448_p11 = pmov %p7435_p0 }
 0x1cd   : > { %6297 = vsyncadd (%p7448_p11), [#allocation27], 4294967264 }
 0x1ce   : > { %6299 = dma.done.wait (%p7435_p0), [#allocation30], 272   ;;  %p7449_p10 = pmov %p7435_p0 }
 0x1cf   : > { %p7450_p2 = pmov %p7435_p0 }
 0x1d0   : > { %6301 = vsyncadd (%p7449_p10), [#allocation30], 4294967024 }
 0x1d1   : > { %6303 = dma.done.wait (%p7450_p2), [#allocation33], 400   ;;  %p7451_p8 = pmov %p7435_p0 }
 0x1d2   : > { %p7452_p1 = pmov %p7435_p0 }
 0x1d3   : > { %6305 = vsyncadd (%p7451_p8), [#allocation33], 4294966896 }
 0x1d4   : > { %6307 = dma.done.wait (%p7452_p1), [#allocation36], 256   ;;  %p7453_p3 = pmov %p7435_p0 }
 0x1d5   : > { %v5283_v0 = vld [vmem:[#allocation8 + $0xe4] ss:$16 sps:$4 sm:$0xff]   ;;  %v5285_v1 = vld [vmem:[#allocation8 + $0xec] ss:$16 sps:$4 sm:$0xff]   ;;  %v5287_v2 = vld [vmem:[#allocation8 + $0xe0] ss:$16 sps:$4 sm:$0xff]  }
 0x1d6   : > { %6309 = vsyncadd (%p7453_p3), [#allocation36], 4294967040  ;;  %1823 = vmatprep.subr.bf16.mxu0 %v5283_v0  ;;  %v5288_v3 = vld [vmem:[#allocation8 + $0xe8] ss:$16 sps:$4 sm:$0xff]   ;;  %1864 = vmatprep.subr.bf16.mxu1 %v5285_v1  ;;  %v5289_v4 = vld [vmem:[#allocation8 + $0xc4] ss:$16 sps:$4 sm:$0xff]  }
 0x1d7   : > { %1824 = vmatpush1.bf16.msra.mxu0 %v5287_v2  ;;  %1865 = vmatpush1.bf16.msra.mxu1 %v5288_v3  ;;  %v5291_v5 = vld [vmem:[#allocation8 + $0xcc] ss:$16 sps:$4 sm:$0xff]   ;;  %v5293_v6 = vld [vmem:[#allocation8 + $0xc0] ss:$16 sps:$4 sm:$0xff]   ;;  %v5294_v7 = vld [vmem:[#allocation8 + $0xc8] ss:$16 sps:$4 sm:$0xff]  }
 0x1d8   : > { %1825 = vmatprep.subr.bf16.mxu0 %v5289_v4  ;;  %1866 = vmatprep.subr.bf16.mxu1 %v5291_v5  ;;  %v5295_v8 = vld [vmem:[#allocation8 + $0xa4] ss:$16 sps:$4 sm:$0xff]   ;;  %v5297_v9 = vld [vmem:[#allocation8 + $0xac] ss:$16 sps:$4 sm:$0xff]   ;;  %v5299_v10 = vld [vmem:[#allocation8 + $0xa0] ss:$16 sps:$4 sm:$0xff]  }
 0x1d9   : > { %v5300_v11 = vld [vmem:[#allocation8 + $0xa8] ss:$16 sps:$4 sm:$0xff]   ;;  %v5301_v12 = vld [vmem:[#allocation8 + $0x84] ss:$16 sps:$4 sm:$0xff]   ;;  %v5303_v13 = vld [vmem:[#allocation8 + $0x8c] ss:$16 sps:$4 sm:$0xff]  }
 0x1da   : > { %v5305_v14 = vld [vmem:[#allocation8 + $0x80] ss:$16 sps:$4 sm:$0xff]   ;;  %v5306_v15 = vld [vmem:[#allocation8 + $0x88] ss:$16 sps:$4 sm:$0xff]   ;;  %v5307_v16 = vld [vmem:[#allocation8 + $0x64] ss:$16 sps:$4 sm:$0xff]  }
 0x1db   : > { %1826 = vmatpush1.bf16.msra.mxu0 %v5293_v6  ;;  %1867 = vmatpush1.bf16.msra.mxu1 %v5294_v7  ;;  %v5309_v17 = vld [vmem:[#allocation8 + $0x6c] ss:$16 sps:$4 sm:$0xff]   ;;  %v5311_v18 = vld [vmem:[#allocation8 + $0x60] ss:$16 sps:$4 sm:$0xff]   ;;  %v5312_v19 = vld [vmem:[#allocation8 + $0x68] ss:$16 sps:$4 sm:$0xff]  }
 0x1dc   : > { %1827 = vmatprep.subr.bf16.mxu0 %v5295_v8  ;;  %1868 = vmatprep.subr.bf16.mxu1 %v5297_v9  ;;  %v5313_v20 = vld [vmem:[#allocation8 + $0x44] ss:$16 sps:$4 sm:$0xff]   ;;  %v5315_v21 = vld [vmem:[#allocation8 + $0x4c] ss:$16 sps:$4 sm:$0xff]   ;;  %v5317_v22 = vld [vmem:[#allocation8 + $0x40] ss:$16 sps:$4 sm:$0xff]  }
 0x1dd   : > { %v5318_v23 = vld [vmem:[#allocation8 + $0x48] ss:$16 sps:$4 sm:$0xff]   ;;  %v5319_v24 = vld [vmem:[#allocation8 + $0x24] ss:$16 sps:$4 sm:$0xff]   ;;  %v5321_v25 = vld [vmem:[#allocation8 + $0x2c] ss:$16 sps:$4 sm:$0xff]  }
 0x1de   : > { %v5323_v26 = vld [vmem:[#allocation8 + $0x20] ss:$16 sps:$4 sm:$0xff]   ;;  %v5324_v27 = vld [vmem:[#allocation8 + $0x28] ss:$16 sps:$4 sm:$0xff]   ;;  %v5325_v28 = vld [vmem:[#allocation8 + $0x4] ss:$16 sps:$4 sm:$0xff]  }
 0x1df   : > { %1828 = vmatpush1.bf16.msra.mxu0 %v5299_v10  ;;  %1869 = vmatpush1.bf16.msra.mxu1 %v5300_v11  ;;  %v5327_v29 = vld [vmem:[#allocation8 + $0xc] ss:$16 sps:$4 sm:$0xff]   ;;  %vm1819_vm0 = vcmask 261120   ;;  %v5329_v32 = vld [vmem:[#allocation8] ss:$16 sps:$4 sm:$0xff]   ;;  %s7454_s11 = sld [smem:[#allocation62_spill]] }
 0x1e0   : > { %1829 = vmatprep.subr.bf16.mxu0 %v5301_v12  ;;  %1870 = vmatprep.subr.bf16.mxu1 %v5303_v13  ;;  %v1554_v30 = vld [vmem:[%s6892_s15 + $0x8] sm:$0xff]  ;;  %v5331_v34 = vld [vmem:[#allocation8 + $0x124] ss:$16 sps:$4 sm:$0xff]   ;;  %v5335_v36 = vld [vmem:[#allocation8 + $0x120] ss:$16 sps:$4 sm:$0xff]   ;;  %s7455_s16 = sld [smem:[#allocation64_spill]] }
 0x1e1   : > { %v6951_v31 = vpack.c.bf16 %v1554_v30, %v1554_v30  ;;  %v5330_v33 = vld [vmem:[#allocation8 + $0x8] ss:$16 sps:$4 sm:$0xff]   ;;  %v5333_v35 = vld [vmem:[#allocation8 + $0x12c] ss:$16 sps:$4 sm:$0xff]   ;;  %v5337_v38 = vld [vmem:[#allocation8 + $0x104] ss:$16 sps:$4 sm:$0xff]  }
 0x1e2   : > { %v5336_v37 = vld [vmem:[#allocation8 + $0x128] ss:$16 sps:$4 sm:$0xff]   ;;  %v5339_v39 = vld [vmem:[#allocation8 + $0x10c] ss:$16 sps:$4 sm:$0xff]   ;;  %v5341_v40 = vld [vmem:[#allocation8 + $0x100] ss:$16 sps:$4 sm:$0xff]  }
 0x1e3   : > { %1830 = vmatpush1.bf16.msra.mxu0 %v5305_v14  ;;  %1871 = vmatpush1.bf16.msra.mxu1 %v5306_v15  ;;  %v5342_v41 = vld [vmem:[#allocation8 + $0x108] ss:$16 sps:$4 sm:$0xff]   ;;  %v1553_v42 = vld [vmem:[%s6892_s15] sm:$0xff]  ;;  %s7456_s14 = sld [smem:[#allocation65_spill]]  ;;  %vm2660_vm8 = vcmask 523264   ;;  %vm6407_vm9 = vmmov 0  }
 0x1e4   : > { %1831 = vmatprep.subr.bf16.mxu0 %v5307_v16  ;;  %1872 = vmatprep.subr.bf16.mxu1 %v5309_v17  ;;  %v1555_v45 = vpack.c.bf16 %v1553_v42, %v1553_v42  ;;  %s7457_s24 = sld [smem:[#allocation70_spill]]  ;;  %s1537_s18 = scalar_lea.vmem [#allocation38], %s6900_s7 }
 0x1e5   : > { %4495 = vmatprep.mubr.msk.bf16.mxu0 %vm1819_vm0, %v6951_v31  ;;  %4496 = vmatprep.mubr.msk.bf16.mxu1 %vm1819_vm0, %v6951_v31  ;;  %v5345_v43 = vld [vmem:[%s7454_s11 + $0x74] ss:$8 sps:$4 sm:$0xff]   ;;  %v5343_v46 = vld [vmem:[%s7454_s11 + $0x70] ss:$8 sps:$4 sm:$0xff]   ;;  %v5351_v48 = vld [vmem:[%s7454_s11 + $0x64] ss:$8 sps:$4 sm:$0xff]  }
 0x1e6   : > { %v5348_v44 = vld [vmem:[%s7454_s11 + $0x174] ss:$8 sps:$4 sm:$0xff]   ;;  %v5346_v47 = vld [vmem:[%s7454_s11 + $0x170] ss:$8 sps:$4 sm:$0xff]   ;;  %v5354_v49 = vld [vmem:[%s7454_s11 + $0x164] ss:$8 sps:$4 sm:$0xff]  }
 0x1e7   : > { %1832 = vmatpush1.bf16.msra.mxu0 %v5311_v18  ;;  %1873 = vmatpush1.bf16.msra.mxu1 %v5312_v19  ;;  %v5349_v50 = vld [vmem:[%s7454_s11 + $0x60] ss:$8 sps:$4 sm:$0xff]   ;;  %v5357_v52 = vld [vmem:[%s7454_s11 + $0x54] ss:$8 sps:$4 sm:$0xff]   ;;  %v5355_v54 = vld [vmem:[%s7454_s11 + $0x50] ss:$8 sps:$4 sm:$0xff]  }
 0x1e8   : > { %1833 = vmatprep.subr.bf16.mxu0 %v5313_v20  ;;  %1874 = vmatprep.subr.bf16.mxu1 %v5315_v21  ;;  %v5352_v51 = vld [vmem:[%s7454_s11 + $0x160] ss:$8 sps:$4 sm:$0xff]   ;;  %v5360_v53 = vld [vmem:[%s7454_s11 + $0x154] ss:$8 sps:$4 sm:$0xff]   ;;  %v5358_v55 = vld [vmem:[%s7454_s11 + $0x150] ss:$8 sps:$4 sm:$0xff]  }
 0x1e9   : > { %v5363_v56 = vld [vmem:[%s7454_s11 + $0x44] ss:$8 sps:$4 sm:$0xff]   ;;  %v5361_v58 = vld [vmem:[%s7454_s11 + $0x40] ss:$8 sps:$4 sm:$0xff]   ;;  %v5369_v60 = vld [vmem:[%s7454_s11 + $0x34] ss:$8 sps:$4 sm:$0xff]  }
 0x1ea   : > { %v5366_v57 = vld [vmem:[%s7454_s11 + $0x144] ss:$8 sps:$4 sm:$0xff]   ;;  %v5364_v59 = vld [vmem:[%s7454_s11 + $0x140] ss:$8 sps:$4 sm:$0xff]   ;;  %v5372_v61 = vld [vmem:[%s7454_s11 + $0x134] ss:$8 sps:$4 sm:$0xff]  }
 0x1eb   : > { %1834 = vmatpush1.bf16.msra.mxu0 %v5317_v22  ;;  %1875 = vmatpush1.bf16.msra.mxu1 %v5318_v23  ;;  %v5367_v62 = vld [vmem:[%s7454_s11 + $0x30] ss:$8 sps:$4 sm:$0xff]   ;;  %v5375_v0 = vld [vmem:[%s7454_s11 + $0x24] ss:$8 sps:$4 sm:$0xff]   ;;  %v5373_v2 = vld [vmem:[%s7454_s11 + $0x20] ss:$8 sps:$4 sm:$0xff]  }
 0x1ec   : > { %1835 = vmatprep.subr.bf16.mxu0 %v5319_v24  ;;  %1876 = vmatprep.subr.bf16.mxu1 %v5321_v25  ;;  %v5370_v63 = vld [vmem:[%s7454_s11 + $0x130] ss:$8 sps:$4 sm:$0xff]   ;;  %v5378_v1 = vld [vmem:[%s7454_s11 + $0x124] ss:$8 sps:$4 sm:$0xff]   ;;  %v5376_v3 = vld [vmem:[%s7454_s11 + $0x120] ss:$8 sps:$4 sm:$0xff]  }
 0x1ed   : > { %v5381_v4 = vld [vmem:[%s7454_s11 + $0x14] ss:$8 sps:$4 sm:$0xff]   ;;  %v5379_v6 = vld [vmem:[%s7454_s11 + $0x10] ss:$8 sps:$4 sm:$0xff]   ;;  %v5387_v8 = vld [vmem:[%s7454_s11 + $0x4] ss:$8 sps:$4 sm:$0xff]  }
 0x1ee   : > { %v5384_v5 = vld [vmem:[%s7454_s11 + $0x114] ss:$8 sps:$4 sm:$0xff]   ;;  %v5382_v7 = vld [vmem:[%s7454_s11 + $0x110] ss:$8 sps:$4 sm:$0xff]   ;;  %v5390_v9 = vld [vmem:[%s7454_s11 + $0x104] ss:$8 sps:$4 sm:$0xff]  }
 0x1ef   : > { %1836 = vmatpush1.bf16.msra.mxu0 %v5323_v26  ;;  %1877 = vmatpush1.bf16.msra.mxu1 %v5324_v27  ;;  %v5385_v10 = vld [vmem:[%s7454_s11] ss:$8 sps:$4 sm:$0xff]   ;;  %v5393_v12 = vld [vmem:[%s7454_s11 + $0xf4] ss:$8 sps:$4 sm:$0xff]   ;;  %v5391_v14 = vld [vmem:[%s7454_s11 + $0xf0] ss:$8 sps:$4 sm:$0xff]  }
 0x1f0   : > { %1837 = vmatprep.subr.bf16.mxu0 %v5325_v28  ;;  %1878 = vmatprep.subr.bf16.mxu1 %v5327_v29  ;;  %v5388_v11 = vld [vmem:[%s7454_s11 + $0x100] ss:$8 sps:$4 sm:$0xff]   ;;  %v5396_v13 = vld [vmem:[%s7454_s11 + $0x1f4] ss:$8 sps:$4 sm:$0xff]   ;;  %v5394_v15 = vld [vmem:[%s7454_s11 + $0x1f0] ss:$8 sps:$4 sm:$0xff]  }
 0x1f1   : > { %v5399_v16 = vld [vmem:[%s7454_s11 + $0xe4] ss:$8 sps:$4 sm:$0xff]   ;;  %v5397_v18 = vld [vmem:[%s7454_s11 + $0xe0] ss:$8 sps:$4 sm:$0xff]   ;;  %v5405_v20 = vld [vmem:[%s7454_s11 + $0xd4] ss:$8 sps:$4 sm:$0xff]  }
 0x1f2   : > { %v5402_v17 = vld [vmem:[%s7454_s11 + $0x1e4] ss:$8 sps:$4 sm:$0xff]   ;;  %v5400_v19 = vld [vmem:[%s7454_s11 + $0x1e0] ss:$8 sps:$4 sm:$0xff]   ;;  %v5408_v21 = vld [vmem:[%s7454_s11 + $0x1d4] ss:$8 sps:$4 sm:$0xff]  }
 0x1f3   : > { %1838 = vmatpush1.bf16.msra.mxu0 %v5329_v32  ;;  %1879 = vmatpush1.bf16.msra.mxu1 %v5330_v33  ;;  %v5403_v22 = vld [vmem:[%s7454_s11 + $0xd0] ss:$8 sps:$4 sm:$0xff]   ;;  %v5411_v24 = vld [vmem:[%s7454_s11 + $0xc4] ss:$8 sps:$4 sm:$0xff]   ;;  %v5409_v26 = vld [vmem:[%s7454_s11 + $0xc0] ss:$8 sps:$4 sm:$0xff]  }
 0x1f4   : > { %1851 = vmatprep.subr.bf16.mxu0 %v5331_v34  ;;  %1892 = vmatprep.subr.bf16.mxu1 %v5333_v35  ;;  %v5406_v23 = vld [vmem:[%s7454_s11 + $0x1d0] ss:$8 sps:$4 sm:$0xff]   ;;  %v5414_v25 = vld [vmem:[%s7454_s11 + $0x1c4] ss:$8 sps:$4 sm:$0xff]   ;;  %v5412_v27 = vld [vmem:[%s7454_s11 + $0x1c0] ss:$8 sps:$4 sm:$0xff]  }
 0x1f5   : > { %v5417_v28 = vld [vmem:[%s7454_s11 + $0xb4] ss:$8 sps:$4 sm:$0xff]   ;;  %v5415_v30 = vld [vmem:[%s7454_s11 + $0xb0] ss:$8 sps:$4 sm:$0xff]   ;;  %v5423_v33 = vld [vmem:[%s7454_s11 + $0xa4] ss:$8 sps:$4 sm:$0xff]  }
 0x1f6   : > { %v5420_v29 = vld [vmem:[%s7454_s11 + $0x1b4] ss:$8 sps:$4 sm:$0xff]   ;;  %v5418_v32 = vld [vmem:[%s7454_s11 + $0x1b0] ss:$8 sps:$4 sm:$0xff]   ;;  %v5426_v34 = vld [vmem:[%s7454_s11 + $0x1a4] ss:$8 sps:$4 sm:$0xff]  }
 0x1f7   : > { %1852 = vmatpush2.bf16.msra.mxu0 %v5335_v36  ;;  %1893 = vmatpush2.bf16.msra.mxu1 %v5336_v37  ;;  %v5421_v35 = vld [vmem:[%s7454_s11 + $0xa0] ss:$8 sps:$4 sm:$0xff]   ;;  %v5429_v37 = vld [vmem:[%s7454_s11 + $0x94] ss:$8 sps:$4 sm:$0xff]   ;;  %v5435_v42 = vld [vmem:[%s7454_s11 + $0x84] ss:$8 sps:$4 sm:$0xff]  }
 0x1f8   : > { %1853 = vmatprep.subr.bf16.mxu0 %v5337_v38  ;;  %1894 = vmatprep.subr.bf16.mxu1 %v5339_v39  ;;  %v5424_v36 = vld [vmem:[%s7454_s11 + $0x1a0] ss:$8 sps:$4 sm:$0xff]   ;;  %v5432_v38 = vld [vmem:[%s7454_s11 + $0x194] ss:$8 sps:$4 sm:$0xff]   ;;  %v5427_v39 = vld [vmem:[%s7454_s11 + $0x90] ss:$8 sps:$4 sm:$0xff]  }
 0x1f9   : > { %s7458_s9 = sld [smem:[#allocation72_spill]]  ;;  %s1544_s12 = scalar_lea.vmem [#allocation40], %s6900_s7 }
 0x1fa   : > { %s7459_s23 = sld [smem:[#allocation76_spill]]  ;;  %s7349_s29 = scalar_lea.vmem [#allocation37], %s6900_s7 }
 0x1fb   : > { %1854 = vmatpush2.bf16.msra.mxu0 %v5341_v40  ;;  %1895 = vmatpush2.bf16.msra.mxu1 %v5342_v41  ;;  %v5430_v40 = vld [vmem:[%s7454_s11 + $0x190] ss:$8 sps:$4 sm:$0xff]   ;;  %v5433_v41 = vld [vmem:[%s7454_s11 + $0x80] ss:$8 sps:$4 sm:$0xff]   ;;  %s7461_s28 = sld [smem:[#allocation79_spill]]  ;;  %p7468_p13 = scmp.ne.s32.totalorder %s7411_s1, 0 }
 0x1fc   : > { %2325 = vmatprep.subr.bf16.mxu0 %v5345_v43  ;;  %2366 = vmatprep.subr.bf16.mxu1 %v5348_v44  ;;  %v5436_v43 = vld [vmem:[%s7454_s11 + $0x180] ss:$8 sps:$4 sm:$0xff]   ;;  %v5438_v44 = vld [vmem:[%s7454_s11 + $0x184] ss:$8 sps:$4 sm:$0xff]   ;;  %s7462_s21 = sld [smem:[#allocation81_spill]] }
 0x1fd   : > { %s7463_s3 = sld [smem:[#allocation87_spill]] }
 0x1fe   : > { %1856 = vmatmul.mubr.bf16.vlgmr.msra.gmra.mxu0 %v1555_v45  ;;  %1897 = vmatmul.mubr.bf16.vlgmr.msra.gmra.mxu1 %v1555_v45  ;;  %v5439_v45 = vld [vmem:[%s7455_s16 + $0x78] sm:$0xff]   ;;  %s7464_s20 = sld [smem:[#allocation86_spill]] }
 0x1ff   : > { %2326 = vmatpush1.bf16.msra.mxu0 %v5343_v46  ;;  %2367 = vmatpush1.bf16.msra.mxu1 %v5346_v47  ;;  %v1599_v46 = vlaneseq  ;;  %s7465_s15 = sld [smem:[#allocation89_spill]] }
 0x200   : > { %2327 = vmatprep.subr.bf16.mxu0 %v5351_v48  ;;  %2368 = vmatprep.subr.bf16.mxu1 %v5354_v49  ;;  %s7460_s17 = smov %s7459_s23  ;;  %s7466_s25 = sld [smem:[#allocation88_spill]] }
 0x201   : > { %v1600_v47 = vshrl.u32 %v1599_v46, 7 }
 0x203   : > { %2328 = vmatpush1.bf16.msra.mxu0 %v5349_v50  ;;  %2369 = vmatpush1.bf16.msra.mxu1 %v5352_v51  ;;  %v7023_v48 = vsub.s32 0, %v1600_v47  ;;  %v1609_v49 = vsub.s32 2, %v1600_v47  ;;  %v1597_v50 = vld [vmem:[#allocation10] sm:$0xf]  ;;  %v7025_v51 = vsub.s32 1, %v1600_v47 }
 0x204   : > { %2329 = vmatprep.subr.bf16.mxu0 %v5357_v52  ;;  %2370 = vmatprep.subr.bf16.mxu1 %v5360_v53  ;;  %v1613_v52 = vsub.s32 3, %v1600_v47 }
 0x205   : > { %v1602_v53 = vrot.slane %v1597_v50, %v7023_v48 }
 0x207   : > { %2330 = vmatpush1.bf16.msra.mxu0 %v5355_v54  ;;  %2371 = vmatpush1.bf16.msra.mxu1 %v5358_v55  ;;  %v1610_v54 = vrot.slane %v1597_v50, %v1609_v49 }
 0x208   : > { %2331 = vmatprep.subr.bf16.mxu0 %v5363_v56  ;;  %2372 = vmatprep.subr.bf16.mxu1 %v5366_v57  ;;  %v1606_v57 = vrot.slane %v1597_v50, %v7025_v51 }
 0x20b   : > { %2332 = vmatpush1.bf16.msra.mxu0 %v5361_v58  ;;  %2373 = vmatpush1.bf16.msra.mxu1 %v5364_v59  ;;  %v1614_v58 = vrot.slane %v1597_v50, %v1613_v52 }
 0x20c   : > { %2333 = vmatprep.subr.bf16.mxu0 %v5369_v60  ;;  %2374 = vmatprep.subr.bf16.mxu1 %v5372_v61 }
 0x20f   : > { %2334 = vmatpush1.bf16.msra.mxu0 %v5367_v62  ;;  %2375 = vmatpush1.bf16.msra.mxu1 %v5370_v63 }
 0x210   : > { %2335 = vmatprep.subr.bf16.mxu0 %v5375_v0  ;;  %2376 = vmatprep.subr.bf16.mxu1 %v5378_v1 }
 0x213   : > { %2336 = vmatpush1.bf16.msra.mxu0 %v5373_v2  ;;  %2377 = vmatpush1.bf16.msra.mxu1 %v5376_v3 }
 0x214   : > { %2337 = vmatprep.subr.bf16.mxu0 %v5381_v4  ;;  %2378 = vmatprep.subr.bf16.mxu1 %v5384_v5 }
 0x217   : > { %2338 = vmatpush1.bf16.msra.mxu0 %v5379_v6  ;;  %2379 = vmatpush1.bf16.msra.mxu1 %v5382_v7 }
 0x218   : > { %2339 = vmatprep.subr.bf16.mxu0 %v5387_v8  ;;  %2380 = vmatprep.subr.bf16.mxu1 %v5390_v9 }
 0x21b   : > { %2340 = vmatpush1.bf16.msra.mxu0 %v5385_v10  ;;  %2381 = vmatpush1.bf16.msra.mxu1 %v5388_v11 }
 0x21c   : > { %2341 = vmatprep.subr.bf16.mxu0 %v5393_v12  ;;  %2382 = vmatprep.subr.bf16.mxu1 %v5396_v13 }
 0x21f   : > { %2342 = vmatpush2.bf16.msra.mxu0 %v5391_v14  ;;  %2383 = vmatpush2.bf16.msra.mxu1 %v5394_v15 }
 0x220   : > { %2343 = vmatprep.subr.bf16.mxu0 %v5399_v16  ;;  %2384 = vmatprep.subr.bf16.mxu1 %v5402_v17 }
 0x223   : > { %2344 = vmatpush2.bf16.msra.mxu0 %v5397_v18  ;;  %2385 = vmatpush2.bf16.msra.mxu1 %v5400_v19 }
 0x224   : > { %2345 = vmatprep.subr.bf16.mxu0 %v5405_v20  ;;  %2386 = vmatprep.subr.bf16.mxu1 %v5408_v21 }
 0x227   : > { %2346 = vmatpush2.bf16.msra.mxu0 %v5403_v22  ;;  %2387 = vmatpush2.bf16.msra.mxu1 %v5406_v23  ;;  %v5440_v22 = vld [vmem:[%s7455_s16 + $0x38] sm:$0xff]  }
 0x228   : > { %2347 = vmatprep.subr.bf16.mxu0 %v5411_v24  ;;  %2388 = vmatprep.subr.bf16.mxu1 %v5414_v25 }
 0x22b   : > { %2348 = vmatpush2.bf16.msra.mxu0 %v5409_v26  ;;  %2389 = vmatpush2.bf16.msra.mxu1 %v5412_v27  ;;  %v5441_v26 = vld [vmem:[%s7455_s16 + $0x70] sm:$0xff]  }
 0x22c   : > { %2349 = vmatprep.subr.bf16.mxu0 %v5417_v28  ;;  %2390 = vmatprep.subr.bf16.mxu1 %v5420_v29  ;;  %v5442_v27 = vld [vmem:[%s7455_s16 + $0x30] sm:$0xff]   ;;  %v5443_v28 = vld [vmem:[%s7455_s16 + $0x68] sm:$0xff]  }
 0x22d   : > { %v5444_v29 = vld [vmem:[%s7455_s16 + $0x28] sm:$0xff]  }
 0x22f   : > { %2350 = vmatpush2.bf16.msra.mxu0 %v5415_v30  ;;  %2391 = vmatpush2.bf16.msra.mxu1 %v5418_v32  ;;  %v5445_v30 = vld [vmem:[%s7455_s16 + $0x60] sm:$0xff]  }
 0x230   : > { %2351 = vmatprep.subr.bf16.mxu0 %v5423_v33  ;;  %2392 = vmatprep.subr.bf16.mxu1 %v5426_v34  ;;  %v5446_v32 = vld [vmem:[%s7455_s16 + $0x20] sm:$0xff]   ;;  %v5447_v33 = vld [vmem:[%s7455_s16 + $0x58] sm:$0xff]  }
 0x231   : > { %v5448_v34 = vld [vmem:[%s7455_s16 + $0x18] sm:$0xff]  }
 0x233   : > { %2352 = vmatpush2.bf16.msra.mxu0 %v5421_v35  ;;  %2393 = vmatpush2.bf16.msra.mxu1 %v5424_v36  ;;  %v5449_v35 = vld [vmem:[%s7455_s16 + $0x50] sm:$0xff]  }
 0x234   : > { %2353 = vmatprep.subr.bf16.mxu0 %v5429_v37  ;;  %2394 = vmatprep.subr.bf16.mxu1 %v5432_v38  ;;  %v5450_v36 = vld [vmem:[%s7455_s16 + $0x10] sm:$0xff]   ;;  %v5451_v37 = vld [vmem:[%s7455_s16 + $0x48] sm:$0xff]  }
 0x235   : > { %v5452_v38 = vld [vmem:[%s7455_s16 + $0x8] sm:$0xff]  }
 0x237   : > { %2354 = vmatpush2.bf16.msra.mxu0 %v5427_v39  ;;  %2395 = vmatpush2.bf16.msra.mxu1 %v5430_v40  ;;  %v5453_v39 = vld [vmem:[%s7455_s16 + $0x40] sm:$0xff]  }
 0x238   : > { %2355 = vmatprep.subr.bf16.mxu0 %v5435_v42  ;;  %2396 = vmatprep.subr.bf16.mxu1 %v5438_v44  ;;  %v5454_v40 = vld [vmem:[%s7455_s16] sm:$0xff]  }
 0x23b   : > { %2356 = vmatpush2.bf16.msra.mxu0 %v5433_v41  ;;  %2397 = vmatpush2.bf16.msra.mxu1 %v5436_v43  ;;  %v1993_v41 = vld [vmem:[#allocation11] sm:$0x3] }
 0x23c   : > { %4697 = vmatprep.subr.bf16.mxu0 %v5439_v45  ;;  %v1998_v42 = vrot.slane %v1993_v41, %v7023_v48  ;;  %v2002_v43 = vrot.slane %v1993_v41, %v7025_v51 }
 0x2be   : > { %v1857_v55 = vpop.f32.mrf.mxu0  ;;  %v1898_v56 = vpop.f32.mrf.mxu1 }
 0x2bf   : > { %v1858_v59 = vadd.f32 %v1857_v55, %v1602_v53  ;;  %v1899_v60 = vadd.f32 %v1898_v56, %v1610_v54 }
 0x2c0   : > { %v1859_v61 = vpop.f32.mrf.mxu0  ;;  %v1900_v62 = vpop.f32.mrf.mxu1 }
 0x2c1   : > { %v1909_v63 = vmul.f32 1.442695, %v1858_v59  ;;  %v1913_v0 = vmul.f32 1.442695, %v1899_v60  ;;  %v1860_v1 = vadd.f32 %v1859_v61, %v1606_v57  ;;  %v1901_v2 = vadd.f32 %v1900_v62, %v1614_v58 }
 0x2c2   : > { %v1861_v3 = vpop.f32.mrf.mxu0  ;;  %v1902_v4 = vpop.f32.mrf.mxu1  ;;  %vm1905_vm1 = vcmp.gt.f32.partialorder %v1858_v59, 0.0  ;;  %vm1907_vm2 = vcmp.gt.f32.partialorder %v1899_v60, 0.0 }
 0x2c3   : > { %5530 = vpow2.f32 %v1909_v63  ;;  %v1911_v5 = vmul.f32 1.442695, %v1860_v1  ;;  %v1915_v8 = vmul.f32 1.442695, %v1901_v2  ;;  %vm1906_vm3 = vcmp.gt.f32.partialorder %v1860_v1, 0.0 }
 0x2c4   : > { %5532 = vpow2.f32 %v1913_v0  ;;  %v1862_v6 = vpop.f32.mrf.mxu0  ;;  %v1903_v7 = vpop.f32.mrf.mxu1  ;;  %vm1908_vm4 = vcmp.gt.f32.partialorder %v1901_v2, 0.0  ;;  %v5457_v4 = vld [vmem:[#allocation13 + $0x34] ss:$8 sps:$4 sm:$0xff]  }
 0x2c5   : > { %5534 = vpow2.f32 %v1911_v5  ;;  %v5455_v5 = vld [vmem:[#allocation13 + $0x30] ss:$8 sps:$4 sm:$0xff]   ;;  %2672 = vmatprep.subr.bf16.mxu1 %v5457_v4  ;;  %v5460_v6 = vld [vmem:[#allocation13 + $0x24] ss:$8 sps:$4 sm:$0xff]   ;;  %v5458_v7 = vld [vmem:[#allocation13 + $0x20] ss:$8 sps:$4 sm:$0xff]  }
 0x2c6   : > { %5536 = vpow2.f32 %v1915_v8  ;;  %v5463_v8 = vld [vmem:[#allocation13 + $0x14] ss:$8 sps:$4 sm:$0xff]  }
 0x2d0   : > { %v5531_v9 = vpop.eup %5530 }
 0x2d1   : > { %v5533_v10 = vpop.eup %5532  ;;  %v4497_v11 = vadd.f32 -1.0, %v5531_v9  ;;  %v5461_v9 = vld [vmem:[#allocation13 + $0x10] ss:$8 sps:$4 sm:$0xff]  }
 0x2d2   : > { %v4499_v12 = vadd.f32 -1.0, %v5533_v10  ;;  %v5535_v13 = vpop.eup %5534  ;;  %v5466_v10 = vld [vmem:[#allocation13 + $0x4] ss:$8 sps:$4 sm:$0xff]  }
 0x2d3   : > { %v5537_v14 = vpop.eup %5536  ;;  %v4498_v15 = vadd.f32 -1.0, %v5535_v13  ;;  %v1921_v16 = vsel %vm1905_vm1, %v1858_v59, %v4497_v11  ;;  %v5464_v11 = vld [vmem:[#allocation13] ss:$8 sps:$4 sm:$0xff]   ;;  %vm3583_vm1 = vcmask 392192  }
 0x2d4   : > { %v4500_v17 = vadd.f32 -1.0, %v5537_v14  ;;  %v1923_v18 = vsel %vm1907_vm2, %v1899_v60, %v4499_v12  ;;  %v1925_v23 = vpack.c.bf16 %v1921_v16, %v1921_v16  ;;  %v6405_v12 = vmov 0   ;;  %v4567_v14 = vld [vmem:[%s7456_s14] ss:$0 sm:$0xff]  ;;  %s7216_s14 = sshll.u32 %s6638_s2, 7 }
 0x2d5   : > { %v1922_v19 = vsel %vm1906_vm3, %v1860_v1, %v4498_v15  ;;  %v1927_v25 = vpack.c.bf16 %v1923_v18, %v1923_v18 }
 0x2d6   : > { %v1926_v20 = vpack.c.bf16 %v1922_v19, %v1922_v19  ;;  %v1924_v21 = vsel %vm1908_vm4, %v1901_v2, %v4500_v17 }
 0x2d7   : > { %v1928_v24 = vpack.c.bf16 %v1924_v21, %v1924_v21 }
 0x2d8   : > { %2357 = vmatprep.mubr.bf16.mxu0 %v1926_v20 }
 0x2d9   : > { %2398 = vmatprep.mubr.bf16.mxu1 %v1928_v24  ;;  %2358 = vmatmul.mubr.bf16.vlgmr.msra.gmra.mxu0 %v1925_v23 }
 0x2da   : > { %2399 = vmatmul.mubr.bf16.vlgmr.msra.gmra.mxu1 %v1927_v25  ;;  %4698 = vmatpush3.bf16.msra.mxu0 %v5440_v22  ;;  %v5467_v25 = vld [vmem:[#allocation16 + $0x38] sm:$0xff]  }
 0x2db   : > { %4699 = vmatprep.subr.bf16.mxu0 %v5441_v26  ;;  %2673 = vmatpush1.bf16.msra.mxu1 %v5455_v5  ;;  %v6406_v26 = vmov 0.0  }
 0x2dc   : > { %2674 = vmatprep.subr.bf16.mxu1 %v5460_v6  ;;  %2696 = vmatprep.mubr.bf16.mxu1 %v6405_v12  ;;  %v4604_v12 = vld [vmem:[#allocation19] ss:$0 sm:$0xff] }
 0x2de   : > { %4700 = vmatpush3.bf16.msra.mxu0 %v5442_v27  ;;  %v5468_v27 = vld [vmem:[#allocation16 + $0x30] sm:$0xff]  }
 0x2df   : > { %4701 = vmatprep.subr.bf16.mxu0 %v5443_v28  ;;  %2675 = vmatpush1.bf16.msra.mxu1 %v5458_v7  ;;  %v5469_v28 = vld [vmem:[#allocation16 + $0x28] sm:$0xff]  }
 0x2e0   : > { %2676 = vmatprep.subr.bf16.mxu1 %v5463_v8  ;;  %v5483_v8 = vld [vmem:[%s7458_s9 + $0x18] sm:$0xff]  }
 0x2e2   : > { %4702 = vmatpush3.bf16.msra.mxu0 %v5444_v29  ;;  %v5470_v29 = vld [vmem:[#allocation16 + $0x20] sm:$0xff]  }
 0x2e3   : > { %4703 = vmatprep.subr.bf16.mxu0 %v5445_v30  ;;  %2677 = vmatpush1.bf16.msra.mxu1 %v5461_v9  ;;  %v5471_v30 = vld [vmem:[#allocation16 + $0x18] sm:$0xff]   ;;  %v5484_v9 = vld [vmem:[%s7458_s9 + $0x10] sm:$0xff]  }
 0x2e4   : > { %2678 = vmatprep.subr.bf16.mxu1 %v5466_v10  ;;  %v5485_v10 = vld [vmem:[%s7458_s9 + $0x8] sm:$0xff]  }
 0x2e6   : > { %4704 = vmatpush3.bf16.msra.mxu0 %v5446_v32  ;;  %v5472_v32 = vld [vmem:[#allocation16 + $0x10] sm:$0xff]  }
 0x2e7   : > { %4705 = vmatprep.subr.bf16.mxu0 %v5447_v33  ;;  %2679 = vmatpush1.bf16.msra.mxu1 %v5464_v11  ;;  %v5473_v33 = vld [vmem:[#allocation16 + $0x8] sm:$0xff]   ;;  %v5486_v11 = vld [vmem:[%s7458_s9] sm:$0xff]  }
 0x2e8   : > { %4795 = vmatprep.subr.bf16.mxu1 %v6406_v26 }
 0x2ea   : > { %4706 = vmatpush3.bf16.msra.mxu0 %v5448_v34  ;;  %v5474_v34 = vld [vmem:[#allocation16] sm:$0xff]  }
 0x2eb   : > { %4707 = vmatprep.subr.bf16.mxu0 %v5449_v35  ;;  %v5475_v35 = vld [vmem:[%s7457_s24 + $0x38] sm:$0xff]  }
 0x2ee   : > { %4708 = vmatpush3.bf16.msra.mxu0 %v5450_v36  ;;  %v5476_v36 = vld [vmem:[%s7457_s24 + $0x30] sm:$0xff]  }
 0x2ef   : > { %4709 = vmatprep.subr.bf16.mxu0 %v5451_v37  ;;  %v2608_v37 = vld [vmem:[#allocation14] sm:$0x3] }
 0x2f2   : > { %4710 = vmatpush3.bf16.msra.mxu0 %v5452_v38  ;;  %v2617_v38 = vrot.slane %v2608_v37, %v7025_v51 }
 0x2f3   : > { %4711 = vmatprep.subr.bf16.mxu0 %v5453_v39 }
 0x2f6   : > { %4712 = vmatpush3.bf16.msra.mxu0 %v5454_v40 }
 0x2f7   : > { %4815 = vmatprep.subr.bf16.mxu0 %v6406_v26 }
 0x399   : > { %v2359_v44 = vpop.f32.mrf.mxu0 }
 0x39a   : > { %v2360_v45 = vadd.f32 %v2359_v44, %v1998_v42  ;;  %v2400_v46 = vpop.f32.mrf.mxu1 }
 0x39b   : > { %v2361_v47 = vpop.f32.mrf.mxu0 }
 0x39c   : > { %v2401_v49 = vadd.f32 %v2400_v46, %v2360_v45  ;;  %v2362_v50 = vadd.f32 %v2361_v47, %v2002_v43  ;;  %v2402_v52 = vpop.f32.mrf.mxu1 }
 0x39d   : > { %v2363_v53 = vpop.f32.mrf.mxu0 }
 0x39e   : > { %v2409_v54 = vmul.f32 1.442695, %v2401_v49  ;;  %v2403_v55 = vadd.f32 %v2402_v52, %v2362_v50  ;;  %v2404_v56 = vpop.f32.mrf.mxu1  ;;  %vm2407_vm5 = vcmp.gt.f32.partialorder %v2401_v49, 0.0  ;;  %v2707_v50 = vld [vmem:[%s1347_s6] sm:$0xff]  ;;  %s7467_s6 = sld [smem:[#allocation90_spill]] }
 0x39f   : > { %v2364_v57 = vpop.f32.mrf.mxu0  ;;  %v5478_v56 = vld [vmem:[%s7457_s24 + $0x20] sm:$0xff]  }
 0x3a0   : > { %5538 = vpow2.f32 %v2409_v54  ;;  %v2411_v58 = vmul.f32 1.442695, %v2403_v55  ;;  %v2405_v59 = vpop.f32.mrf.mxu1  ;;  %vm2408_vm6 = vcmp.gt.f32.partialorder %v2403_v55, 0.0  ;;  %v5479_v57 = vld [vmem:[%s7457_s24 + $0x18] sm:$0xff]  }
 0x3a1   : > { %v5481_v59 = vld [vmem:[%s7457_s24 + $0x8] sm:$0xff]  }
 0x3a2   : > { %5540 = vpow2.f32 %v2411_v58  ;;  %v5480_v58 = vld [vmem:[%s7457_s24 + $0x10] sm:$0xff]  }
 0x3ad   : > { %v5539_v60 = vpop.eup %5538 }
 0x3ae   : > { %v4565_v61 = vadd.f32 -1.0, %v5539_v60  ;;  %v5482_v60 = vld [vmem:[%s7457_s24] sm:$0xff]  }
 0x3af   : > { %v5541_v62 = vpop.eup %5540 }
 0x3b0   : > { %v4566_v63 = vadd.f32 -1.0, %v5541_v62  ;;  %v2415_v0 = vsel %vm2407_vm5, %v2401_v49, %v4565_v61  ;;  %v2613_v49 = vrot.slane %v2608_v37, %v7023_v48  ;;  %v5477_v48 = vld [vmem:[%s7457_s24 + $0x28] sm:$0xff]  }
 0x3b1   : > { %v2417_v3 = vpack.c.bf16 %v2415_v0, %v2415_v0  ;;  %v4594_v61 = vld [vmem:[#allocation17] ss:$0 sm:$0xff] }
 0x3b2   : > { %v2416_v1 = vsel %vm2408_vm6, %v2403_v55, %v4566_v63 }
 0x3b3   : > { %v2418_v2 = vpack.c.bf16 %v2416_v1, %v2416_v1 }
 0x3b5   : > { %2586 = vmatprep.mubr.bf16.mxu0 %v2418_v2 }
 0x3b6   : > { %2587 = vmatmul.mubr.bf16.vlgmr.msra.gmra.mxu0 %v2417_v3 }
 0x3b7   : > { %4831 = vmatprep.mubr.msk.bf16.mxu0 %vm6407_vm9, %v6406_v26  ;;  %4816 = vmatpush3.bf16.msra.mxu0 %v5475_v35 }
 0x3b8   : > { %4817 = vmatprep.subr.bf16.mxu0 %v6406_v26 }
 0x3bb   : > { %4818 = vmatpush3.bf16.msra.mxu0 %v5476_v36 }
 0x3bc   : > { %4819 = vmatprep.subr.bf16.mxu0 %v6406_v26 }
 0x3bf   : > { %4820 = vmatpush3.bf16.msra.mxu0 %v5477_v48  ;;  %v5503_v48 = vld [vmem:[%s7461_s28 + $0x18] sm:$0xff]  }
 0x3c0   : > { %4821 = vmatprep.subr.bf16.mxu0 %v6406_v26 }
 0x3c3   : > { %4822 = vmatpush3.bf16.msra.mxu0 %v5478_v56  ;;  %v5504_v56 = vld [vmem:[%s7461_s28 + $0x10] sm:$0xff]  }
 0x3c4   : > { %4823 = vmatprep.subr.bf16.mxu0 %v6406_v26 }
 0x3c7   : > { %4824 = vmatpush3.bf16.msra.mxu0 %v5479_v57  ;;  %v5505_v57 = vld [vmem:[%s7461_s28 + $0x8] sm:$0xff]  }
 0x3c8   : > { %4825 = vmatprep.subr.bf16.mxu0 %v6406_v26 }
 0x3cb   : > { %4826 = vmatpush3.bf16.msra.mxu0 %v5480_v58  ;;  %v5506_v58 = vld [vmem:[%s7461_s28] sm:$0xff]  }
 0x3cc   : > { %4827 = vmatprep.subr.bf16.mxu0 %v6406_v26 }
 0x3cf   : > { %4828 = vmatpush3.bf16.msra.mxu0 %v5481_v59  ;;  %v4621_v59 = vld [vmem:[#allocation23] ss:$0 sm:$0xff] }
 0x3d0   : > { %4829 = vmatprep.subr.bf16.mxu0 %v6406_v26 }
 0x3d3   : > { %4830 = vmatpush3.bf16.msra.mxu0 %v5482_v60 }
 0x3d4   : > { %4847 = vmatprep.subr.bf16.mxu0 %v6406_v26 }
 0x476   : > { %v4713_v13 = vpop.f32.mrf.mxu0 }
 0x478   : > { %v4714_v15 = vpop.f32.mrf.mxu0 }
 0x479   : > { %v4715_v16 = vadd.f32 %v4714_v15, %v4713_v13 }
 0x47a   : > { %v4716_v17 = vpop.f32.mrf.mxu0 }
 0x47b   : > { %v2589_v18 = vadd.f32 %v4715_v16, %v4567_v14 }
 0x47c   : > { %v4717_v19 = vpop.f32.mrf.mxu0 }
 0x47d   : > { %v2595_v20 = vmul.f32 1.442695, %v2589_v18  ;;  %vm2594_vm7 = vcmp.gt.f32.partialorder %v2589_v18, 0.0 }
 0x47f   : > { %5542 = vpow2.f32 %v2595_v20 }
 0x48c   : > { %v5543_v21 = vpop.eup %5542 }
 0x48d   : > { %v4584_v22 = vadd.f32 -1.0, %v5543_v21 }
 0x48f   : > { %v2598_v23 = vsel %vm2594_vm7, %v2589_v18, %v4584_v22 }
 0x490   : > { %v2599_v24 = vpack.c.bf16 %v2598_v23, %v2598_v23  ;;  %v5487_v23 = vld [vmem:[#allocation22 + $0x8] sm:$0xff]  }
 0x492   : > { %4593 = vmatmul.mubr.msk.bf16.vlgmr.msra.gmra.mxu1 %vm2660_vm8, %v2599_v24  ;;  %v5488_v24 = vld [vmem:[#allocation22] sm:$0xff]  }
 0x493   : > { %4796 = vmatpush3.bf16.msra.mxu1 %v5467_v25  ;;  %4811 = vmatprep.mubr.msk.bf16.mxu1 %vm6407_vm9, %v6406_v26  ;;  %v5494_v25 = vld [vmem:[#allocation25 + $0x8] sm:$0xff]  }
 0x494   : > { %4797 = vmatprep.subr.bf16.mxu1 %v6406_v26 }
 0x497   : > { %4798 = vmatpush3.bf16.msra.mxu1 %v5468_v27  ;;  %v5496_v27 = vld [vmem:[#allocation25] sm:$0xff]  }
 0x498   : > { %4799 = vmatprep.subr.bf16.mxu1 %v6406_v26 }
 0x49b   : > { %4800 = vmatpush3.bf16.msra.mxu1 %v5469_v28  ;;  %v4614_v28 = vld [vmem:[#allocation20] ss:$0 sm:$0xff] }
 0x49c   : > { %4801 = vmatprep.subr.bf16.mxu1 %v6406_v26 }
 0x49f   : > { %4802 = vmatpush3.bf16.msra.mxu1 %v5470_v29 }
 0x4a0   : > { %4803 = vmatprep.subr.bf16.mxu1 %v6406_v26 }
 0x4a3   : > { %4804 = vmatpush3.bf16.msra.mxu1 %v5471_v30 }
 0x4a4   : > { %4805 = vmatprep.subr.bf16.mxu1 %v6406_v26 }
 0x4a7   : > { %4806 = vmatpush3.bf16.msra.mxu1 %v5472_v32 }
 0x4a8   : > { %4807 = vmatprep.subr.bf16.mxu1 %v6406_v26 }
 0x4ab   : > { %4808 = vmatpush3.bf16.msra.mxu1 %v5473_v33 }
 0x4ac   : > { %4809 = vmatprep.subr.bf16.mxu1 %v6406_v26 }
 0x4af   : > { %4810 = vmatpush3.bf16.msra.mxu1 %v5474_v34 }
 0x4b0   : > { %4835 = vmatprep.subr.bf16.mxu1 %v6406_v26 }
 0x552   : > { %v2698_v39 = vpop.f32.mrf.mxu1 }
 0x553   : > { %v2699_v52 = vadd.f32 %v2698_v39, %v2613_v49  ;;  %v5500_v49 = vld [vmem:[%s7461_s28 + $0x30] sm:$0xff]  }
 0x554   : > { %v2700_v40 = vpop.f32.mrf.mxu1 }
 0x555   : > { %v2701_v41 = vadd.f32 %v2700_v40, %v2617_v38  ;;  %v5490_v40 = vld [vmem:[%s7460_s17 + $0x30] sm:$0xff]  }
 0x556   : > { %v2702_v42 = vpop.f32.mrf.mxu1 }
 0x557   : > { %v2705_v43 = vmax.f32 %v2701_v41, -20.0  ;;  %v5491_v41 = vld [vmem:[%s7460_s17 + $0x28] sm:$0xff]   ;;  %v5492_v42 = vld [vmem:[%s7460_s17 + $0x20] sm:$0xff]  }
 0x558   : > { %v2703_v44 = vpop.f32.mrf.mxu1 }
 0x559   : > { %v2706_v45 = vmin.f32 %v2705_v43, 4.0  ;;  %v5493_v43 = vld [vmem:[%s7460_s17 + $0x18] sm:$0xff]   ;;  %v5495_v44 = vld [vmem:[%s7460_s17 + $0x10] sm:$0xff]  }
 0x55b   : > { %v2708_v46 = vmul.f32 0.5, %v2706_v45  ;;  %v5497_v45 = vld [vmem:[%s7460_s17 + $0x8] sm:$0xff]  }
 0x55d   : > { %v2709_v47 = vmul.f32 1.442695, %v2708_v46  ;;  %v5498_v46 = vld [vmem:[%s7460_s17] sm:$0xff]  }
 0x55f   : > { %5544 = vpow2.f32 %v2709_v47  ;;  %v5499_v47 = vld [vmem:[%s7461_s28 + $0x38] sm:$0xff]  }
 0x56c   : > { %v5545_v51 = vpop.eup %5544 }
 0x56d   : > { %v2711_v53 = vmul.f32 %v5545_v51, %v2707_v50 }
 0x56f   : > { %v2712_v54 = vadd.f32 %v2711_v53, %v2699_v52 }
 0x571   : > { %v7070_v55 = vpack.c.bf16 %v2712_v54, %v2712_v54  ;;  %2713 = vst [vmem:[%s1537_s18] sm:$0xff] %v2712_v54  ;;  %v5501_v54 = vld [vmem:[%s7461_s28 + $0x28] sm:$0xff]  }
 0x573   : > { %4812 = vmatmul.mubr.bf16.vlgmr.msra.gmra.mxu1 %v7070_v55 }
 0x574   : > { %4843 = vmatprep.mubr.msk.bf16.mxu1 %vm6407_vm9, %v6406_v26  ;;  %4836 = vmatpush3.bf16.msra.mxu1 %v5483_v8 }
 0x575   : > { %4837 = vmatprep.subr.bf16.mxu1 %v6406_v26 }
 0x578   : > { %4838 = vmatpush3.bf16.msra.mxu1 %v5484_v9 }
 0x579   : > { %4839 = vmatprep.subr.bf16.mxu1 %v6406_v26 }
 0x57c   : > { %4840 = vmatpush3.bf16.msra.mxu1 %v5485_v10 }
 0x57d   : > { %4841 = vmatprep.subr.bf16.mxu1 %v6406_v26 }
 0x580   : > { %4842 = vmatpush3.bf16.msra.mxu1 %v5486_v11 }
 0x581   : > { %4855 = vmatprep.subr.bf16.mxu1 %v6406_v26 }
 0x633   : > { %v2820_v62 = vpop.f32.mrf.mxu1 }
 0x634   : > { %v2821_v63 = vadd.f32 %v4594_v61, %v2820_v62 }
 0x635   : > { %v4813_v0 = vpop.f32.mrf.mxu1 }
 0x636   : > { %v2827_v1 = vmul.f32 1.442695, %v2821_v63  ;;  %vm2826_vm10 = vcmp.gt.f32.partialorder %v2821_v63, 0.0 }
 0x637   : > { %v2823_v2 = vpop.f32.mrf.mxu1 }
 0x638   : > { %5546 = vpow2.f32 %v2827_v1  ;;  %v4636_v2 = vld [vmem:[#allocation26] ss:$0 sm:$0xff] }
 0x639   : > { %v4814_v3 = vpop.f32.mrf.mxu1 }
 0x645   : > { %v5547_v4 = vpop.eup %5546 }
 0x646   : > { %v4603_v5 = vadd.f32 -1.0, %v5547_v4 }
 0x648   : > { %v2830_v6 = vsel %vm2826_vm10, %v2821_v63, %v4603_v5 }
 0x649   : > { %v2831_v7 = vpack.c.bf16 %v2830_v6, %v2830_v6 }
 0x64b   : > { %4832 = vmatmul.mubr.bf16.vlgmr.msra.gmra.mxu0 %v2831_v7 }
 0x64c   : > { %4851 = vmatprep.mubr.msk.bf16.mxu0 %vm6407_vm9, %v6406_v26  ;;  %4848 = vmatpush3.bf16.msra.mxu0 %v5487_v23 }
 0x64d   : > { %4849 = vmatprep.subr.bf16.mxu0 %v6406_v26 }
 0x650   : > { %4850 = vmatpush3.bf16.msra.mxu0 %v5488_v24 }
 0x651   : > { %4863 = vmatprep.subr.bf16.mxu0 %v6406_v26 }
 0x70b   : > { %v2937_v13 = vpop.f32.mrf.mxu0 }
 0x70c   : > { %v2938_v14 = vadd.f32 %v4604_v12, %v2937_v13  ;;  %v5507_v13 = vld [vmem:[%s7462_s21 + $0x18] sm:$0xff]  }
 0x70d   : > { %v4833_v15 = vpop.f32.mrf.mxu0 }
 0x70e   : > { %v2944_v16 = vmul.f32 1.442695, %v2938_v14  ;;  %vm2943_vm11 = vcmp.gt.f32.partialorder %v2938_v14, 0.0  ;;  %v5509_v15 = vld [vmem:[%s7462_s21 + $0x8] sm:$0xff]  }
 0x70f   : > { %v2940_v17 = vpop.f32.mrf.mxu0 }
 0x710   : > { %5548 = vpow2.f32 %v2944_v16  ;;  %v5510_v16 = vld [vmem:[%s7462_s21] sm:$0xff]   ;;  %v4638_v17 = vld [vmem:[#allocation28] ss:$0 sm:$0xff] }
 0x711   : > { %v4834_v18 = vpop.f32.mrf.mxu0 }
 0x71d   : > { %v5549_v19 = vpop.eup %5548 }
 0x71e   : > { %v4613_v20 = vadd.f32 -1.0, %v5549_v19 }
 0x720   : > { %v2947_v21 = vsel %vm2943_vm11, %v2938_v14, %v4613_v20  ;;  %v5508_v14 = vld [vmem:[%s7462_s21 + $0x10] sm:$0xff]  }
 0x721   : > { %v2948_v22 = vpack.c.bf16 %v2947_v21, %v2947_v21 }
 0x723   : > { %4844 = vmatmul.mubr.msk.bf16.vlgmr.msra.gmra.mxu1 %vm2660_vm8, %v2948_v22 }
 0x724   : > { %4859 = vmatprep.mubr.msk.bf16.mxu1 %vm6407_vm9, %v6406_v26  ;;  %4856 = vmatpush3.bf16.msra.mxu1 %v5494_v25 }
 0x725   : > { %4857 = vmatprep.subr.bf16.mxu1 %v6406_v26 }
 0x728   : > { %4858 = vmatpush3.bf16.msra.mxu1 %v5496_v27 }
 0x729   : > { %4883 = vmatprep.subr.bf16.mxu1 %v6406_v26 }
 0x72b   : > { %4860 = vmatmul.mubr.msk.bf16.vlgmr.msra.gmra.mxu1 %vm1819_vm0, %v6951_v31  ;;  %v5489_v31 = vld [vmem:[%s7459_s23 + $0x38] sm:$0xff]   ;;  %s3947_s23 = sshll.u32 %s1537_s18, 4  ;;  %s3948_s23 = int_to_ptr.vmem [resolvable:$true] %s3947_s23 }
 0x72c   : > { %4899 = vmatprep.mubr.msk.bf16.mxu1 %vm6407_vm9, %v6406_v26  ;;  %4884 = vmatpush3.bf16.msra.mxu1 %v5499_v47  ;;  %v5516_v47 = vld [vmem:[%s7463_s3 + $0x38] sm:$0xff]  }
 0x72d   : > { %4885 = vmatprep.subr.bf16.mxu1 %v6406_v26 }
 0x730   : > { %4886 = vmatpush3.bf16.msra.mxu1 %v5500_v49  ;;  %v5517_v49 = vld [vmem:[%s7463_s3 + $0x30] sm:$0xff]  }
 0x731   : > { %4887 = vmatprep.subr.bf16.mxu1 %v6406_v26 }
 0x734   : > { %4888 = vmatpush3.bf16.msra.mxu1 %v5501_v54  ;;  %v5522_v54 = vld [vmem:[%s7463_s3 + $0x8] sm:$0xff]  }
 0x735   : > { %4889 = vmatprep.subr.bf16.mxu1 %v6406_v26 }
 0x7e3   : > { %v3025_v29 = vpop.f32.mrf.mxu1 }
 0x7e4   : > { %v3026_v30 = vadd.f32 %v4614_v28, %v3025_v29  ;;  %v5511_v29 = vld [vmem:[#allocation31 + $0x8] sm:$0xff]  }
 0x7e5   : > { %v4845_v32 = vpop.f32.mrf.mxu1 }
 0x7e6   : > { %v3032_v33 = vmul.f32 1.442695, %v3026_v30  ;;  %vm3031_vm12 = vcmp.gt.f32.partialorder %v3026_v30, 0.0  ;;  %v4648_v32 = vld [vmem:[#allocation29] ss:$0 sm:$0xff] }
 0x7e7   : > { %v3028_v34 = vpop.f32.mrf.mxu1 }
 0x7e8   : > { %5550 = vpow2.f32 %v3032_v33 }
 0x7e9   : > { %v4846_v35 = vpop.f32.mrf.mxu1 }
 0x7eb   : > { %v3170_v50 = vpop.f32.mrf.mxu1 }
 0x7ed   : > { %v4861_v51 = vpop.f32.mrf.mxu1 }
 0x7ee   : > { %v5519_v51 = vld [vmem:[%s7463_s3 + $0x20] sm:$0xff]  }
 0x7ef   : > { %v3173_v52 = vpop.f32.mrf.mxu1 }
 0x7f0   : > { %v5520_v52 = vld [vmem:[%s7463_s3 + $0x18] sm:$0xff]  }
 0x7f1   : > { %v4862_v53 = vpop.f32.mrf.mxu1 }
 0x7f2   : > { %v5521_v53 = vld [vmem:[%s7463_s3 + $0x10] sm:$0xff]  }
 0x7f5   : > { %v5551_v36 = vpop.eup %5550 }
 0x7f6   : > { %v4620_v37 = vadd.f32 -1.0, %v5551_v36 }
 0x7f8   : > { %v3035_v38 = vsel %vm3031_vm12, %v3026_v30, %v4620_v37  ;;  %v5512_v30 = vld [vmem:[#allocation31] sm:$0xff]  }
 0x7f9   : > { %v3036_v39 = vpack.c.bf16 %v3035_v38, %v3035_v38 }
 0x7fb   : > { %4852 = vmatmul.mubr.msk.bf16.vlgmr.msra.gmra.mxu0 %vm1819_vm0, %v3036_v39 }
 0x7fc   : > { %4864 = vmatpush3.bf16.msra.mxu0 %v5489_v31  ;;  %4879 = vmatprep.mubr.msk.bf16.mxu0 %vm6407_vm9, %v6406_v26 }
 0x7fd   : > { %4865 = vmatprep.subr.bf16.mxu0 %v6406_v26 }
 0x800   : > { %4866 = vmatpush3.bf16.msra.mxu0 %v5490_v40 }
 0x801   : > { %4867 = vmatprep.subr.bf16.mxu0 %v6406_v26 }
 0x804   : > { %4868 = vmatpush3.bf16.msra.mxu0 %v5491_v41  ;;  %v5513_v41 = vld [vmem:[#allocation34 + $0x10] sm:$0xff]  }
 0x805   : > { %4869 = vmatprep.subr.bf16.mxu0 %v6406_v26 }
 0x808   : > { %4870 = vmatpush3.bf16.msra.mxu0 %v5492_v42 }
 0x809   : > { %4871 = vmatprep.subr.bf16.mxu0 %v6406_v26 }
 0x80c   : > { %4872 = vmatpush3.bf16.msra.mxu0 %v5493_v43  ;;  %v5514_v43 = vld [vmem:[#allocation34 + $0x8] sm:$0xff]  }
 0x80d   : > { %4873 = vmatprep.subr.bf16.mxu0 %v6406_v26 }
 0x810   : > { %4874 = vmatpush3.bf16.msra.mxu0 %v5495_v44  ;;  %v5515_v44 = vld [vmem:[#allocation34] sm:$0xff]  }
 0x811   : > { %4875 = vmatprep.subr.bf16.mxu0 %v6406_v26 }
 0x814   : > { %4876 = vmatpush3.bf16.msra.mxu0 %v5497_v45  ;;  %v3550_v45 = vld [vmem:[%s1356_s19] sm:$0xff]  ;;  %s7213_s19 = sshll.u32 %s1544_s12, 4  ;;  %s3961_s19 = int_to_ptr.vmem [resolvable:$true] %s7213_s19 }
 0x815   : > { %4877 = vmatprep.subr.bf16.mxu0 %v6406_v26 }
 0x818   : > { %4878 = vmatpush3.bf16.msra.mxu0 %v5498_v46  ;;  %v3551_v46 = vpack.c.bf16 %v3550_v45, %v3550_v45 }
 0x819   : > { %4903 = vmatprep.subr.bf16.mxu0 %v6406_v26 }
 0x81b   : > { %4880 = vmatmul.mubr.bf16.vlgmr.msra.gmra.mxu0 %v7070_v55  ;;  %v5502_v55 = vld [vmem:[%s7461_s28 + $0x20] sm:$0xff]  }
 0x81c   : > { %4911 = vmatprep.mubr.msk.bf16.mxu0 %vm6407_vm9, %v6406_v26  ;;  %4890 = vmatpush3.bf16.msra.mxu1 %v5502_v55  ;;  %v5523_v55 = vld [vmem:[%s7463_s3] sm:$0xff]  }
 0x81d   : > { %4891 = vmatprep.subr.bf16.mxu1 %v6406_v26  ;;  %4904 = vmatpush3.bf16.msra.mxu0 %v5507_v13 }
 0x81e   : > { %4905 = vmatprep.subr.bf16.mxu0 %v6406_v26 }
 0x820   : > { %4892 = vmatpush3.bf16.msra.mxu1 %v5503_v48  ;;  %v4655_v48 = vld [vmem:[#allocation32] ss:$0 sm:$0xff] }
 0x821   : > { %4893 = vmatprep.subr.bf16.mxu1 %v6406_v26  ;;  %4906 = vmatpush3.bf16.msra.mxu0 %v5508_v14 }
 0x822   : > { %4907 = vmatprep.subr.bf16.mxu0 %v6406_v26 }
 0x824   : > { %4894 = vmatpush3.bf16.msra.mxu1 %v5504_v56 }
 0x825   : > { %4895 = vmatprep.subr.bf16.mxu1 %v6406_v26  ;;  %4908 = vmatpush3.bf16.msra.mxu0 %v5509_v15 }
 0x826   : > { %4909 = vmatprep.subr.bf16.mxu0 %v6406_v26 }
 0x828   : > { %4896 = vmatpush3.bf16.msra.mxu1 %v5505_v57 }
 0x829   : > { %4897 = vmatprep.subr.bf16.mxu1 %v6406_v26  ;;  %4910 = vmatpush3.bf16.msra.mxu0 %v5510_v16 }
 0x82a   : > { %4933 = vmatprep.subr.bf16.mxu0 %v6406_v26 }
 0x82c   : > { %4898 = vmatpush3.bf16.msra.mxu1 %v5506_v58 }
 0x82d   : > { %4915 = vmatprep.subr.bf16.mxu1 %v6406_v26 }
 0x8bb   : > { %v3097_v60 = vpop.f32.mrf.mxu0 }
 0x8bc   : > { %v3098_v61 = vadd.f32 %v4621_v59, %v3097_v60 }
 0x8bd   : > { %v4853_v62 = vpop.f32.mrf.mxu0 }
 0x8be   : > { %3103 = vst [vmem:[%s1544_s12] sm:$0xff] %v3098_v61  ;;  %v4659_v61 = vld [vmem:[%s7464_s20] ss:$0 sm:$0xff]  ;;  %s3945_s20 = scalar_lea.hbm %s7392_s4, %s7216_s14 }
 0x8bf   : > { %v3100_v63 = vpop.f32.mrf.mxu0 }
 0x8c1   : > { %v4854_v0 = vpop.f32.mrf.mxu0 }
 0x8db   : > { %v3258_v1 = vpop.f32.mrf.mxu0 }
 0x8dc   : > { %v3259_v3 = vadd.f32 %v3258_v1, %v3170_v50  ;;  %v5518_v50 = vld [vmem:[%s7463_s3 + $0x28] sm:$0xff]  }
 0x8dd   : > { %v4881_v4 = vpop.f32.mrf.mxu0 }
 0x8de   : > { %v3271_v5 = vadd.f32 %v4636_v2, %v3259_v3 }
 0x8df   : > { %v3261_v6 = vpop.f32.mrf.mxu0 }
 0x8e0   : > { %v3273_v7 = vmul.f32 1.442695, %v3271_v5  ;;  %vm3272_vm13 = vcmp.gt.f32.partialorder %v3271_v5, 0.0 }
 0x8e1   : > { %v4882_v8 = vpop.f32.mrf.mxu0 }
 0x8e2   : > { %5552 = vpow2.f32 %v3273_v7  ;;  %v5524_v8 = vld [vmem:[%s7465_s15 + $0x18] sm:$0xff]  }
 0x8ef   : > { %v5553_v9 = vpop.eup %5552 }
 0x8f0   : > { %v4637_v10 = vadd.f32 -1.0, %v5553_v9  ;;  %v5525_v9 = vld [vmem:[%s7465_s15 + $0x10] sm:$0xff]  }
 0x8f2   : > { %v3276_v11 = vsel %vm3272_vm13, %v3271_v5, %v4637_v10  ;;  %v5526_v10 = vld [vmem:[%s7465_s15 + $0x8] sm:$0xff]  }
 0x8f3   : > { %v3277_v12 = vpack.c.bf16 %v3276_v11, %v3276_v11  ;;  %v5527_v11 = vld [vmem:[%s7465_s15] sm:$0xff]  }
 0x8f5   : > { %4900 = vmatmul.mubr.bf16.vlgmr.msra.gmra.mxu1 %v3277_v12  ;;  %v4665_v12 = vld [vmem:[%s7466_s25] ss:$0 sm:$0xff]  ;;  %s7224_s25 = scalar_lea.sflag [#allocation39], %s1343_s27 }
 0x8f6   : > { %4919 = vmatprep.mubr.msk.bf16.mxu1 %vm6407_vm9, %v6406_v26  ;;  %4916 = vmatpush3.bf16.msra.mxu1 %v5511_v29 }
 0x8f7   : > { %4917 = vmatprep.subr.bf16.mxu1 %v6406_v26 }
 0x8fa   : > { %4918 = vmatpush3.bf16.msra.mxu1 %v5512_v30 }
 0x8fb   : > { %4923 = vmatprep.subr.bf16.mxu1 %v6406_v26 }
 0x9b5   : > { %v3383_v18 = vpop.f32.mrf.mxu1 }
 0x9b6   : > { %v3384_v19 = vadd.f32 %v4638_v17, %v3383_v18 }
 0x9b7   : > { %v4901_v20 = vpop.f32.mrf.mxu1 }
 0x9b8   : > { %v3390_v21 = vmul.f32 1.442695, %v3384_v19  ;;  %vm3389_vm14 = vcmp.gt.f32.partialorder %v3384_v19, 0.0 }
 0x9b9   : > { %v3386_v22 = vpop.f32.mrf.mxu1 }
 0x9ba   : > { %5554 = vpow2.f32 %v3390_v21 }
 0x9bb   : > { %v4902_v23 = vpop.f32.mrf.mxu1 }
 0x9bc   : > { %v5528_v23 = vld [vmem:[#allocation35 + $0x8] sm:$0xff]  }
 0x9c7   : > { %v5555_v24 = vpop.eup %5554 }
 0x9c8   : > { %v4647_v25 = vadd.f32 -1.0, %v5555_v24  ;;  %v5529_v24 = vld [vmem:[#allocation35] sm:$0xff]  }
 0x9ca   : > { %v3393_v27 = vsel %vm3389_vm14, %v3384_v19, %v4647_v25  ;;  %v4675_v25 = vld [vmem:[%s7467_s6] ss:$0 sm:$0xff]  ;;  %s6142_s6 = scalar_lea.vmem %s3948_s23, 128 }
 0x9cb   : > { %v3394_v28 = vpack.c.bf16 %v3393_v27, %v3393_v27  ;;  %p6143_p12 = scmp.ne.s32.totalorder %s3948_s23, %s6142_s6 }
 0x9cd   : > { %4912 = vmatmul.mubr.msk.bf16.vlgmr.msra.gmra.mxu0 %vm2660_vm8, %v3394_v28  ;;  %p6144_p9 = pnand %p6143_p12, %p7468_p13 }
 0x9ce   : > { %4949 = vmatprep.mubr.msk.bf16.mxu0 %vm6407_vm9, %v6406_v26  ;;  %4934 = vmatpush3.bf16.msra.mxu0 %v5516_v47 }
 0x9cf   : > { %4935 = vmatprep.subr.bf16.mxu0 %v6406_v26  ;;  %p6145_p7 = pneg %p6144_p9 }
 0x9d2   : > { %4936 = vmatpush3.bf16.msra.mxu0 %v5517_v49 }
 0x9d3   : > { %4937 = vmatprep.subr.bf16.mxu0 %v6406_v26 }
 0x9d6   : > { %4938 = vmatpush3.bf16.msra.mxu0 %v5518_v50 }
 0x9d7   : > { %4939 = vmatprep.subr.bf16.mxu0 %v6406_v26 }
 0x9da   : > { %4940 = vmatpush3.bf16.msra.mxu0 %v5519_v51 }
 0x9db   : > { %4941 = vmatprep.subr.bf16.mxu0 %v6406_v26 }
 0x9de   : > { %4942 = vmatpush3.bf16.msra.mxu0 %v5520_v52 }
 0x9df   : > { %4943 = vmatprep.subr.bf16.mxu0 %v6406_v26 }
 0x9e2   : > { %4944 = vmatpush3.bf16.msra.mxu0 %v5521_v53 }
 0x9e3   : > { %4945 = vmatprep.subr.bf16.mxu0 %v6406_v26 }
 0x9e6   : > { %4946 = vmatpush3.bf16.msra.mxu0 %v5522_v54 }
 0x9e7   : > { %4947 = vmatprep.subr.bf16.mxu0 %v6406_v26 }
 0x9ea   : > { %4948 = vmatpush3.bf16.msra.mxu0 %v5523_v55 }
 0xa8d   : > { %v3471_v33 = vpop.f32.mrf.mxu0 }
 0xa8e   : > { %v3472_v34 = vadd.f32 %v4648_v32, %v3471_v33 }
 0xa8f   : > { %v4913_v35 = vpop.f32.mrf.mxu0 }
 0xa90   : > { %v3478_v36 = vmul.f32 1.442695, %v3472_v34  ;;  %vm3477_vm15 = vcmp.gt.f32.partialorder %v3472_v34, 0.0 }
 0xa91   : > { %v3474_v37 = vpop.f32.mrf.mxu0 }
 0xa92   : > { %5556 = vpow2.f32 %v3478_v36 }
 0xa93   : > { %v4914_v38 = vpop.f32.mrf.mxu0 }
 0xa9f   : > { %v5557_v31 = vpop.eup %5556 }
 0xaa0   : > { %v4654_v39 = vadd.f32 -1.0, %v5557_v31 }
 0xaa2   : > { %v3481_v40 = vsel %vm3477_vm15, %v3472_v34, %v4654_v39 }
 0xaa3   : > { %v3482_v42 = vpack.c.bf16 %v3481_v40, %v3481_v40 }
 0xaa5   : > { %4920 = vmatmul.mubr.msk.bf16.vlgmr.msra.gmra.mxu1 %vm1819_vm0, %v3482_v42 }
 0xaa6   : > { %4924 = vmatpush3.bf16.msra.mxu1 %v5513_v41  ;;  %4929 = vmatprep.mubr.msk.bf16.mxu1 %vm6407_vm9, %v6406_v26 }
 0xaa7   : > { %4925 = vmatprep.subr.bf16.mxu1 %v6406_v26 }
 0xaaa   : > { %4926 = vmatpush3.bf16.msra.mxu1 %v5514_v43 }
 0xaab   : > { %4927 = vmatprep.subr.bf16.mxu1 %v6406_v26 }
 0xaae   : > { %4928 = vmatpush3.bf16.msra.mxu1 %v5515_v44 }
 0xaaf   : > { %4953 = vmatprep.subr.bf16.mxu1 %v6406_v26 }
 0xab1   : > { %4930 = vmatmul.mubr.msk.bf16.vlgmr.msra.gmra.mxu1 %vm3583_vm1, %v3551_v46 }
 0xab2   : > { %4961 = vmatprep.mubr.msk.bf16.mxu1 %vm6407_vm9, %v6406_v26  ;;  %4954 = vmatpush3.bf16.msra.mxu1 %v5524_v8 }
 0xab3   : > { %4955 = vmatprep.subr.bf16.mxu1 %v6406_v26 }
 0xab6   : > { %4956 = vmatpush3.bf16.msra.mxu1 %v5525_v9 }
 0xab7   : > { %4957 = vmatprep.subr.bf16.mxu1 %v6406_v26 }
 0xaba   : > { %4958 = vmatpush3.bf16.msra.mxu1 %v5526_v10 }
 0xabb   : > { %4959 = vmatprep.subr.bf16.mxu1 %v6406_v26 }
 0xabe   : > { %4960 = vmatpush3.bf16.msra.mxu1 %v5527_v11 }
 0xabf   : > { %4965 = vmatprep.subr.bf16.mxu1 %v6406_v26 }
 0xb65   : > { %v3543_v56 = vpop.f32.mrf.mxu1 }
 0xb66   : > { %v3544_v57 = vadd.f32 %v4655_v48, %v3543_v56 }
 0xb67   : > { %v4921_v58 = vpop.f32.mrf.mxu1 }
 0xb68   : > { %3549 = vst [vmem:[%s7349_s29] sm:$0xff] %v3544_v57  ;;  %s6408_s29 = smov [#allocation38]  }
 0xb69   : > { %v3546_v59 = vpop.f32.mrf.mxu1  ;;  %s6146_s3 = sshll.u32 %s6408_s29, 4  ;;  %s6147_s3 = int_to_ptr.vmem [resolvable:$false] %s6146_s3 }
 0xb6a   : > { %s6148_s12 = scalar_lea.vmem %s6147_s3, 256  ;;  %p6149_p6 = scmp.lt.s32.totalorder %s3948_s23, %s6147_s3 }
 0xb6b   : > { %v4922_v60 = vpop.f32.mrf.mxu1  ;;  %p6150_p4 = scmp.lt.s32.totalorder %s6148_s12, %s6142_s6 }
 0xb6d   : > { %p6151_p5 = por %p6150_p4, %p6149_p6 }
 0xb6f   : > { %p6152_p11 = pnand %p6151_p5, %p6145_p7 }
 0xb71   : > { %v3621_v62 = vpop.f32.mrf.mxu1 }
 0xb72   : > { %v3622_v63 = vadd.f32 %v4659_v61, %v3621_v62 }
 0xb73   : > { %v4931_v0 = vpop.f32.mrf.mxu1 }
 0xb74   : > { %v3628_v1 = vmul.f32 1.442695, %v3622_v63  ;;  %vm3627_vm2 = vcmp.gt.f32.partialorder %v3622_v63, 0.0 }
 0xb75   : > { %v3624_v2 = vpop.f32.mrf.mxu1 }
 0xb76   : > { %5558 = vpow2.f32 %v3628_v1 }
 0xb77   : > { %v4932_v3 = vpop.f32.mrf.mxu1 }
 0xb83   : > { %v5559_v4 = vpop.eup %5558 }
 0xb84   : > { %v4664_v5 = vadd.f32 -1.0, %v5559_v4 }
 0xb86   : > { %v3631_v6 = vsel %vm3627_vm2, %v3622_v63, %v4664_v5 }
 0xb87   : > { %v3632_v7 = vpack.c.bf16 %v3631_v6, %v3631_v6 }
 0xb89   : > { %4950 = vmatmul.mubr.bf16.vlgmr.msra.gmra.mxu0 %v3632_v7 }
 0xc49   : > { %v3738_v13 = vpop.f32.mrf.mxu0 }
 0xc4a   : > { %v3739_v14 = vadd.f32 %v4665_v12, %v3738_v13 }
 0xc4b   : > { %v4951_v15 = vpop.f32.mrf.mxu0 }
 0xc4c   : > { %v3745_v16 = vmul.f32 1.442695, %v3739_v14  ;;  %vm3744_vm3 = vcmp.gt.f32.partialorder %v3739_v14, 0.0 }
 0xc4d   : > { %v3741_v17 = vpop.f32.mrf.mxu0 }
 0xc4e   : > { %5560 = vpow2.f32 %v3745_v16 }
 0xc4f   : > { %v4952_v18 = vpop.f32.mrf.mxu0 }
 0xc5b   : > { %v5561_v19 = vpop.eup %5560 }
 0xc5c   : > { %v4674_v20 = vadd.f32 -1.0, %v5561_v19 }
 0xc5e   : > { %v3748_v21 = vsel %vm3744_vm3, %v3739_v14, %v4674_v20 }
 0xc5f   : > { %v3749_v22 = vpack.c.bf16 %v3748_v21, %v3748_v21 }
 0xc61   : > { %4962 = vmatmul.mubr.msk.bf16.vlgmr.msra.gmra.mxu1 %vm2660_vm8, %v3749_v22 }
 0xc62   : > { %4969 = vmatprep.mubr.msk.bf16.mxu1 %vm6407_vm9, %v6406_v26  ;;  %4966 = vmatpush3.bf16.msra.mxu1 %v5528_v23 }
 0xc63   : > { %4967 = vmatprep.subr.bf16.mxu1 %v6406_v26 }
 0xc66   : > { %4968 = vmatpush3.bf16.msra.mxu1 %v5529_v24 }
 0xd21   : > { %v3826_v27 = vpop.f32.mrf.mxu1 }
 0xd22   : > { %v3827_v28 = vadd.f32 %v4675_v25, %v3826_v27 }
 0xd23   : > { %v4963_v29 = vpop.f32.mrf.mxu1 }
 0xd24   : > { %v3833_v30 = vmul.f32 1.442695, %v3827_v28  ;;  %vm3832_vm4 = vcmp.gt.f32.partialorder %v3827_v28, 0.0 }
 0xd25   : > { %v3829_v32 = vpop.f32.mrf.mxu1 }
 0xd26   : > { %5562 = vpow2.f32 %v3833_v30 }
 0xd27   : > { %v4964_v33 = vpop.f32.mrf.mxu1 }
 0xd33   : > { %v5563_v34 = vpop.eup %5562 }
 0xd34   : > { %v4681_v35 = vadd.f32 -1.0, %v5563_v34 }
 0xd36   : > { %v3836_v26 = vsel %vm3832_vm4, %v3827_v28, %v4681_v35 }
 0xd37   : > { %v3837_v36 = vpack.c.bf16 %v3836_v26, %v3836_v26 }
 0xd39   : > { %4970 = vmatmul.mubr.msk.bf16.vlgmr.msra.gmra.mxu1 %vm1819_vm0, %v3837_v36 }
 0xd3a   : > { %6155 = shalt.err (!%p6152_p11)
}
 0xd3b   : > { %s6156_s18 = scalar_lea.hbm %s3945_s20, 128  ;;  %s6160_s2 = scalar_lea.hbm %s7392_s4, 256 }
 0xd3c   : > { %p6157_p0 = scmp.ne.s32.totalorder %s3945_s20, %s6156_s18  ;;  %p6161_p8 = scmp.lt.s32.totalorder %s3945_s20, %s7392_s4 }
 0xd3d   : > { %p6162_p1 = scmp.lt.s32.totalorder %s6160_s2, %s6156_s18 }
 0xd3e   : > { %p6158_p10 = pnand %p6157_p0, %p7468_p13 }
 0xd3f   : > { %p6163_p3 = por %p6162_p1, %p6161_p8 }
 0xd40   : > { %p6159_p2 = pneg %p6158_p10 }
 0xd42   : > { %p6164_p12 = pnand %p6163_p3, %p6159_p2 }
 0xd44   : > { %6167 = shalt.err (!%p6164_p12)
}
 0xd45   : > { %s7469_s27 = sld [smem:[#allocation94_spill]]  ;;  %s7237_s3 = scalar_lea.hbm %s6600_s5, %s7216_s14 }
 0xd46   : > { %5056 = dma.vmem_to_hbm [thread:$0]  (%p7468_p13), %s3948_s23, 128, %s3945_s20, %s7224_s25  }
 0xd47   : > { %s7470_s29 = scalar_lea.vmem [#allocation37], %s6900_s7  ;;  %s3906_s18 = scalar_lea.sflag [#allocation4], %s6888_s30 }
 0xd48   : > { %s3934_s6 = sshll.u32 %s7470_s29, 4  ;;  %s6409_s4 = smov [#allocation37]   ;;  %s3935_s6 = int_to_ptr.vmem [resolvable:$true] %s3934_s6 }
 0xd49   : > { %s6168_s2 = scalar_lea.vmem %s3935_s6, 128  ;;  %s6172_s8 = sshll.u32 %s6409_s4, 4  ;;  %s6173_s8 = int_to_ptr.vmem [resolvable:$false] %s6172_s8 }
 0xd4a   : > { %p6169_p9 = scmp.ne.s32.totalorder %s3935_s6, %s6168_s2  ;;  %s6174_s9 = scalar_lea.vmem %s6173_s8, 256 }
 0xd4b   : > { %s7243_s12 = scalar_lea.hbm %s7469_s27, %s7216_s14  ;;  %p6175_p4 = scmp.lt.s32.totalorder %s3935_s6, %s6173_s8 }
 0xd4c   : > { %p6170_p7 = pnand %p6169_p9, %p7468_p13  ;;  %p6176_p5 = scmp.lt.s32.totalorder %s6174_s9, %s6168_s2 }
 0xd4e   : > { %p6171_p6 = pneg %p6170_p7  ;;  %p6177_p11 = por %p6176_p5, %p6175_p4 }
 0xd50   : > { %p6178_p0 = pnand %p6177_p11, %p6171_p6 }
 0xd52   : > { %6181 = shalt.err (!%p6178_p0)
}
 0xd53   : > { %s6182_s23 = scalar_lea.hbm %s7237_s3, 128  ;;  %s6186_s20 = scalar_lea.hbm %s6600_s5, 256 }
 0xd54   : > { %p6183_p10 = scmp.ne.s32.totalorder %s7237_s3, %s6182_s23  ;;  %p6187_p1 = scmp.lt.s32.totalorder %s7237_s3, %s6600_s5 }
 0xd55   : > { %p6188_p3 = scmp.lt.s32.totalorder %s6186_s20, %s6182_s23 }
 0xd56   : > { %p6184_p2 = pnand %p6183_p10, %p7468_p13 }
 0xd57   : > { %p6189_p12 = por %p6188_p3, %p6187_p1 }
 0xd58   : > { %p6185_p8 = pneg %p6184_p2 }
 0xd5a   : > { %p6190_p9 = pnand %p6189_p12, %p6185_p8 }
 0xd5c   : > { %6193 = shalt.err (!%p6190_p9)
}
 0xd5d   : > { %5055 = dma.vmem_to_hbm [thread:$0]  (%p7468_p13), %s3935_s6, 128, %s7237_s3, %s3906_s18  }
 0xd5e   : > { %s6194_s4 = scalar_lea.vmem %s3961_s19, 128  ;;  %s6410_s8 = smov [#allocation40]  }
 0xd5f   : > { %p6195_p7 = scmp.ne.s32.totalorder %s3961_s19, %s6194_s4  ;;  %s6198_s9 = sshll.u32 %s6410_s8, 4  ;;  %s6199_s9 = int_to_ptr.vmem [resolvable:$false] %s6198_s9 }
 0xd60   : > { %s6200_s29 = scalar_lea.vmem %s6199_s9, 256  ;;  %p6201_p5 = scmp.lt.s32.totalorder %s3961_s19, %s6199_s9 }
 0xd61   : > { %p6196_p6 = pnand %p6195_p7, %p7468_p13  ;;  %p6202_p11 = scmp.lt.s32.totalorder %s6200_s29, %s6194_s4 }
 0xd63   : > { %p6197_p4 = pneg %p6196_p6  ;;  %p6203_p0 = por %p6202_p11, %p6201_p5 }
 0xd65   : > { %p6204_p10 = pnand %p6203_p0, %p6197_p4 }
 0xd67   : > { %6207 = shalt.err (!%p6204_p10)
}
 0xd68   : > { %s6208_s3 = scalar_lea.hbm %s7243_s12, 128  ;;  %s6212_s6 = scalar_lea.hbm %s7469_s27, 256 }
 0xd69   : > { %p6209_p2 = scmp.ne.s32.totalorder %s7243_s12, %s6208_s3  ;;  %p6213_p3 = scmp.lt.s32.totalorder %s7243_s12, %s7469_s27 }
 0xd6a   : > { %p6214_p12 = scmp.lt.s32.totalorder %s6212_s6, %s6208_s3 }
 0xd6b   : > { %p6210_p8 = pnand %p6209_p2, %p7468_p13 }
 0xd6c   : > { %p6215_p9 = por %p6214_p12, %p6213_p3 }
 0xd6d   : > { %p6211_p1 = pneg %p6210_p8 }
 0xd6f   : > { %p6216_p7 = pnand %p6215_p9, %p6211_p1 }
 0xd71   : > { %6219 = shalt.err (!%p6216_p7)
}
 0xd72   : > { %s7471_s18 = sld [smem:[#allocation92_spill]]  ;;  %s1551_s23 = scalar_lea.vmem [#allocation41], %s6900_s7 }
 0xd73   : > { %s7472_s2 = sld [smem:[#allocation95_spill]]  ;;  %s3973_s20 = sshll.u32 %s1551_s23, 4  ;;  %s7278_s20 = int_to_ptr.vmem [resolvable:$true] %s3973_s20 }
 0xd74   : > { %5057 = dma.vmem_to_hbm [thread:$0]  (%p7468_p13), %s3961_s19, 128, %s7243_s12, %s7224_s25  }
 0xd75   : > { %s3921_s8 = scalar_lea.sflag [#allocation42], %s6888_s30  ;;  %s6220_s9 = scalar_lea.vmem %s7278_s20, 128 }
 0xd76   : > { %p6221_p6 = scmp.ne.s32.totalorder %s7278_s20, %s6220_s9  ;;  %s6411_s7 = smov [#allocation41]  }
 0xd77   : > { %s6224_s19 = sshll.u32 %s6411_s7, 4  ;;  %s6225_s19 = int_to_ptr.vmem [resolvable:$false] %s6224_s19 }
 0xd78   : > { %v4682_v37 = vld [vmem:[%s7471_s18] ss:$0 sm:$0xff]  ;;  %p6222_p4 = pnand %p6221_p6, %p7468_p13  ;;  %s6226_s25 = scalar_lea.vmem %s6225_s19, 256 }
 0xd79   : > { %s7276_s4 = scalar_lea.hbm %s7472_s2, %s7216_s14  ;;  %p6227_p11 = scmp.lt.s32.totalorder %s7278_s20, %s6225_s19 }
 0xd7a   : > { %p6223_p5 = pneg %p6222_p4  ;;  %p6228_p0 = scmp.lt.s32.totalorder %s6226_s25, %s6220_s9 }
 0xd7c   : > { %p6229_p10 = por %p6228_p0, %p6227_p11 }
 0xd7e   : > { %p6230_p2 = pnand %p6229_p10, %p6223_p5 }
 0xdf9   : > { %v3898_v38 = vpop.f32.mrf.mxu1 }
 0xdfa   : > { %v3899_v31 = vadd.f32 %v4682_v37, %v3898_v38 }
 0xdfb   : > { %v4971_v39 = vpop.f32.mrf.mxu1 }
 0xdfc   : > { %3904 = vst [vmem:[%s1551_s23] sm:$0xff] %v3899_v31 }
 0xdfd   : > { %v3901_v40 = vpop.f32.mrf.mxu1 }
 0xdfe   : > { %6233 = shalt.err (!%p6230_p2)
}
 0xdff   : > { %s6234_s30 = scalar_lea.hbm %s7276_s4, 128  ;;  %s6238_s14 = scalar_lea.hbm %s7472_s2, 256 }
 0xe00   : > { %p6235_p8 = scmp.ne.s32.totalorder %s7276_s4, %s6234_s30  ;;  %p6239_p12 = scmp.lt.s32.totalorder %s7276_s4, %s7472_s2 }
 0xe01   : > { %p6240_p9 = scmp.lt.s32.totalorder %s6238_s14, %s6234_s30 }
 0xe02   : > { %p6236_p1 = pnand %p6235_p8, %p7468_p13 }
 0xe03   : > { %p6241_p7 = por %p6240_p9, %p6239_p12 }
 0xe04   : > { %p6237_p3 = pneg %p6236_p1 }
 0xe06   : > { %p6242_p6 = pnand %p6241_p7, %p6237_p3 }
 0xe08   : > { %6245 = shalt.err (!%p6242_p6)
}
 0xe09   : > { %5058 = dma.vmem_to_hbm [thread:$0]  (%p7468_p13), %s7278_s20, 128, %s7276_s4, %s3921_s8   ;;  %v4972_v41 = vpop.f32.mrf.mxu1 }
 0xe0a PF: > { %s3985_s12 = sand.u32 1, %s6324_s0   ;;  %p7473_p4 = scmp.ne.s32.totalorder %s7412_s10, 0 }
 0xe0b   : > { %p7474_p5 = scmp.ge.s32.totalorder %s6336_s26, 2  ;;  %s3986_s29 = scalar_lea.sflag [#allocation4], %s3985_s12 }
 0xe0d   : > { %p5132_p11 = pnand %p7474_p5, %p7473_p4 }
 0xe0f   : > { %p5133_p0 = pneg %p5132_p11 }
 0xe11   : > { %6311 = dma.done.wait (%p5133_p0), %s3986_s29, 128  }
 0xe12   : > { %6313 = vsyncadd (%p5133_p0), %s3986_s29, 4294967168  ;;  %s7475_s3 = sadd.s32 4294967294, %s6336_s26  }
 0xe13   : > { %s3994_s6 = sand.u32 1, %s7475_s3  }
 0xe14   : > { %s3995_s1 = scalar_lea.sflag [#allocation39], %s3994_s6 }
 0xe15   : > { %6315 = dma.done.wait (%p5133_p0), %s3995_s1, 256  }
 0xe16   : > { %6317 = vsyncadd (%p5133_p0), %s3995_s1, 4294967040  ;;  %s4013_s18 = scalar_lea.sflag [#allocation42], %s3985_s12 }
 0xe17   : > { %6319 = dma.done.wait (%p5133_p0), %s4013_s18, 128  }
 0xe18   : > { %6321 = vsyncadd (%p5133_p0), %s4013_s18, 4294967168  ;;  %s7476_s26 = sld [smem:[#allocation97_spill]]  ;;  %s7479_s0 = smov %s6328_s22 }
 0xe19   : > { %s7477_s23 = sld [smem:[#allocation96_spill]] }
 0xe1a   : > { %s7478_s20 = sld [smem:[#allocation98_spill]] }
 0xe1e   : > { %p112_p13 = scmp.ge.s32.totalorder %s7476_s26, 4  }
 0xe1f   : > { %s7480_s22 = smov %s7477_s23 }
 0xe20   : > { %s7481_s23 = smov %s7478_s20  ;;  %114 = sbr.rel (!%p112_p13) target bundleno = 104 (0x68), region = 397 }
 0xe25   :  { %4018 = vsyncpa [#allocation3], 1 }
 0xe26   :  { %4020 = vsyncpa [#allocation3 + $0x1], 1 }
 0xe27   :  { %4021 = vsyncpa [#allocation6], 1 }
 0xe28   :  { %4023 = vsyncpa [#allocation6 + $0x1], 1 }
 0xe29   :  { %4024 = vsyncpa [#allocation9], 1 }
 0xe2a   :  { %4025 = vsyncpa [#allocation12], 1 }
 0xe2b   :  { %4026 = vsyncpa [#allocation15], 1 }
 0xe2c   :  { %4027 = vsyncpa [#allocation18], 1 }
 0xe2d   :  { %4028 = vsyncpa [#allocation21], 1 }
 0xe2e   :  { %4029 = vsyncpa [#allocation24], 1 }
 0xe2f   :  { %4030 = vsyncpa [#allocation27], 1 }
 0xe30   :  { %4031 = vsyncpa [#allocation30], 1 }
 0xe31   :  { %4032 = vsyncpa [#allocation33], 1 }
 0xe32   :  { %4033 = vsyncpa [#allocation36], 1 }
 0xe33   :  { %4034 = vsyncpa [#allocation4], 1 }
 0xe34   :  { %4036 = vsyncpa [#allocation4 + $0x1], 1 }
 0xe35   :  { %4037 = vsyncpa [#allocation39], 1 }
 0xe36   :  { %4039 = vsyncpa [#allocation39 + $0x1], 1 }
 0xe37   :  { %4040 = vsyncpa [#allocation42], 1 }
 0xe38   :  { %4042 = vsyncpa [#allocation42 + $0x1], 1 }

</bundles_post_ra>
